<compile_context>
chip_gen: v7x
topology: tpu7x:2x2x1
jax: 0.10.0
libtpu: 0.0.40
codegen_flags: <defaults>
</compile_context>

<pallas_src>
import functools

import jax
import jax.numpy as jnp
from jax import lax
from jax.experimental import pallas as pl
from jax.experimental.pallas import tpu as pltpu


# ----------------------------- Pallas kernels -----------------------------

def _down_block_kernel(*refs, pool, has_tail, ho1, wo1, ho2, wo2):
    """[maxpool2x2] + conv3x3+ReLU + conv3x3+ReLU (+ fused pointwise tail); one image per step.

    refs (positional, in order):
      pool=True : xe, xo        even / odd input-column views, each (1, H, W/2, Cin)
      pool=False: x             (1, H, W, Cin)
      w1 (9*Cin, C1), w2 (9*C1, C1)
      has_tail  : wt (C1, F), bt (1, F)   fused pointwise (deconv channel-matmul / 1x1 classifier)
      o  (1, ho2, wo2, C1 or F)           output block
      y1 (ho1, wo1, C1)                   VMEM scratch: conv1 activations
    """
    refs = list(refs)
    if pool:
        xe_ref, xo_ref = refs[0], refs[1]
        refs = refs[2:]
    else:
        x_ref = refs[0]
        refs = refs[1:]
    w1_ref, w2_ref = refs[0], refs[1]
    refs = refs[2:]
    if has_tail:
        wt_ref, bt_ref = refs[0], refs[1]
        refs = refs[2:]
    o_ref, y1_ref = refs[0], refs[1]

    # hoist weight loads out of the row loops
    w1 = w1_ref[...]
    w2 = w2_ref[...]
    if has_tail:
        wt = wt_ref[...]
        bt = bt_ref[...]

    # ---- conv1 (3x3 valid, im2col, one MXU matmul per row) + fused maxpool when pool=True ----
    def conv1_body(h, carry):
        if pool:
            se = xe_ref[0, pl.ds(2 * h, 6)]        # (6, W/2, Cin): raw rows 2h..2h+5, even cols
            so = xo_ref[0, pl.ds(2 * h, 6)]        # (6, W/2, Cin): raw rows 2h..2h+5, odd cols
            rows3 = [jnp.maximum(jnp.maximum(se[2 * d], so[2 * d]),
                                 jnp.maximum(se[2 * d + 1], so[2 * d + 1]))
                     for d in range(3)]            # pooled rows h, h+1, h+2 -> (W/2, Cin) each
        else:
            raw = x_ref[0, pl.ds(h, 3)]            # (3, W, Cin)
            rows3 = [raw[d] for d in range(3)]
        patch = jnp.concatenate(                   # (wo1, 9*Cin), K order = (dh, dw, ci)
            [rows3[dh][dw:dw + wo1, :] for dh in range(3) for dw in range(3)], axis=-1)
        y = jnp.dot(patch, w1, preferred_element_type=jnp.float32)
        y1_ref[h] = jnp.maximum(y, 0.0)
        return carry

    lax.fori_loop(0, ho1, conv1_body, 0)

    # ---- conv2 (3x3 valid) + ReLU (+ optional fused pointwise tail) ----
    def conv2_body(h, carry):
        raw = y1_ref[pl.ds(h, 3)]                  # (3, wo1, C1)
        patch = jnp.concatenate(
            [raw[dh][dw:dw + wo2, :] for dh in range(3) for dw in range(3)], axis=-1)
        y = jnp.maximum(jnp.dot(patch, w2, preferred_element_type=jnp.float32), 0.0)
        if has_tail:
            y = jnp.dot(y, wt, preferred_element_type=jnp.float32) + bt
        o_ref[0, h] = y.astype(o_ref.dtype)
        return carry

    lax.fori_loop(0, ho2, conv2_body, 0)


def _up_block_kernel(up_ref, skip_ref, w1u_ref, w1s_ref, w2_ref, wt_ref, bt_ref,
                     o_ref, y1_ref, *, ho1, wo1, ho2, wo2):
    """Split-K conv3x3+ReLU over the fused channel-concat [deconv-out, skip], conv3x3+ReLU,
    + fused pointwise tail (next deconv channel matmul, or the 1x1 classifier)."""
    w1u = w1u_ref[...]
    w1s = w1s_ref[...]
    w2 = w2_ref[...]
    wt = wt_ref[...]
    bt = bt_ref[...]

    def conv1_body(h, carry):
        ru = up_ref[0, pl.ds(h, 3)]                # (3, W, C)
        rs = skip_ref[0, pl.ds(h, 3)]              # (3, W, C)
        pu = jnp.concatenate(
            [ru[dh][dw:dw + wo1, :] for dh in range(3) for dw in range(3)], axis=-1)
        ps = jnp.concatenate(
            [rs[dh][dw:dw + wo1, :] for dh in range(3) for dw in range(3)], axis=-1)
        y = (jnp.dot(pu, w1u, preferred_element_type=jnp.float32)
             + jnp.dot(ps, w1s, preferred_element_type=jnp.float32))
        y1_ref[h] = jnp.maximum(y, 0.0)
        return carry

    lax.fori_loop(0, ho1, conv1_body, 0)

    def conv2_body(h, carry):
        raw = y1_ref[pl.ds(h, 3)]                  # (3, wo1, C)
        patch = jnp.concatenate(
            [raw[dh][dw:dw + wo2, :] for dh in range(3) for dw in range(3)], axis=-1)
        y = jnp.maximum(jnp.dot(patch, w2, preferred_element_type=jnp.float32), 0.0)
        y = jnp.dot(y, wt, preferred_element_type=jnp.float32) + bt
        o_ref[0, h] = y.astype(o_ref.dtype)
        return carry

    lax.fori_loop(0, ho2, conv2_body, 0)


# ----------------------------- kernel wrappers -----------------------------

def down_block(x, w1, w2, *, pool, tail=None):
    """x: (N,H,W,Cin) NHWC.  w1: (3,3,Cin,C1), w2: (3,3,C1,C1) (bias-free, each followed by ReLU).
    pool: apply 2x2/2 maxpool before the convs.  tail: optional (wt (C1,F), bt (F,)) fused
    pointwise applied to the conv2 output."""
    N, H, W, Cin = x.shape
    C1 = w1.shape[-1]
    if pool:
        Hp, Wp = H // 2, W // 2
        ho1, wo1 = Hp - 2, Wp - 2
        # even / odd column views (plain XLA slices): lets the kernel fuse the maxpool without
        # any strided ref indexing.
        inputs = [x[:, :, 0::2, :], x[:, :, 1::2, :]]
        in_specs = [pl.BlockSpec((1, H, Wp, Cin), lambda n: (n, 0, 0, 0)),
                    pl.BlockSpec((1, H, Wp, Cin), lambda n: (n, 0, 0, 0))]
    else:
        ho1, wo1 = H - 2, W - 2
        inputs = [x]
        in_specs = [pl.BlockSpec((1, H, W, Cin), lambda n: (n, 0, 0, 0))]
    ho2, wo2 = ho1 - 2, wo1 - 2

    w1m = w1.reshape(9 * Cin, C1)                  # im2col weight layout, (dh, dw, ci) -> rows
    w2m = w2.reshape(9 * C1, C1)
    inputs += [w1m, w2m]
    in_specs += [pl.BlockSpec((9 * Cin, C1), lambda n: (0, 0)),
                 pl.BlockSpec((9 * C1, C1), lambda n: (0, 0))]

    if tail is not None:
        wt, bt = tail
        F = wt.shape[-1]
        bt2 = bt.reshape(1, F).astype(x.dtype)
        inputs += [wt, bt2]
        in_specs += [pl.BlockSpec((C1, F), lambda n: (0, 0)),
                     pl.BlockSpec((1, F), lambda n: (0, 0))]
        cout = F
    else:
        cout = C1

    kernel = functools.partial(_down_block_kernel, pool=pool, has_tail=tail is not None,
                               ho1=ho1, wo1=wo1, ho2=ho2, wo2=wo2)
    return pl.pallas_call(
        kernel,
        out_shape=jax.ShapeDtypeStruct((N, ho2, wo2, cout), x.dtype),
        grid=(N,),
        in_specs=in_specs,
        out_specs=pl.BlockSpec((1, ho2, wo2, cout), lambda n: (n, 0, 0, 0)),
        scratch_shapes=[pltpu.VMEM((ho1, wo1, C1), jnp.float32)],
        compiler_params=pltpu.CompilerParams(dimension_semantics=("parallel",)),
    )(*inputs)


def up_block(x_up, skip, w1, w2, wt, bt):
    """x_up, skip: (N,H,W,C).  w1: (3,3,2C,C) applied to concat([x_up, skip], channel) (fused as
    split-K), w2: (3,3,C,C); fused tail pointwise wt (C,F), bt (F,)."""
    N, H, W, C = x_up.shape
    ho1, wo1 = H - 2, W - 2
    ho2, wo2 = ho1 - 2, wo1 - 2
    w1u = w1[:, :, :C, :].reshape(9 * C, C)        # split-K halves of the concat conv
    w1s = w1[:, :, C:, :].reshape(9 * C, C)
    w2m = w2.reshape(9 * C, C)
    F = wt.shape[-1]
    bt2 = bt.reshape(1, F).astype(x_up.dtype)

    kernel = functools.partial(_up_block_kernel, ho1=ho1, wo1=wo1, ho2=ho2, wo2=wo2)
    return pl.pallas_call(
        kernel,
        out_shape=jax.ShapeDtypeStruct((N, ho2, wo2, F), x_up.dtype),
        grid=(N,),
        in_specs=[
            pl.BlockSpec((1, H, W, C), lambda n: (n, 0, 0, 0)),
            pl.BlockSpec((1, H, W, C), lambda n: (n, 0, 0, 0)),
            pl.BlockSpec((9 * C, C), lambda n: (0, 0)),
            pl.BlockSpec((9 * C, C), lambda n: (0, 0)),
            pl.BlockSpec((9 * C, C), lambda n: (0, 0)),
            pl.BlockSpec((C, F), lambda n: (0, 0)),
            pl.BlockSpec((1, F), lambda n: (0, 0)),
        ],
        out_specs=pl.BlockSpec((1, ho2, wo2, F), lambda n: (n, 0, 0, 0)),
        scratch_shapes=[pltpu.VMEM((ho1, wo1, C), jnp.float32)],
        compiler_params=pltpu.CompilerParams(dimension_semantics=("parallel",)),
    )(x_up, skip, w1u, w1s, w2m, wt, bt2)


# ----------------------------- plain-JAX glue -----------------------------

def _deconv_tail_params(wd, bd):
    """ConvTranspose2d(k=2, s=2) as a pointwise tail (stride==kernel -> no overlap).
    wd: (Cin, Cout, 2, 2) torch layout, bd: (Cout,).
    Returns wt (Cin, 4*Cout) with minor order (dh, dw, cout), bt (4*Cout,), Cout."""
    cin, cout = wd.shape[0], wd.shape[1]
    wt = jnp.transpose(wd, (0, 2, 3, 1)).reshape(cin, 4 * cout)
    bt = jnp.tile(bd, 4)
    return wt, bt, cout


def _interleave2x2(y, cout):
    """(N, H, W, 4*cout) with minor (dh, dw, c) order -> (N, 2H, 2W, cout)."""
    N, H, W, _ = y.shape
    y = y.reshape(N, H, W, 2, 2, cout)
    y = jnp.transpose(y, (0, 1, 3, 2, 4, 5))
    return y.reshape(N, 2 * H, 2 * W, cout)


def center_crop(x, size):
    # NOTE: standard torchvision center-crop semantics; all size deltas here are even.
    off_h = (x.shape[1] - size) // 2
    off_w = (x.shape[2] - size) // 2
    return x[:, off_h:off_h + size, off_w:off_w + size, :]


def get_crop_sizes(img_size, net_depth):
    size = img_size
    crop_sizes = []
    for _ in range(net_depth):
        size -= 4
        size //= 2
    size *= 2
    for _ in range(net_depth - 1):
        size *= 2
        crop_sizes.append(size)
        size -= 4
    return crop_sizes


def init_params(key, in_channels, num_classes, net_depth, ffilters, dtype=jnp.float32):
    keys = iter(jax.random.split(key, 8 * net_depth + 8))

    def conv_w(k, kh, kw, cin, cout):
        fan_in = kh * kw * cin
        return (jax.random.normal(k, (kh, kw, cin, cout), dtype) / jnp.sqrt(fan_in)).astype(dtype)

    params = {"down": [], "up": []}
    prev, out = in_channels, ffilters
    for _ in range(net_depth):                     # DownBlock(prev, out, bias=False)
        params["down"].append({
            "w1": conv_w(next(keys), 3, 3, prev, out),
            "w2": conv_w(next(keys), 3, 3, out, out),
        })
        prev, out = out, out * 2
    out //= 4
    for _ in range(net_depth - 1):                 # UpBlock(prev, out, bias=False)
        wd = (jax.random.normal(next(keys), (prev, out, 2, 2), dtype)
              / jnp.sqrt(4.0 * prev)).astype(dtype)              # ConvTranspose2d (Cin,Cout,2,2)
        bd = (0.01 * jax.random.normal(next(keys), (out,), dtype)).astype(dtype)  # deconv bias=True
        params["up"].append({
            "wd": wd, "bd": bd,
            "w1": conv_w(next(keys), 3, 3, 2 * out, out),
            "w2": conv_w(next(keys), 3, 3, out, out),
        })
        prev, out = out, out // 2
    params["cls_w"] = conv_w(next(keys), 1, 1, prev, num_classes).reshape(prev, num_classes)
    return params


def unet_forward(x_nchw, params, *, crop_sizes):
    # NCHW at the API boundary (PyTorch convention), NHWC (channels on lanes) inside the kernels.
    x = jnp.transpose(x_nchw, (0, 2, 3, 1))
    down, up = params["down"], params["up"]
    cls_w = params["cls_w"]
    n_down = len(down)
    skips = []

    for i, blk in enumerate(down):
        tail = None
        if i == n_down - 1:                        # fuse the first deconv (or the classifier)
            if up:
                wt, bt, _ = _deconv_tail_params(up[0]["wd"], up[0]["bd"])
            else:
                wt = cls_w
                bt = jnp.zeros((cls_w.shape[-1],), x.dtype)
            tail = (wt, bt)
        x = down_block(x, blk["w1"], blk["w2"], pool=(i > 0), tail=tail)
        if i < len(crop_sizes):
            skips.append(center_crop(x, crop_sizes[~i]))

    for j, blk in enumerate(up):
        # x holds this up block's deconv output in pre-interleave (dh, dw, c) form (produced as
        # the previous kernel's fused tail); expand it to 2x spatial resolution here (layout glue).
        x = _interleave2x2(x, blk["wd"].shape[1])
        if j + 1 < len(up):
            wt, bt, _ = _deconv_tail_params(up[j + 1]["wd"], up[j + 1]["bd"])
        else:
            wt = cls_w                             # fused 1x1 classifier, bias-free
            bt = jnp.zeros((cls_w.shape[-1],), x.dtype)
        x = up_block(x, skips[~j], blk["w1"], blk["w2"], wt, bt)

    return jnp.transpose(x, (0, 3, 1, 2))          # NHWC -> NCHW logits


# ----------------------------- pure-JAX reference (for self-check) -----------------------------

def _ref_forward(x_nchw, params, *, crop_sizes):
    dn = ("NHWC", "HWIO", "NHWC")
    x = jnp.transpose(x_nchw, (0, 2, 3, 1))

    def conv3x3_ref(x, w):
        y = lax.conv_general_dilated(x, w, (1, 1), "VALID", dimension_numbers=dn)
        return jnp.maximum(y, 0.0)

    def pool_ref(x):
        return lax.reduce_window(x, -jnp.inf, lax.max, (1, 2, 2, 1), (1, 2, 2, 1), "VALID")

    def deconv_ref(x, wd, bd):
        N, H, W, _ = x.shape
        cout = wd.shape[1]
        y = jnp.einsum("nhwc,cokl->nhkwlo", x, wd)
        return y.reshape(N, 2 * H, 2 * W, cout) + bd

    skips = []
    for i, blk in enumerate(params["down"]):
        if i > 0:
            x = pool_ref(x)
        x = conv3x3_ref(x, blk["w1"])
        x = conv3x3_ref(x, blk["w2"])
        if i < len(crop_sizes):
            skips.append(center_crop(x, crop_sizes[~i]))
    for j, blk in enumerate(params["up"]):
        x = deconv_ref(x, blk["wd"], blk["bd"])
        x = jnp.concatenate([x, skips[~j]], axis=-1)
        x = conv3x3_ref(x, blk["w1"])
        x = conv3x3_ref(x, blk["w2"])
    x = jnp.einsum("nhwc,cf->nhwf", x, params["cls_w"])
    return jnp.transpose(x, (0, 3, 1, 2))


# ----------------------------- main -----------------------------

if __name__ == "__main__":
    # Small UNet config: UNet(in_channels=1, num_classes=2, img_size=60, net_depth=3, ffilters=4)
    BATCH, IN_C, NUM_CLASSES, IMG, DEPTH, FF = 2, 1, 2, 60, 3, 4

    key = jax.random.PRNGKey(0)
    kx, kp = jax.random.split(key)
    x = jax.random.normal(kx, (BATCH, IN_C, IMG, IMG), jnp.float32)
    params = init_params(kp, IN_C, NUM_CLASSES, DEPTH, FF)
    crop_sizes = tuple(get_crop_sizes(IMG, DEPTH))                  # (16, 24)

    fwd = jax.jit(functools.partial(unet_forward, crop_sizes=crop_sizes))
    out = fwd(x, params)
    jax.block_until_ready(out)

    assert out.shape == (BATCH, NUM_CLASSES, 20, 20), out.shape
    assert bool(jnp.all(jnp.isfinite(out)))

    # correctness self-check against a pure-JAX/XLA reference
    ref = jax.jit(functools.partial(_ref_forward, crop_sizes=crop_sizes))(x, params)
    jax.block_until_ready(ref)
    assert jnp.allclose(out, ref, atol=1e-3, rtol=1e-3), float(jnp.max(jnp.abs(out - ref)))

    print("KERNEL_OK")
</pallas_src>

<mosaic_0001>
module attributes {stable_mosaic.version = 11 : i64} {
  func.func @_down_block_kernel(%arg0: i32, %arg1: memref<1x60x60x1xf32, #tpu.memory_space<vmem>>, %arg2: memref<9x4xf32, #tpu.memory_space<vmem>>, %arg3: memref<36x4xf32, #tpu.memory_space<vmem>>, %arg4: memref<1x56x56x4xf32, #tpu.memory_space<vmem>>, %arg5: memref<58x58x4xf32, #tpu.memory_space<vmem>>) attributes {dimension_semantics = [#tpu.dimension_semantics<parallel>], iteration_bounds = array<i64: 2>, scalar_prefetch = 0 : i64, scratch_operands = 1 : i64, tpu.core_type = #tpu.core_type<tc>, window_params = [{transform_indices = @transform_0, window_bounds = array<i64: 1, 60, 60, 1>}, {pipeline_mode = #tpu.pipeline_mode<synchronous>, transform_indices = @transform_1, window_bounds = array<i64: 9, 4>}, {pipeline_mode = #tpu.pipeline_mode<synchronous>, transform_indices = @transform_2, window_bounds = array<i64: 36, 4>}, {transform_indices = @transform_3, window_bounds = array<i64: 1, 56, 56, 4>}]} {
    %c0 = arith.constant 0 : index
    %c0_0 = arith.constant 0 : index
    %0 = vector.load %arg2[%c0, %c0_0] : memref<9x4xf32, #tpu.memory_space<vmem>>, vector<9x4xf32>
    %c0_1 = arith.constant 0 : index
    %c0_2 = arith.constant 0 : index
    %1 = vector.load %arg3[%c0_1, %c0_2] : memref<36x4xf32, #tpu.memory_space<vmem>>, vector<36x4xf32>
    %c0_i32 = arith.constant 0 : i32
    %c58_i32 = arith.constant 58 : i32
    %2 = arith.addi %c0_i32, %c58_i32 : i32
    %c1_i32 = arith.constant 1 : i32
    scf.for %arg6 = %c0_i32 to %2 step %c1_i32  : i32 {
      %c0_7 = arith.constant 0 : index
      %4 = arith.index_cast %arg6 : i32 to index
      %c0_8 = arith.constant 0 : index
      %c0_9 = arith.constant 0 : index
      %5 = vector.load %arg1[%c0_7, %4, %c0_8, %c0_9] : memref<1x60x60x1xf32, #tpu.memory_space<vmem>>, vector<1x3x60x1xf32>
      %6 = vector.shape_cast %5 : vector<1x3x60x1xf32> to vector<3x60x1xf32>
      %7 = vector.extract_strided_slice %6 {offsets = [0, 0, 0], sizes = [1, 60, 1], strides = [1, 1, 1]} : vector<3x60x1xf32> to vector<1x60x1xf32>
      %8 = vector.shape_cast %7 : vector<1x60x1xf32> to vector<60x1xf32>
      %9 = vector.extract_strided_slice %6 {offsets = [1, 0, 0], sizes = [1, 60, 1], strides = [1, 1, 1]} : vector<3x60x1xf32> to vector<1x60x1xf32>
      %10 = vector.shape_cast %9 : vector<1x60x1xf32> to vector<60x1xf32>
      %11 = vector.extract_strided_slice %6 {offsets = [2, 0, 0], sizes = [1, 60, 1], strides = [1, 1, 1]} : vector<3x60x1xf32> to vector<1x60x1xf32>
      %12 = vector.shape_cast %11 : vector<1x60x1xf32> to vector<60x1xf32>
      %13 = vector.extract_strided_slice %8 {offsets = [0, 0], sizes = [58, 1], strides = [1, 1]} : vector<60x1xf32> to vector<58x1xf32>
      %14 = vector.extract_strided_slice %8 {offsets = [1, 0], sizes = [58, 1], strides = [1, 1]} : vector<60x1xf32> to vector<58x1xf32>
      %15 = vector.extract_strided_slice %8 {offsets = [2, 0], sizes = [58, 1], strides = [1, 1]} : vector<60x1xf32> to vector<58x1xf32>
      %16 = vector.extract_strided_slice %10 {offsets = [0, 0], sizes = [58, 1], strides = [1, 1]} : vector<60x1xf32> to vector<58x1xf32>
      %17 = vector.extract_strided_slice %10 {offsets = [1, 0], sizes = [58, 1], strides = [1, 1]} : vector<60x1xf32> to vector<58x1xf32>
      %18 = vector.extract_strided_slice %10 {offsets = [2, 0], sizes = [58, 1], strides = [1, 1]} : vector<60x1xf32> to vector<58x1xf32>
      %19 = vector.extract_strided_slice %12 {offsets = [0, 0], sizes = [58, 1], strides = [1, 1]} : vector<60x1xf32> to vector<58x1xf32>
      %20 = vector.extract_strided_slice %12 {offsets = [1, 0], sizes = [58, 1], strides = [1, 1]} : vector<60x1xf32> to vector<58x1xf32>
      %21 = vector.extract_strided_slice %12 {offsets = [2, 0], sizes = [58, 1], strides = [1, 1]} : vector<60x1xf32> to vector<58x1xf32>
      %22 = tpu.concatenate %13, %14, %15, %16, %17, %18, %19, %20, %21 in 1 : vector<58x1xf32>, vector<58x1xf32>, vector<58x1xf32>, vector<58x1xf32>, vector<58x1xf32>, vector<58x1xf32>, vector<58x1xf32>, vector<58x1xf32>, vector<58x1xf32> -> vector<58x9xf32>
      %cst = arith.constant dense<0.000000e+00> : vector<58x4xf32>
      %23 = tpu.matmul %22, %0, %cst {dimension_numbers = #tpu.dot_dimension_numbers<[1], [0], [0], [1], [0, 0, 1, 1], [], []>} : vector<58x9xf32>, vector<9x4xf32>, vector<58x4xf32> -> vector<58x4xf32>
      %cst_10 = arith.constant 0.000000e+00 : f32
      %24 = vector.broadcast %cst_10 : f32 to vector<58x4xf32>
      %25 = arith.maximumf %23, %24 : vector<58x4xf32>
      %26 = arith.index_cast %arg6 : i32 to index
      %c0_11 = arith.constant 0 : index
      %c0_12 = arith.constant 0 : index
      %27 = vector.load %arg5[%26, %c0_11, %c0_12] : memref<58x58x4xf32, #tpu.memory_space<vmem>>, vector<1x58x4xf32>
      %28 = vector.shape_cast %27 : vector<1x58x4xf32> to vector<58x4xf32>
      %29 = vector.shape_cast %25 : vector<58x4xf32> to vector<1x58x4xf32>
      tpu.vector_store %arg5[%26, %c0_11, %c0_12], %29 {strides = array<i32>} : memref<58x58x4xf32, #tpu.memory_space<vmem>>, vector<1x58x4xf32>,
    }
    %c58_i32_3 = arith.constant 58 : i32
    %c0_i32_4 = arith.constant 0 : i32
    %c56_i32 = arith.constant 56 : i32
    %3 = arith.addi %c0_i32_4, %c56_i32 : i32
    %c1_i32_5 = arith.constant 1 : i32
    scf.for %arg6 = %c0_i32_4 to %3 step %c1_i32_5  : i32 {
      %4 = arith.index_cast %arg6 : i32 to index
      %c0_7 = arith.constant 0 : index
      %c0_8 = arith.constant 0 : index
      %5 = vector.load %arg5[%4, %c0_7, %c0_8] : memref<58x58x4xf32, #tpu.memory_space<vmem>>, vector<3x58x4xf32>
      %6 = vector.extract_strided_slice %5 {offsets = [0, 0, 0], sizes = [1, 58, 4], strides = [1, 1, 1]} : vector<3x58x4xf32> to vector<1x58x4xf32>
      %7 = vector.shape_cast %6 : vector<1x58x4xf32> to vector<58x4xf32>
      %8 = vector.extract_strided_slice %7 {offsets = [0, 0], sizes = [56, 4], strides = [1, 1]} : vector<58x4xf32> to vector<56x4xf32>
      %9 = vector.extract_strided_slice %5 {offsets = [0, 0, 0], sizes = [1, 58, 4], strides = [1, 1, 1]} : vector<3x58x4xf32> to vector<1x58x4xf32>
      %10 = vector.shape_cast %9 : vector<1x58x4xf32> to vector<58x4xf32>
      %11 = vector.extract_strided_slice %10 {offsets = [1, 0], sizes = [56, 4], strides = [1, 1]} : vector<58x4xf32> to vector<56x4xf32>
      %12 = vector.extract_strided_slice %5 {offsets = [0, 0, 0], sizes = [1, 58, 4], strides = [1, 1, 1]} : vector<3x58x4xf32> to vector<1x58x4xf32>
      %13 = vector.shape_cast %12 : vector<1x58x4xf32> to vector<58x4xf32>
      %14 = vector.extract_strided_slice %13 {offsets = [2, 0], sizes = [56, 4], strides = [1, 1]} : vector<58x4xf32> to vector<56x4xf32>
      %15 = vector.extract_strided_slice %5 {offsets = [1, 0, 0], sizes = [1, 58, 4], strides = [1, 1, 1]} : vector<3x58x4xf32> to vector<1x58x4xf32>
      %16 = vector.shape_cast %15 : vector<1x58x4xf32> to vector<58x4xf32>
      %17 = vector.extract_strided_slice %16 {offsets = [0, 0], sizes = [56, 4], strides = [1, 1]} : vector<58x4xf32> to vector<56x4xf32>
      %18 = vector.extract_strided_slice %5 {offsets = [1, 0, 0], sizes = [1, 58, 4], strides = [1, 1, 1]} : vector<3x58x4xf32> to vector<1x58x4xf32>
      %19 = vector.shape_cast %18 : vector<1x58x4xf32> to vector<58x4xf32>
      %20 = vector.extract_strided_slice %19 {offsets = [1, 0], sizes = [56, 4], strides = [1, 1]} : vector<58x4xf32> to vector<56x4xf32>
      %21 = vector.extract_strided_slice %5 {offsets = [1, 0, 0], sizes = [1, 58, 4], strides = [1, 1, 1]} : vector<3x58x4xf32> to vector<1x58x4xf32>
      %22 = vector.shape_cast %21 : vector<1x58x4xf32> to vector<58x4xf32>
      %23 = vector.extract_strided_slice %22 {offsets = [2, 0], sizes = [56, 4], strides = [1, 1]} : vector<58x4xf32> to vector<56x4xf32>
      %24 = vector.extract_strided_slice %5 {offsets = [2, 0, 0], sizes = [1, 58, 4], strides = [1, 1, 1]} : vector<3x58x4xf32> to vector<1x58x4xf32>
      %25 = vector.shape_cast %24 : vector<1x58x4xf32> to vector<58x4xf32>
      %26 = vector.extract_strided_slice %25 {offsets = [0, 0], sizes = [56, 4], strides = [1, 1]} : vector<58x4xf32> to vector<56x4xf32>
      %27 = vector.extract_strided_slice %5 {offsets = [2, 0, 0], sizes = [1, 58, 4], strides = [1, 1, 1]} : vector<3x58x4xf32> to vector<1x58x4xf32>
      %28 = vector.shape_cast %27 : vector<1x58x4xf32> to vector<58x4xf32>
      %29 = vector.extract_strided_slice %28 {offsets = [1, 0], sizes = [56, 4], strides = [1, 1]} : vector<58x4xf32> to vector<56x4xf32>
      %30 = vector.extract_strided_slice %5 {offsets = [2, 0, 0], sizes = [1, 58, 4], strides = [1, 1, 1]} : vector<3x58x4xf32> to vector<1x58x4xf32>
      %31 = vector.shape_cast %30 : vector<1x58x4xf32> to vector<58x4xf32>
      %32 = vector.extract_strided_slice %31 {offsets = [2, 0], sizes = [56, 4], strides = [1, 1]} : vector<58x4xf32> to vector<56x4xf32>
      %33 = tpu.concatenate %8, %11, %14, %17, %20, %23, %26, %29, %32 in 1 : vector<56x4xf32>, vector<56x4xf32>, vector<56x4xf32>, vector<56x4xf32>, vector<56x4xf32>, vector<56x4xf32>, vector<56x4xf32>, vector<56x4xf32>, vector<56x4xf32> -> vector<56x36xf32>
      %cst = arith.constant dense<0.000000e+00> : vector<56x4xf32>
      %34 = tpu.matmul %33, %1, %cst {dimension_numbers = #tpu.dot_dimension_numbers<[1], [0], [0], [1], [0, 0, 1, 1], [], []>} : vector<56x36xf32>, vector<36x4xf32>, vector<56x4xf32> -> vector<56x4xf32>
      %cst_9 = arith.constant 0.000000e+00 : f32
      %35 = vector.broadcast %cst_9 : f32 to vector<56x4xf32>
      %36 = arith.maximumf %34, %35 : vector<56x4xf32>
      %c0_10 = arith.constant 0 : index
      %37 = arith.index_cast %arg6 : i32 to index
      %c0_11 = arith.constant 0 : index
      %c0_12 = arith.constant 0 : index
      %38 = vector.load %arg4[%c0_10, %37, %c0_11, %c0_12] : memref<1x56x56x4xf32, #tpu.memory_space<vmem>>, vector<1x1x56x4xf32>
      %39 = vector.shape_cast %38 : vector<1x1x56x4xf32> to vector<56x4xf32>
      %40 = vector.shape_cast %36 : vector<56x4xf32> to vector<1x1x56x4xf32>
      tpu.vector_store %arg4[%c0_10, %37, %c0_11, %c0_12], %40 {strides = array<i32>} : memref<1x56x56x4xf32, #tpu.memory_space<vmem>>, vector<1x1x56x4xf32>,
    }
    %c56_i32_6 = arith.constant 56 : i32
    return
  }
  func.func @transform_0(%arg0: i32) -> (i32, i32, i32, i32) {
    %c0_i32 = arith.constant 0 : i32
    %c0_i32_0 = arith.constant 0 : i32
    %c0_i32_1 = arith.constant 0 : i32
    %c0_i32_2 = arith.constant 0 : i32
    return %arg0, %c0_i32, %c0_i32_0, %c0_i32_1 : i32, i32, i32, i32
  }
  func.func @transform_1(%arg0: i32) -> (i32, i32) {
    %c0_i32 = arith.constant 0 : i32
    %c0_i32_0 = arith.constant 0 : i32
    %c0_i32_1 = arith.constant 0 : i32
    return %c0_i32, %c0_i32_0 : i32, i32
  }
  func.func @transform_2(%arg0: i32) -> (i32, i32) {
    %c0_i32 = arith.constant 0 : i32
    %c0_i32_0 = arith.constant 0 : i32
    %c0_i32_1 = arith.constant 0 : i32
    return %c0_i32, %c0_i32_0 : i32, i32
  }
  func.func @transform_3(%arg0: i32) -> (i32, i32, i32, i32) {
    %c0_i32 = arith.constant 0 : i32
    %c0_i32_0 = arith.constant 0 : i32
    %c0_i32_1 = arith.constant 0 : i32
    %c0_i32_2 = arith.constant 0 : i32
    return %arg0, %c0_i32, %c0_i32_0, %c0_i32_1 : i32, i32, i32, i32
  }
}

module attributes {stable_mosaic.version = 11 : i64} {
  func.func @_down_block_kernel(%arg0: i32, %arg1: memref<1x56x28x4xf32, #tpu.memory_space<vmem>>, %arg2: memref<1x56x28x4xf32, #tpu.memory_space<vmem>>, %arg3: memref<36x8xf32, #tpu.memory_space<vmem>>, %arg4: memref<72x8xf32, #tpu.memory_space<vmem>>, %arg5: memref<1x24x24x8xf32, #tpu.memory_space<vmem>>, %arg6: memref<26x26x8xf32, #tpu.memory_space<vmem>>) attributes {dimension_semantics = [#tpu.dimension_semantics<parallel>], iteration_bounds = array<i64: 2>, scalar_prefetch = 0 : i64, scratch_operands = 1 : i64, tpu.core_type = #tpu.core_type<tc>, window_params = [{transform_indices = @transform_0, window_bounds = array<i64: 1, 56, 28, 4>}, {transform_indices = @transform_1, window_bounds = array<i64: 1, 56, 28, 4>}, {pipeline_mode = #tpu.pipeline_mode<synchronous>, transform_indices = @transform_2, window_bounds = array<i64: 36, 8>}, {pipeline_mode = #tpu.pipeline_mode<synchronous>, transform_indices = @transform_3, window_bounds = array<i64: 72, 8>}, {transform_indices = @transform_4, window_bounds = array<i64: 1, 24, 24, 8>}]} {
    %c0 = arith.constant 0 : index
    %c0_0 = arith.constant 0 : index
    %0 = vector.load %arg3[%c0, %c0_0] : memref<36x8xf32, #tpu.memory_space<vmem>>, vector<36x8xf32>
    %c0_1 = arith.constant 0 : index
    %c0_2 = arith.constant 0 : index
    %1 = vector.load %arg4[%c0_1, %c0_2] : memref<72x8xf32, #tpu.memory_space<vmem>>, vector<72x8xf32>
    %c0_i32 = arith.constant 0 : i32
    %c26_i32 = arith.constant 26 : i32
    %2 = arith.addi %c0_i32, %c26_i32 : i32
    %c1_i32 = arith.constant 1 : i32
    scf.for %arg7 = %c0_i32 to %2 step %c1_i32  : i32 {
      %c2_i32 = arith.constant 2 : i32
      %4 = arith.muli %c2_i32, %arg7 : i32
      %c0_7 = arith.constant 0 : index
      %5 = arith.index_cast %4 : i32 to index
      %c0_8 = arith.constant 0 : index
      %c0_9 = arith.constant 0 : index
      %6 = vector.load %arg1[%c0_7, %5, %c0_8, %c0_9] : memref<1x56x28x4xf32, #tpu.memory_space<vmem>>, vector<1x6x28x4xf32>
      %7 = vector.shape_cast %6 : vector<1x6x28x4xf32> to vector<6x28x4xf32>
      %c2_i32_10 = arith.constant 2 : i32
      %8 = arith.muli %c2_i32_10, %arg7 : i32
      %c0_11 = arith.constant 0 : index
      %9 = arith.index_cast %8 : i32 to index
      %c0_12 = arith.constant 0 : index
      %c0_13 = arith.constant 0 : index
      %10 = vector.load %arg2[%c0_11, %9, %c0_12, %c0_13] : memref<1x56x28x4xf32, #tpu.memory_space<vmem>>, vector<1x6x28x4xf32>
      %11 = vector.shape_cast %10 : vector<1x6x28x4xf32> to vector<6x28x4xf32>
      %12 = vector.extract_strided_slice %7 {offsets = [0, 0, 0], sizes = [1, 28, 4], strides = [1, 1, 1]} : vector<6x28x4xf32> to vector<1x28x4xf32>
      %13 = vector.shape_cast %12 : vector<1x28x4xf32> to vector<28x4xf32>
      %14 = vector.extract_strided_slice %11 {offsets = [0, 0, 0], sizes = [1, 28, 4], strides = [1, 1, 1]} : vector<6x28x4xf32> to vector<1x28x4xf32>
      %15 = vector.shape_cast %14 : vector<1x28x4xf32> to vector<28x4xf32>
      %16 = arith.maximumf %13, %15 : vector<28x4xf32>
      %17 = vector.extract_strided_slice %7 {offsets = [1, 0, 0], sizes = [1, 28, 4], strides = [1, 1, 1]} : vector<6x28x4xf32> to vector<1x28x4xf32>
      %18 = vector.shape_cast %17 : vector<1x28x4xf32> to vector<28x4xf32>
      %19 = vector.extract_strided_slice %11 {offsets = [1, 0, 0], sizes = [1, 28, 4], strides = [1, 1, 1]} : vector<6x28x4xf32> to vector<1x28x4xf32>
      %20 = vector.shape_cast %19 : vector<1x28x4xf32> to vector<28x4xf32>
      %21 = arith.maximumf %18, %20 : vector<28x4xf32>
      %22 = arith.maximumf %16, %21 : vector<28x4xf32>
      %23 = vector.extract_strided_slice %7 {offsets = [2, 0, 0], sizes = [1, 28, 4], strides = [1, 1, 1]} : vector<6x28x4xf32> to vector<1x28x4xf32>
      %24 = vector.shape_cast %23 : vector<1x28x4xf32> to vector<28x4xf32>
      %25 = vector.extract_strided_slice %11 {offsets = [2, 0, 0], sizes = [1, 28, 4], strides = [1, 1, 1]} : vector<6x28x4xf32> to vector<1x28x4xf32>
      %26 = vector.shape_cast %25 : vector<1x28x4xf32> to vector<28x4xf32>
      %27 = arith.maximumf %24, %26 : vector<28x4xf32>
      %28 = vector.extract_strided_slice %7 {offsets = [3, 0, 0], sizes = [1, 28, 4], strides = [1, 1, 1]} : vector<6x28x4xf32> to vector<1x28x4xf32>
      %29 = vector.shape_cast %28 : vector<1x28x4xf32> to vector<28x4xf32>
      %30 = vector.extract_strided_slice %11 {offsets = [3, 0, 0], sizes = [1, 28, 4], strides = [1, 1, 1]} : vector<6x28x4xf32> to vector<1x28x4xf32>
      %31 = vector.shape_cast %30 : vector<1x28x4xf32> to vector<28x4xf32>
      %32 = arith.maximumf %29, %31 : vector<28x4xf32>
      %33 = arith.maximumf %27, %32 : vector<28x4xf32>
      %34 = vector.extract_strided_slice %7 {offsets = [4, 0, 0], sizes = [1, 28, 4], strides = [1, 1, 1]} : vector<6x28x4xf32> to vector<1x28x4xf32>
      %35 = vector.shape_cast %34 : vector<1x28x4xf32> to vector<28x4xf32>
      %36 = vector.extract_strided_slice %11 {offsets = [4, 0, 0], sizes = [1, 28, 4], strides = [1, 1, 1]} : vector<6x28x4xf32> to vector<1x28x4xf32>
      %37 = vector.shape_cast %36 : vector<1x28x4xf32> to vector<28x4xf32>
      %38 = arith.maximumf %35, %37 : vector<28x4xf32>
      %39 = vector.extract_strided_slice %7 {offsets = [5, 0, 0], sizes = [1, 28, 4], strides = [1, 1, 1]} : vector<6x28x4xf32> to vector<1x28x4xf32>
      %40 = vector.shape_cast %39 : vector<1x28x4xf32> to vector<28x4xf32>
      %41 = vector.extract_strided_slice %11 {offsets = [5, 0, 0], sizes = [1, 28, 4], strides = [1, 1, 1]} : vector<6x28x4xf32> to vector<1x28x4xf32>
      %42 = vector.shape_cast %41 : vector<1x28x4xf32> to vector<28x4xf32>
      %43 = arith.maximumf %40, %42 : vector<28x4xf32>
      %44 = arith.maximumf %38, %43 : vector<28x4xf32>
      %45 = vector.extract_strided_slice %22 {offsets = [0, 0], sizes = [26, 4], strides = [1, 1]} : vector<28x4xf32> to vector<26x4xf32>
      %46 = vector.extract_strided_slice %22 {offsets = [1, 0], sizes = [26, 4], strides = [1, 1]} : vector<28x4xf32> to vector<26x4xf32>
      %47 = vector.extract_strided_slice %22 {offsets = [2, 0], sizes = [26, 4], strides = [1, 1]} : vector<28x4xf32> to vector<26x4xf32>
      %48 = vector.extract_strided_slice %33 {offsets = [0, 0], sizes = [26, 4], strides = [1, 1]} : vector<28x4xf32> to vector<26x4xf32>
      %49 = vector.extract_strided_slice %33 {offsets = [1, 0], sizes = [26, 4], strides = [1, 1]} : vector<28x4xf32> to vector<26x4xf32>
      %50 = vector.extract_strided_slice %33 {offsets = [2, 0], sizes = [26, 4], strides = [1, 1]} : vector<28x4xf32> to vector<26x4xf32>
      %51 = vector.extract_strided_slice %44 {offsets = [0, 0], sizes = [26, 4], strides = [1, 1]} : vector<28x4xf32> to vector<26x4xf32>
      %52 = vector.extract_strided_slice %44 {offsets = [1, 0], sizes = [26, 4], strides = [1, 1]} : vector<28x4xf32> to vector<26x4xf32>
      %53 = vector.extract_strided_slice %44 {offsets = [2, 0], sizes = [26, 4], strides = [1, 1]} : vector<28x4xf32> to vector<26x4xf32>
      %54 = tpu.concatenate %45, %46, %47, %48, %49, %50, %51, %52, %53 in 1 : vector<26x4xf32>, vector<26x4xf32>, vector<26x4xf32>, vector<26x4xf32>, vector<26x4xf32>, vector<26x4xf32>, vector<26x4xf32>, vector<26x4xf32>, vector<26x4xf32> -> vector<26x36xf32>
      %cst = arith.constant dense<0.000000e+00> : vector<26x8xf32>
      %55 = tpu.matmul %54, %0, %cst {dimension_numbers = #tpu.dot_dimension_numbers<[1], [0], [0], [1], [0, 0, 1, 1], [], []>} : vector<26x36xf32>, vector<36x8xf32>, vector<26x8xf32> -> vector<26x8xf32>
      %cst_14 = arith.constant 0.000000e+00 : f32
      %56 = vector.broadcast %cst_14 : f32 to vector<26x8xf32>
      %57 = arith.maximumf %55, %56 : vector<26x8xf32>
      %58 = arith.index_cast %arg7 : i32 to index
      %c0_15 = arith.constant 0 : index
      %c0_16 = arith.constant 0 : index
      %59 = vector.load %arg6[%58, %c0_15, %c0_16] : memref<26x26x8xf32, #tpu.memory_space<vmem>>, vector<1x26x8xf32>
      %60 = vector.shape_cast %59 : vector<1x26x8xf32> to vector<26x8xf32>
      %61 = vector.shape_cast %57 : vector<26x8xf32> to vector<1x26x8xf32>
      tpu.vector_store %arg6[%58, %c0_15, %c0_16], %61 {strides = array<i32>} : memref<26x26x8xf32, #tpu.memory_space<vmem>>, vector<1x26x8xf32>,
    }
    %c26_i32_3 = arith.constant 26 : i32
    %c0_i32_4 = arith.constant 0 : i32
    %c24_i32 = arith.constant 24 : i32
    %3 = arith.addi %c0_i32_4, %c24_i32 : i32
    %c1_i32_5 = arith.constant 1 : i32
    scf.for %arg7 = %c0_i32_4 to %3 step %c1_i32_5  : i32 {
      %4 = arith.index_cast %arg7 : i32 to index
      %c0_7 = arith.constant 0 : index
      %c0_8 = arith.constant 0 : index
      %5 = vector.load %arg6[%4, %c0_7, %c0_8] : memref<26x26x8xf32, #tpu.memory_space<vmem>>, vector<3x26x8xf32>
      %6 = vector.extract_strided_slice %5 {offsets = [0, 0, 0], sizes = [1, 26, 8], strides = [1, 1, 1]} : vector<3x26x8xf32> to vector<1x26x8xf32>
      %7 = vector.shape_cast %6 : vector<1x26x8xf32> to vector<26x8xf32>
      %8 = vector.extract_strided_slice %7 {offsets = [0, 0], sizes = [24, 8], strides = [1, 1]} : vector<26x8xf32> to vector<24x8xf32>
      %9 = vector.extract_strided_slice %5 {offsets = [0, 0, 0], sizes = [1, 26, 8], strides = [1, 1, 1]} : vector<3x26x8xf32> to vector<1x26x8xf32>
      %10 = vector.shape_cast %9 : vector<1x26x8xf32> to vector<26x8xf32>
      %11 = vector.extract_strided_slice %10 {offsets = [1, 0], sizes = [24, 8], strides = [1, 1]} : vector<26x8xf32> to vector<24x8xf32>
      %12 = vector.extract_strided_slice %5 {offsets = [0, 0, 0], sizes = [1, 26, 8], strides = [1, 1, 1]} : vector<3x26x8xf32> to vector<1x26x8xf32>
      %13 = vector.shape_cast %12 : vector<1x26x8xf32> to vector<26x8xf32>
      %14 = vector.extract_strided_slice %13 {offsets = [2, 0], sizes = [24, 8], strides = [1, 1]} : vector<26x8xf32> to vector<24x8xf32>
      %15 = vector.extract_strided_slice %5 {offsets = [1, 0, 0], sizes = [1, 26, 8], strides = [1, 1, 1]} : vector<3x26x8xf32> to vector<1x26x8xf32>
      %16 = vector.shape_cast %15 : vector<1x26x8xf32> to vector<26x8xf32>
      %17 = vector.extract_strided_slice %16 {offsets = [0, 0], sizes = [24, 8], strides = [1, 1]} : vector<26x8xf32> to vector<24x8xf32>
      %18 = vector.extract_strided_slice %5 {offsets = [1, 0, 0], sizes = [1, 26, 8], strides = [1, 1, 1]} : vector<3x26x8xf32> to vector<1x26x8xf32>
      %19 = vector.shape_cast %18 : vector<1x26x8xf32> to vector<26x8xf32>
      %20 = vector.extract_strided_slice %19 {offsets = [1, 0], sizes = [24, 8], strides = [1, 1]} : vector<26x8xf32> to vector<24x8xf32>
      %21 = vector.extract_strided_slice %5 {offsets = [1, 0, 0], sizes = [1, 26, 8], strides = [1, 1, 1]} : vector<3x26x8xf32> to vector<1x26x8xf32>
      %22 = vector.shape_cast %21 : vector<1x26x8xf32> to vector<26x8xf32>
      %23 = vector.extract_strided_slice %22 {offsets = [2, 0], sizes = [24, 8], strides = [1, 1]} : vector<26x8xf32> to vector<24x8xf32>
      %24 = vector.extract_strided_slice %5 {offsets = [2, 0, 0], sizes = [1, 26, 8], strides = [1, 1, 1]} : vector<3x26x8xf32> to vector<1x26x8xf32>
      %25 = vector.shape_cast %24 : vector<1x26x8xf32> to vector<26x8xf32>
      %26 = vector.extract_strided_slice %25 {offsets = [0, 0], sizes = [24, 8], strides = [1, 1]} : vector<26x8xf32> to vector<24x8xf32>
      %27 = vector.extract_strided_slice %5 {offsets = [2, 0, 0], sizes = [1, 26, 8], strides = [1, 1, 1]} : vector<3x26x8xf32> to vector<1x26x8xf32>
      %28 = vector.shape_cast %27 : vector<1x26x8xf32> to vector<26x8xf32>
      %29 = vector.extract_strided_slice %28 {offsets = [1, 0], sizes = [24, 8], strides = [1, 1]} : vector<26x8xf32> to vector<24x8xf32>
      %30 = vector.extract_strided_slice %5 {offsets = [2, 0, 0], sizes = [1, 26, 8], strides = [1, 1, 1]} : vector<3x26x8xf32> to vector<1x26x8xf32>
      %31 = vector.shape_cast %30 : vector<1x26x8xf32> to vector<26x8xf32>
      %32 = vector.extract_strided_slice %31 {offsets = [2, 0], sizes = [24, 8], strides = [1, 1]} : vector<26x8xf32> to vector<24x8xf32>
      %33 = tpu.concatenate %8, %11, %14, %17, %20, %23, %26, %29, %32 in 1 : vector<24x8xf32>, vector<24x8xf32>, vector<24x8xf32>, vector<24x8xf32>, vector<24x8xf32>, vector<24x8xf32>, vector<24x8xf32>, vector<24x8xf32>, vector<24x8xf32> -> vector<24x72xf32>
      %cst = arith.constant dense<0.000000e+00> : vector<24x8xf32>
      %34 = tpu.matmul %33, %1, %cst {dimension_numbers = #tpu.dot_dimension_numbers<[1], [0], [0], [1], [0, 0, 1, 1], [], []>} : vector<24x72xf32>, vector<72x8xf32>, vector<24x8xf32> -> vector<24x8xf32>
      %cst_9 = arith.constant 0.000000e+00 : f32
      %35 = vector.broadcast %cst_9 : f32 to vector<24x8xf32>
      %36 = arith.maximumf %34, %35 : vector<24x8xf32>
      %c0_10 = arith.constant 0 : index
      %37 = arith.index_cast %arg7 : i32 to index
      %c0_11 = arith.constant 0 : index
      %c0_12 = arith.constant 0 : index
      %38 = vector.load %arg5[%c0_10, %37, %c0_11, %c0_12] : memref<1x24x24x8xf32, #tpu.memory_space<vmem>>, vector<1x1x24x8xf32>
      %39 = vector.shape_cast %38 : vector<1x1x24x8xf32> to vector<24x8xf32>
      %40 = vector.shape_cast %36 : vector<24x8xf32> to vector<1x1x24x8xf32>
      tpu.vector_store %arg5[%c0_10, %37, %c0_11, %c0_12], %40 {strides = array<i32>} : memref<1x24x24x8xf32, #tpu.memory_space<vmem>>, vector<1x1x24x8xf32>,
    }
    %c24_i32_6 = arith.constant 24 : i32
    return
  }
  func.func @transform_0(%arg0: i32) -> (i32, i32, i32, i32) {
    %c0_i32 = arith.constant 0 : i32
    %c0_i32_0 = arith.constant 0 : i32
    %c0_i32_1 = arith.constant 0 : i32
    %c0_i32_2 = arith.constant 0 : i32
    return %arg0, %c0_i32, %c0_i32_0, %c0_i32_1 : i32, i32, i32, i32
  }
  func.func @transform_1(%arg0: i32) -> (i32, i32, i32, i32) {
    %c0_i32 = arith.constant 0 : i32
    %c0_i32_0 = arith.constant 0 : i32
    %c0_i32_1 = arith.constant 0 : i32
    %c0_i32_2 = arith.constant 0 : i32
    return %arg0, %c0_i32, %c0_i32_0, %c0_i32_1 : i32, i32, i32, i32
  }
  func.func @transform_2(%arg0: i32) -> (i32, i32) {
    %c0_i32 = arith.constant 0 : i32
    %c0_i32_0 = arith.constant 0 : i32
    %c0_i32_1 = arith.constant 0 : i32
    return %c0_i32, %c0_i32_0 : i32, i32
  }
  func.func @transform_3(%arg0: i32) -> (i32, i32) {
    %c0_i32 = arith.constant 0 : i32
    %c0_i32_0 = arith.constant 0 : i32
    %c0_i32_1 = arith.constant 0 : i32
    return %c0_i32, %c0_i32_0 : i32, i32
  }
  func.func @transform_4(%arg0: i32) -> (i32, i32, i32, i32) {
    %c0_i32 = arith.constant 0 : i32
    %c0_i32_0 = arith.constant 0 : i32
    %c0_i32_1 = arith.constant 0 : i32
    %c0_i32_2 = arith.constant 0 : i32
    return %arg0, %c0_i32, %c0_i32_0, %c0_i32_1 : i32, i32, i32, i32
  }
}

module attributes {stable_mosaic.version = 11 : i64} {
  func.func @_down_block_kernel(%arg0: i32, %arg1: memref<1x24x12x8xf32, #tpu.memory_space<vmem>>, %arg2: memref<1x24x12x8xf32, #tpu.memory_space<vmem>>, %arg3: memref<72x16xf32, #tpu.memory_space<vmem>>, %arg4: memref<144x16xf32, #tpu.memory_space<vmem>>, %arg5: memref<16x32xf32, #tpu.memory_space<vmem>>, %arg6: memref<1x32xf32, #tpu.memory_space<vmem>>, %arg7: memref<1x8x8x32xf32, #tpu.memory_space<vmem>>, %arg8: memref<10x10x16xf32, #tpu.memory_space<vmem>>) attributes {dimension_semantics = [#tpu.dimension_semantics<parallel>], iteration_bounds = array<i64: 2>, scalar_prefetch = 0 : i64, scratch_operands = 1 : i64, tpu.core_type = #tpu.core_type<tc>, window_params = [{transform_indices = @transform_0, window_bounds = array<i64: 1, 24, 12, 8>}, {transform_indices = @transform_1, window_bounds = array<i64: 1, 24, 12, 8>}, {pipeline_mode = #tpu.pipeline_mode<synchronous>, transform_indices = @transform_2, window_bounds = array<i64: 72, 16>}, {pipeline_mode = #tpu.pipeline_mode<synchronous>, transform_indices = @transform_3, window_bounds = array<i64: 144, 16>}, {pipeline_mode = #tpu.pipeline_mode<synchronous>, transform_indices = @transform_4, window_bounds = array<i64: 16, 32>}, {pipeline_mode = #tpu.pipeline_mode<synchronous>, transform_indices = @transform_5, window_bounds = array<i64: 1, 32>}, {transform_indices = @transform_6, window_bounds = array<i64: 1, 8, 8, 32>}]} {
    %c0 = arith.constant 0 : index
    %c0_0 = arith.constant 0 : index
    %0 = vector.load %arg3[%c0, %c0_0] : memref<72x16xf32, #tpu.memory_space<vmem>>, vector<72x16xf32>
    %c0_1 = arith.constant 0 : index
    %c0_2 = arith.constant 0 : index
    %1 = vector.load %arg4[%c0_1, %c0_2] : memref<144x16xf32, #tpu.memory_space<vmem>>, vector<144x16xf32>
    %c0_3 = arith.constant 0 : index
    %c0_4 = arith.constant 0 : index
    %2 = vector.load %arg5[%c0_3, %c0_4] : memref<16x32xf32, #tpu.memory_space<vmem>>, vector<16x32xf32>
    %c0_5 = arith.constant 0 : index
    %c0_6 = arith.constant 0 : index
    %3 = vector.load %arg6[%c0_5, %c0_6] : memref<1x32xf32, #tpu.memory_space<vmem>>, vector<1x32xf32>
    %c0_i32 = arith.constant 0 : i32
    %c10_i32 = arith.constant 10 : i32
    %4 = arith.addi %c0_i32, %c10_i32 : i32
    %c1_i32 = arith.constant 1 : i32
    scf.for %arg9 = %c0_i32 to %4 step %c1_i32  : i32 {
      %c2_i32 = arith.constant 2 : i32
      %6 = arith.muli %c2_i32, %arg9 : i32
      %c0_11 = arith.constant 0 : index
      %7 = arith.index_cast %6 : i32 to index
      %c0_12 = arith.constant 0 : index
      %c0_13 = arith.constant 0 : index
      %8 = vector.load %arg1[%c0_11, %7, %c0_12, %c0_13] : memref<1x24x12x8xf32, #tpu.memory_space<vmem>>, vector<1x6x12x8xf32>
      %9 = vector.shape_cast %8 : vector<1x6x12x8xf32> to vector<6x12x8xf32>
      %c2_i32_14 = arith.constant 2 : i32
      %10 = arith.muli %c2_i32_14, %arg9 : i32
      %c0_15 = arith.constant 0 : index
      %11 = arith.index_cast %10 : i32 to index
      %c0_16 = arith.constant 0 : index
      %c0_17 = arith.constant 0 : index
      %12 = vector.load %arg2[%c0_15, %11, %c0_16, %c0_17] : memref<1x24x12x8xf32, #tpu.memory_space<vmem>>, vector<1x6x12x8xf32>
      %13 = vector.shape_cast %12 : vector<1x6x12x8xf32> to vector<6x12x8xf32>
      %14 = vector.extract_strided_slice %9 {offsets = [0, 0, 0], sizes = [1, 12, 8], strides = [1, 1, 1]} : vector<6x12x8xf32> to vector<1x12x8xf32>
      %15 = vector.shape_cast %14 : vector<1x12x8xf32> to vector<12x8xf32>
      %16 = vector.extract_strided_slice %13 {offsets = [0, 0, 0], sizes = [1, 12, 8], strides = [1, 1, 1]} : vector<6x12x8xf32> to vector<1x12x8xf32>
      %17 = vector.shape_cast %16 : vector<1x12x8xf32> to vector<12x8xf32>
      %18 = arith.maximumf %15, %17 : vector<12x8xf32>
      %19 = vector.extract_strided_slice %9 {offsets = [1, 0, 0], sizes = [1, 12, 8], strides = [1, 1, 1]} : vector<6x12x8xf32> to vector<1x12x8xf32>
      %20 = vector.shape_cast %19 : vector<1x12x8xf32> to vector<12x8xf32>
      %21 = vector.extract_strided_slice %13 {offsets = [1, 0, 0], sizes = [1, 12, 8], strides = [1, 1, 1]} : vector<6x12x8xf32> to vector<1x12x8xf32>
      %22 = vector.shape_cast %21 : vector<1x12x8xf32> to vector<12x8xf32>
      %23 = arith.maximumf %20, %22 : vector<12x8xf32>
      %24 = arith.maximumf %18, %23 : vector<12x8xf32>
      %25 = vector.extract_strided_slice %9 {offsets = [2, 0, 0], sizes = [1, 12, 8], strides = [1, 1, 1]} : vector<6x12x8xf32> to vector<1x12x8xf32>
      %26 = vector.shape_cast %25 : vector<1x12x8xf32> to vector<12x8xf32>
      %27 = vector.extract_strided_slice %13 {offsets = [2, 0, 0], sizes = [1, 12, 8], strides = [1, 1, 1]} : vector<6x12x8xf32> to vector<1x12x8xf32>
      %28 = vector.shape_cast %27 : vector<1x12x8xf32> to vector<12x8xf32>
      %29 = arith.maximumf %26, %28 : vector<12x8xf32>
      %30 = vector.extract_strided_slice %9 {offsets = [3, 0, 0], sizes = [1, 12, 8], strides = [1, 1, 1]} : vector<6x12x8xf32> to vector<1x12x8xf32>
      %31 = vector.shape_cast %30 : vector<1x12x8xf32> to vector<12x8xf32>
      %32 = vector.extract_strided_slice %13 {offsets = [3, 0, 0], sizes = [1, 12, 8], strides = [1, 1, 1]} : vector<6x12x8xf32> to vector<1x12x8xf32>
      %33 = vector.shape_cast %32 : vector<1x12x8xf32> to vector<12x8xf32>
      %34 = arith.maximumf %31, %33 : vector<12x8xf32>
      %35 = arith.maximumf %29, %34 : vector<12x8xf32>
      %36 = vector.extract_strided_slice %9 {offsets = [4, 0, 0], sizes = [1, 12, 8], strides = [1, 1, 1]} : vector<6x12x8xf32> to vector<1x12x8xf32>
      %37 = vector.shape_cast %36 : vector<1x12x8xf32> to vector<12x8xf32>
      %38 = vector.extract_strided_slice %13 {offsets = [4, 0, 0], sizes = [1, 12, 8], strides = [1, 1, 1]} : vector<6x12x8xf32> to vector<1x12x8xf32>
      %39 = vector.shape_cast %38 : vector<1x12x8xf32> to vector<12x8xf32>
      %40 = arith.maximumf %37, %39 : vector<12x8xf32>
      %41 = vector.extract_strided_slice %9 {offsets = [5, 0, 0], sizes = [1, 12, 8], strides = [1, 1, 1]} : vector<6x12x8xf32> to vector<1x12x8xf32>
      %42 = vector.shape_cast %41 : vector<1x12x8xf32> to vector<12x8xf32>
      %43 = vector.extract_strided_slice %13 {offsets = [5, 0, 0], sizes = [1, 12, 8], strides = [1, 1, 1]} : vector<6x12x8xf32> to vector<1x12x8xf32>
      %44 = vector.shape_cast %43 : vector<1x12x8xf32> to vector<12x8xf32>
      %45 = arith.maximumf %42, %44 : vector<12x8xf32>
      %46 = arith.maximumf %40, %45 : vector<12x8xf32>
      %47 = vector.extract_strided_slice %24 {offsets = [0, 0], sizes = [10, 8], strides = [1, 1]} : vector<12x8xf32> to vector<10x8xf32>
      %48 = vector.extract_strided_slice %24 {offsets = [1, 0], sizes = [10, 8], strides = [1, 1]} : vector<12x8xf32> to vector<10x8xf32>
      %49 = vector.extract_strided_slice %24 {offsets = [2, 0], sizes = [10, 8], strides = [1, 1]} : vector<12x8xf32> to vector<10x8xf32>
      %50 = vector.extract_strided_slice %35 {offsets = [0, 0], sizes = [10, 8], strides = [1, 1]} : vector<12x8xf32> to vector<10x8xf32>
      %51 = vector.extract_strided_slice %35 {offsets = [1, 0], sizes = [10, 8], strides = [1, 1]} : vector<12x8xf32> to vector<10x8xf32>
      %52 = vector.extract_strided_slice %35 {offsets = [2, 0], sizes = [10, 8], strides = [1, 1]} : vector<12x8xf32> to vector<10x8xf32>
      %53 = vector.extract_strided_slice %46 {offsets = [0, 0], sizes = [10, 8], strides = [1, 1]} : vector<12x8xf32> to vector<10x8xf32>
      %54 = vector.extract_strided_slice %46 {offsets = [1, 0], sizes = [10, 8], strides = [1, 1]} : vector<12x8xf32> to vector<10x8xf32>
      %55 = vector.extract_strided_slice %46 {offsets = [2, 0], sizes = [10, 8], strides = [1, 1]} : vector<12x8xf32> to vector<10x8xf32>
      %56 = tpu.concatenate %47, %48, %49, %50, %51, %52, %53, %54, %55 in 1 : vector<10x8xf32>, vector<10x8xf32>, vector<10x8xf32>, vector<10x8xf32>, vector<10x8xf32>, vector<10x8xf32>, vector<10x8xf32>, vector<10x8xf32>, vector<10x8xf32> -> vector<10x72xf32>
      %cst = arith.constant dense<0.000000e+00> : vector<10x16xf32>
      %57 = tpu.matmul %56, %0, %cst {dimension_numbers = #tpu.dot_dimension_numbers<[1], [0], [0], [1], [0, 0, 1, 1], [], []>} : vector<10x72xf32>, vector<72x16xf32>, vector<10x16xf32> -> vector<10x16xf32>
      %cst_18 = arith.constant 0.000000e+00 : f32
      %58 = vector.broadcast %cst_18 : f32 to vector<10x16xf32>
      %59 = arith.maximumf %57, %58 : vector<10x16xf32>
      %60 = arith.index_cast %arg9 : i32 to index
      %c0_19 = arith.constant 0 : index
      %c0_20 = arith.constant 0 : index
      %61 = vector.load %arg8[%60, %c0_19, %c0_20] : memref<10x10x16xf32, #tpu.memory_space<vmem>>, vector<1x10x16xf32>
      %62 = vector.shape_cast %61 : vector<1x10x16xf32> to vector<10x16xf32>
      %63 = vector.shape_cast %59 : vector<10x16xf32> to vector<1x10x16xf32>
      tpu.vector_store %arg8[%60, %c0_19, %c0_20], %63 {strides = array<i32>} : memref<10x10x16xf32, #tpu.memory_space<vmem>>, vector<1x10x16xf32>,
    }
    %c10_i32_7 = arith.constant 10 : i32
    %c0_i32_8 = arith.constant 0 : i32
    %c8_i32 = arith.constant 8 : i32
    %5 = arith.addi %c0_i32_8, %c8_i32 : i32
    %c1_i32_9 = arith.constant 1 : i32
    scf.for %arg9 = %c0_i32_8 to %5 step %c1_i32_9  : i32 {
      %6 = arith.index_cast %arg9 : i32 to index
      %c0_11 = arith.constant 0 : index
      %c0_12 = arith.constant 0 : index
      %7 = vector.load %arg8[%6, %c0_11, %c0_12] : memref<10x10x16xf32, #tpu.memory_space<vmem>>, vector<3x10x16xf32>
      %8 = vector.extract_strided_slice %7 {offsets = [0, 0, 0], sizes = [1, 10, 16], strides = [1, 1, 1]} : vector<3x10x16xf32> to vector<1x10x16xf32>
      %9 = vector.shape_cast %8 : vector<1x10x16xf32> to vector<10x16xf32>
      %10 = vector.extract_strided_slice %9 {offsets = [0, 0], sizes = [8, 16], strides = [1, 1]} : vector<10x16xf32> to vector<8x16xf32>
      %11 = vector.extract_strided_slice %7 {offsets = [0, 0, 0], sizes = [1, 10, 16], strides = [1, 1, 1]} : vector<3x10x16xf32> to vector<1x10x16xf32>
      %12 = vector.shape_cast %11 : vector<1x10x16xf32> to vector<10x16xf32>
      %13 = vector.extract_strided_slice %12 {offsets = [1, 0], sizes = [8, 16], strides = [1, 1]} : vector<10x16xf32> to vector<8x16xf32>
      %14 = vector.extract_strided_slice %7 {offsets = [0, 0, 0], sizes = [1, 10, 16], strides = [1, 1, 1]} : vector<3x10x16xf32> to vector<1x10x16xf32>
      %15 = vector.shape_cast %14 : vector<1x10x16xf32> to vector<10x16xf32>
      %16 = vector.extract_strided_slice %15 {offsets = [2, 0], sizes = [8, 16], strides = [1, 1]} : vector<10x16xf32> to vector<8x16xf32>
      %17 = vector.extract_strided_slice %7 {offsets = [1, 0, 0], sizes = [1, 10, 16], strides = [1, 1, 1]} : vector<3x10x16xf32> to vector<1x10x16xf32>
      %18 = vector.shape_cast %17 : vector<1x10x16xf32> to vector<10x16xf32>
      %19 = vector.extract_strided_slice %18 {offsets = [0, 0], sizes = [8, 16], strides = [1, 1]} : vector<10x16xf32> to vector<8x16xf32>
      %20 = vector.extract_strided_slice %7 {offsets = [1, 0, 0], sizes = [1, 10, 16], strides = [1, 1, 1]} : vector<3x10x16xf32> to vector<1x10x16xf32>
      %21 = vector.shape_cast %20 : vector<1x10x16xf32> to vector<10x16xf32>
      %22 = vector.extract_strided_slice %21 {offsets = [1, 0], sizes = [8, 16], strides = [1, 1]} : vector<10x16xf32> to vector<8x16xf32>
      %23 = vector.extract_strided_slice %7 {offsets = [1, 0, 0], sizes = [1, 10, 16], strides = [1, 1, 1]} : vector<3x10x16xf32> to vector<1x10x16xf32>
      %24 = vector.shape_cast %23 : vector<1x10x16xf32> to vector<10x16xf32>
      %25 = vector.extract_strided_slice %24 {offsets = [2, 0], sizes = [8, 16], strides = [1, 1]} : vector<10x16xf32> to vector<8x16xf32>
      %26 = vector.extract_strided_slice %7 {offsets = [2, 0, 0], sizes = [1, 10, 16], strides = [1, 1, 1]} : vector<3x10x16xf32> to vector<1x10x16xf32>
      %27 = vector.shape_cast %26 : vector<1x10x16xf32> to vector<10x16xf32>
      %28 = vector.extract_strided_slice %27 {offsets = [0, 0], sizes = [8, 16], strides = [1, 1]} : vector<10x16xf32> to vector<8x16xf32>
      %29 = vector.extract_strided_slice %7 {offsets = [2, 0, 0], sizes = [1, 10, 16], strides = [1, 1, 1]} : vector<3x10x16xf32> to vector<1x10x16xf32>
      %30 = vector.shape_cast %29 : vector<1x10x16xf32> to vector<10x16xf32>
      %31 = vector.extract_strided_slice %30 {offsets = [1, 0], sizes = [8, 16], strides = [1, 1]} : vector<10x16xf32> to vector<8x16xf32>
      %32 = vector.extract_strided_slice %7 {offsets = [2, 0, 0], sizes = [1, 10, 16], strides = [1, 1, 1]} : vector<3x10x16xf32> to vector<1x10x16xf32>
      %33 = vector.shape_cast %32 : vector<1x10x16xf32> to vector<10x16xf32>
      %34 = vector.extract_strided_slice %33 {offsets = [2, 0], sizes = [8, 16], strides = [1, 1]} : vector<10x16xf32> to vector<8x16xf32>
      %35 = tpu.concatenate %10, %13, %16, %19, %22, %25, %28, %31, %34 in 1 : vector<8x16xf32>, vector<8x16xf32>, vector<8x16xf32>, vector<8x16xf32>, vector<8x16xf32>, vector<8x16xf32>, vector<8x16xf32>, vector<8x16xf32>, vector<8x16xf32> -> vector<8x144xf32>
      %cst = arith.constant dense<0.000000e+00> : vector<8x16xf32>
      %36 = tpu.matmul %35, %1, %cst {dimension_numbers = #tpu.dot_dimension_numbers<[1], [0], [0], [1], [0, 0, 1, 1], [], []>} : vector<8x144xf32>, vector<144x16xf32>, vector<8x16xf32> -> vector<8x16xf32>
      %cst_13 = arith.constant 0.000000e+00 : f32
      %37 = vector.broadcast %cst_13 : f32 to vector<8x16xf32>
      %38 = arith.maximumf %36, %37 : vector<8x16xf32>
      %cst_14 = arith.constant dense<0.000000e+00> : vector<8x32xf32>
      %39 = tpu.matmul %38, %2, %cst_14 {dimension_numbers = #tpu.dot_dimension_numbers<[1], [0], [0], [1], [0, 0, 1, 1], [], []>} : vector<8x16xf32>, vector<16x32xf32>, vector<8x32xf32> -> vector<8x32xf32>
      %40 = vector.broadcast %3 : vector<1x32xf32> to vector<8x32xf32>
      %41 = arith.addf %39, %40 : vector<8x32xf32>
      %c0_15 = arith.constant 0 : index
      %42 = arith.index_cast %arg9 : i32 to index
      %c0_16 = arith.constant 0 : index
      %c0_17 = arith.constant 0 : index
      %43 = vector.load %arg7[%c0_15, %42, %c0_16, %c0_17] : memref<1x8x8x32xf32, #tpu.memory_space<vmem>>, vector<1x1x8x32xf32>
      %44 = vector.shape_cast %43 : vector<1x1x8x32xf32> to vector<8x32xf32>
      %45 = vector.shape_cast %41 : vector<8x32xf32> to vector<1x1x8x32xf32>
      tpu.vector_store %arg7[%c0_15, %42, %c0_16, %c0_17], %45 {strides = array<i32>} : memref<1x8x8x32xf32, #tpu.memory_space<vmem>>, vector<1x1x8x32xf32>,
    }
    %c8_i32_10 = arith.constant 8 : i32
    return
  }
  func.func @transform_0(%arg0: i32) -> (i32, i32, i32, i32) {
    %c0_i32 = arith.constant 0 : i32
    %c0_i32_0 = arith.constant 0 : i32
    %c0_i32_1 = arith.constant 0 : i32
    %c0_i32_2 = arith.constant 0 : i32
    return %arg0, %c0_i32, %c0_i32_0, %c0_i32_1 : i32, i32, i32, i32
  }
  func.func @transform_1(%arg0: i32) -> (i32, i32, i32, i32) {
    %c0_i32 = arith.constant 0 : i32
    %c0_i32_0 = arith.constant 0 : i32
    %c0_i32_1 = arith.constant 0 : i32
    %c0_i32_2 = arith.constant 0 : i32
    return %arg0, %c0_i32, %c0_i32_0, %c0_i32_1 : i32, i32, i32, i32
  }
  func.func @transform_2(%arg0: i32) -> (i32, i32) {
    %c0_i32 = arith.constant 0 : i32
    %c0_i32_0 = arith.constant 0 : i32
    %c0_i32_1 = arith.constant 0 : i32
    return %c0_i32, %c0_i32_0 : i32, i32
  }
  func.func @transform_3(%arg0: i32) -> (i32, i32) {
    %c0_i32 = arith.constant 0 : i32
    %c0_i32_0 = arith.constant 0 : i32
    %c0_i32_1 = arith.constant 0 : i32
    return %c0_i32, %c0_i32_0 : i32, i32
  }
  func.func @transform_4(%arg0: i32) -> (i32, i32) {
    %c0_i32 = arith.constant 0 : i32
    %c0_i32_0 = arith.constant 0 : i32
    %c0_i32_1 = arith.constant 0 : i32
    return %c0_i32, %c0_i32_0 : i32, i32
  }
  func.func @transform_5(%arg0: i32) -> (i32, i32) {
    %c0_i32 = arith.constant 0 : i32
    %c0_i32_0 = arith.constant 0 : i32
    %c0_i32_1 = arith.constant 0 : i32
    return %c0_i32, %c0_i32_0 : i32, i32
  }
  func.func @transform_6(%arg0: i32) -> (i32, i32, i32, i32) {
    %c0_i32 = arith.constant 0 : i32
    %c0_i32_0 = arith.constant 0 : i32
    %c0_i32_1 = arith.constant 0 : i32
    %c0_i32_2 = arith.constant 0 : i32
    return %arg0, %c0_i32, %c0_i32_0, %c0_i32_1 : i32, i32, i32, i32
  }
}

module attributes {stable_mosaic.version = 11 : i64} {
  func.func @_up_block_kernel(%arg0: i32, %arg1: memref<1x16x16x8xf32, #tpu.memory_space<vmem>>, %arg2: memref<1x16x16x8xf32, #tpu.memory_space<vmem>>, %arg3: memref<72x8xf32, #tpu.memory_space<vmem>>, %arg4: memref<72x8xf32, #tpu.memory_space<vmem>>, %arg5: memref<72x8xf32, #tpu.memory_space<vmem>>, %arg6: memref<8x16xf32, #tpu.memory_space<vmem>>, %arg7: memref<1x16xf32, #tpu.memory_space<vmem>>, %arg8: memref<1x12x12x16xf32, #tpu.memory_space<vmem>>, %arg9: memref<14x14x8xf32, #tpu.memory_space<vmem>>) attributes {dimension_semantics = [#tpu.dimension_semantics<parallel>], iteration_bounds = array<i64: 2>, scalar_prefetch = 0 : i64, scratch_operands = 1 : i64, tpu.core_type = #tpu.core_type<tc>, window_params = [{transform_indices = @transform_0, window_bounds = array<i64: 1, 16, 16, 8>}, {transform_indices = @transform_1, window_bounds = array<i64: 1, 16, 16, 8>}, {pipeline_mode = #tpu.pipeline_mode<synchronous>, transform_indices = @transform_2, window_bounds = array<i64: 72, 8>}, {pipeline_mode = #tpu.pipeline_mode<synchronous>, transform_indices = @transform_3, window_bounds = array<i64: 72, 8>}, {pipeline_mode = #tpu.pipeline_mode<synchronous>, transform_indices = @transform_4, window_bounds = array<i64: 72, 8>}, {pipeline_mode = #tpu.pipeline_mode<synchronous>, transform_indices = @transform_5, window_bounds = array<i64: 8, 16>}, {pipeline_mode = #tpu.pipeline_mode<synchronous>, transform_indices = @transform_6, window_bounds = array<i64: 1, 16>}, {transform_indices = @transform_7, window_bounds = array<i64: 1, 12, 12, 16>}]} {
    %c0 = arith.constant 0 : index
    %c0_0 = arith.constant 0 : index
    %0 = vector.load %arg3[%c0, %c0_0] : memref<72x8xf32, #tpu.memory_space<vmem>>, vector<72x8xf32>
    %c0_1 = arith.constant 0 : index
    %c0_2 = arith.constant 0 : index
    %1 = vector.load %arg4[%c0_1, %c0_2] : memref<72x8xf32, #tpu.memory_space<vmem>>, vector<72x8xf32>
    %c0_3 = arith.constant 0 : index
    %c0_4 = arith.constant 0 : index
    %2 = vector.load %arg5[%c0_3, %c0_4] : memref<72x8xf32, #tpu.memory_space<vmem>>, vector<72x8xf32>
    %c0_5 = arith.constant 0 : index
    %c0_6 = arith.constant 0 : index
    %3 = vector.load %arg6[%c0_5, %c0_6] : memref<8x16xf32, #tpu.memory_space<vmem>>, vector<8x16xf32>
    %c0_7 = arith.constant 0 : index
    %c0_8 = arith.constant 0 : index
    %4 = vector.load %arg7[%c0_7, %c0_8] : memref<1x16xf32, #tpu.memory_space<vmem>>, vector<1x16xf32>
    %c0_i32 = arith.constant 0 : i32
    %c14_i32 = arith.constant 14 : i32
    %5 = arith.addi %c0_i32, %c14_i32 : i32
    %c1_i32 = arith.constant 1 : i32
    scf.for %arg10 = %c0_i32 to %5 step %c1_i32  : i32 {
      %c0_13 = arith.constant 0 : index
      %7 = arith.index_cast %arg10 : i32 to index
      %c0_14 = arith.constant 0 : index
      %c0_15 = arith.constant 0 : index
      %8 = vector.load %arg1[%c0_13, %7, %c0_14, %c0_15] : memref<1x16x16x8xf32, #tpu.memory_space<vmem>>, vector<1x3x16x8xf32>
      %9 = vector.shape_cast %8 : vector<1x3x16x8xf32> to vector<3x16x8xf32>
      %c0_16 = arith.constant 0 : index
      %10 = arith.index_cast %arg10 : i32 to index
      %c0_17 = arith.constant 0 : index
      %c0_18 = arith.constant 0 : index
      %11 = vector.load %arg2[%c0_16, %10, %c0_17, %c0_18] : memref<1x16x16x8xf32, #tpu.memory_space<vmem>>, vector<1x3x16x8xf32>
      %12 = vector.shape_cast %11 : vector<1x3x16x8xf32> to vector<3x16x8xf32>
      %13 = vector.extract_strided_slice %9 {offsets = [0, 0, 0], sizes = [1, 16, 8], strides = [1, 1, 1]} : vector<3x16x8xf32> to vector<1x16x8xf32>
      %14 = vector.shape_cast %13 : vector<1x16x8xf32> to vector<16x8xf32>
      %15 = vector.extract_strided_slice %14 {offsets = [0, 0], sizes = [14, 8], strides = [1, 1]} : vector<16x8xf32> to vector<14x8xf32>
      %16 = vector.extract_strided_slice %9 {offsets = [0, 0, 0], sizes = [1, 16, 8], strides = [1, 1, 1]} : vector<3x16x8xf32> to vector<1x16x8xf32>
      %17 = vector.shape_cast %16 : vector<1x16x8xf32> to vector<16x8xf32>
      %18 = vector.extract_strided_slice %17 {offsets = [1, 0], sizes = [14, 8], strides = [1, 1]} : vector<16x8xf32> to vector<14x8xf32>
      %19 = vector.extract_strided_slice %9 {offsets = [0, 0, 0], sizes = [1, 16, 8], strides = [1, 1, 1]} : vector<3x16x8xf32> to vector<1x16x8xf32>
      %20 = vector.shape_cast %19 : vector<1x16x8xf32> to vector<16x8xf32>
      %21 = vector.extract_strided_slice %20 {offsets = [2, 0], sizes = [14, 8], strides = [1, 1]} : vector<16x8xf32> to vector<14x8xf32>
      %22 = vector.extract_strided_slice %9 {offsets = [1, 0, 0], sizes = [1, 16, 8], strides = [1, 1, 1]} : vector<3x16x8xf32> to vector<1x16x8xf32>
      %23 = vector.shape_cast %22 : vector<1x16x8xf32> to vector<16x8xf32>
      %24 = vector.extract_strided_slice %23 {offsets = [0, 0], sizes = [14, 8], strides = [1, 1]} : vector<16x8xf32> to vector<14x8xf32>
      %25 = vector.extract_strided_slice %9 {offsets = [1, 0, 0], sizes = [1, 16, 8], strides = [1, 1, 1]} : vector<3x16x8xf32> to vector<1x16x8xf32>
      %26 = vector.shape_cast %25 : vector<1x16x8xf32> to vector<16x8xf32>
      %27 = vector.extract_strided_slice %26 {offsets = [1, 0], sizes = [14, 8], strides = [1, 1]} : vector<16x8xf32> to vector<14x8xf32>
      %28 = vector.extract_strided_slice %9 {offsets = [1, 0, 0], sizes = [1, 16, 8], strides = [1, 1, 1]} : vector<3x16x8xf32> to vector<1x16x8xf32>
      %29 = vector.shape_cast %28 : vector<1x16x8xf32> to vector<16x8xf32>
      %30 = vector.extract_strided_slice %29 {offsets = [2, 0], sizes = [14, 8], strides = [1, 1]} : vector<16x8xf32> to vector<14x8xf32>
      %31 = vector.extract_strided_slice %9 {offsets = [2, 0, 0], sizes = [1, 16, 8], strides = [1, 1, 1]} : vector<3x16x8xf32> to vector<1x16x8xf32>
      %32 = vector.shape_cast %31 : vector<1x16x8xf32> to vector<16x8xf32>
      %33 = vector.extract_strided_slice %32 {offsets = [0, 0], sizes = [14, 8], strides = [1, 1]} : vector<16x8xf32> to vector<14x8xf32>
      %34 = vector.extract_strided_slice %9 {offsets = [2, 0, 0], sizes = [1, 16, 8], strides = [1, 1, 1]} : vector<3x16x8xf32> to vector<1x16x8xf32>
      %35 = vector.shape_cast %34 : vector<1x16x8xf32> to vector<16x8xf32>
      %36 = vector.extract_strided_slice %35 {offsets = [1, 0], sizes = [14, 8], strides = [1, 1]} : vector<16x8xf32> to vector<14x8xf32>
      %37 = vector.extract_strided_slice %9 {offsets = [2, 0, 0], sizes = [1, 16, 8], strides = [1, 1, 1]} : vector<3x16x8xf32> to vector<1x16x8xf32>
      %38 = vector.shape_cast %37 : vector<1x16x8xf32> to vector<16x8xf32>
      %39 = vector.extract_strided_slice %38 {offsets = [2, 0], sizes = [14, 8], strides = [1, 1]} : vector<16x8xf32> to vector<14x8xf32>
      %40 = tpu.concatenate %15, %18, %21, %24, %27, %30, %33, %36, %39 in 1 : vector<14x8xf32>, vector<14x8xf32>, vector<14x8xf32>, vector<14x8xf32>, vector<14x8xf32>, vector<14x8xf32>, vector<14x8xf32>, vector<14x8xf32>, vector<14x8xf32> -> vector<14x72xf32>
      %41 = vector.extract_strided_slice %12 {offsets = [0, 0, 0], sizes = [1, 16, 8], strides = [1, 1, 1]} : vector<3x16x8xf32> to vector<1x16x8xf32>
      %42 = vector.shape_cast %41 : vector<1x16x8xf32> to vector<16x8xf32>
      %43 = vector.extract_strided_slice %42 {offsets = [0, 0], sizes = [14, 8], strides = [1, 1]} : vector<16x8xf32> to vector<14x8xf32>
      %44 = vector.extract_strided_slice %12 {offsets = [0, 0, 0], sizes = [1, 16, 8], strides = [1, 1, 1]} : vector<3x16x8xf32> to vector<1x16x8xf32>
      %45 = vector.shape_cast %44 : vector<1x16x8xf32> to vector<16x8xf32>
      %46 = vector.extract_strided_slice %45 {offsets = [1, 0], sizes = [14, 8], strides = [1, 1]} : vector<16x8xf32> to vector<14x8xf32>
      %47 = vector.extract_strided_slice %12 {offsets = [0, 0, 0], sizes = [1, 16, 8], strides = [1, 1, 1]} : vector<3x16x8xf32> to vector<1x16x8xf32>
      %48 = vector.shape_cast %47 : vector<1x16x8xf32> to vector<16x8xf32>
      %49 = vector.extract_strided_slice %48 {offsets = [2, 0], sizes = [14, 8], strides = [1, 1]} : vector<16x8xf32> to vector<14x8xf32>
      %50 = vector.extract_strided_slice %12 {offsets = [1, 0, 0], sizes = [1, 16, 8], strides = [1, 1, 1]} : vector<3x16x8xf32> to vector<1x16x8xf32>
      %51 = vector.shape_cast %50 : vector<1x16x8xf32> to vector<16x8xf32>
      %52 = vector.extract_strided_slice %51 {offsets = [0, 0], sizes = [14, 8], strides = [1, 1]} : vector<16x8xf32> to vector<14x8xf32>
      %53 = vector.extract_strided_slice %12 {offsets = [1, 0, 0], sizes = [1, 16, 8], strides = [1, 1, 1]} : vector<3x16x8xf32> to vector<1x16x8xf32>
      %54 = vector.shape_cast %53 : vector<1x16x8xf32> to vector<16x8xf32>
      %55 = vector.extract_strided_slice %54 {offsets = [1, 0], sizes = [14, 8], strides = [1, 1]} : vector<16x8xf32> to vector<14x8xf32>
      %56 = vector.extract_strided_slice %12 {offsets = [1, 0, 0], sizes = [1, 16, 8], strides = [1, 1, 1]} : vector<3x16x8xf32> to vector<1x16x8xf32>
      %57 = vector.shape_cast %56 : vector<1x16x8xf32> to vector<16x8xf32>
      %58 = vector.extract_strided_slice %57 {offsets = [2, 0], sizes = [14, 8], strides = [1, 1]} : vector<16x8xf32> to vector<14x8xf32>
      %59 = vector.extract_strided_slice %12 {offsets = [2, 0, 0], sizes = [1, 16, 8], strides = [1, 1, 1]} : vector<3x16x8xf32> to vector<1x16x8xf32>
      %60 = vector.shape_cast %59 : vector<1x16x8xf32> to vector<16x8xf32>
      %61 = vector.extract_strided_slice %60 {offsets = [0, 0], sizes = [14, 8], strides = [1, 1]} : vector<16x8xf32> to vector<14x8xf32>
      %62 = vector.extract_strided_slice %12 {offsets = [2, 0, 0], sizes = [1, 16, 8], strides = [1, 1, 1]} : vector<3x16x8xf32> to vector<1x16x8xf32>
      %63 = vector.shape_cast %62 : vector<1x16x8xf32> to vector<16x8xf32>
      %64 = vector.extract_strided_slice %63 {offsets = [1, 0], sizes = [14, 8], strides = [1, 1]} : vector<16x8xf32> to vector<14x8xf32>
      %65 = vector.extract_strided_slice %12 {offsets = [2, 0, 0], sizes = [1, 16, 8], strides = [1, 1, 1]} : vector<3x16x8xf32> to vector<1x16x8xf32>
      %66 = vector.shape_cast %65 : vector<1x16x8xf32> to vector<16x8xf32>
      %67 = vector.extract_strided_slice %66 {offsets = [2, 0], sizes = [14, 8], strides = [1, 1]} : vector<16x8xf32> to vector<14x8xf32>
      %68 = tpu.concatenate %43, %46, %49, %52, %55, %58, %61, %64, %67 in 1 : vector<14x8xf32>, vector<14x8xf32>, vector<14x8xf32>, vector<14x8xf32>, vector<14x8xf32>, vector<14x8xf32>, vector<14x8xf32>, vector<14x8xf32>, vector<14x8xf32> -> vector<14x72xf32>
      %cst = arith.constant dense<0.000000e+00> : vector<14x8xf32>
      %69 = tpu.matmul %40, %0, %cst {dimension_numbers = #tpu.dot_dimension_numbers<[1], [0], [0], [1], [0, 0, 1, 1], [], []>} : vector<14x72xf32>, vector<72x8xf32>, vector<14x8xf32> -> vector<14x8xf32>
      %cst_19 = arith.constant dense<0.000000e+00> : vector<14x8xf32>
      %70 = tpu.matmul %68, %1, %cst_19 {dimension_numbers = #tpu.dot_dimension_numbers<[1], [0], [0], [1], [0, 0, 1, 1], [], []>} : vector<14x72xf32>, vector<72x8xf32>, vector<14x8xf32> -> vector<14x8xf32>
      %71 = arith.addf %69, %70 : vector<14x8xf32>
      %cst_20 = arith.constant 0.000000e+00 : f32
      %72 = vector.broadcast %cst_20 : f32 to vector<14x8xf32>
      %73 = arith.maximumf %71, %72 : vector<14x8xf32>
      %74 = arith.index_cast %arg10 : i32 to index
      %c0_21 = arith.constant 0 : index
      %c0_22 = arith.constant 0 : index
      %75 = vector.load %arg9[%74, %c0_21, %c0_22] : memref<14x14x8xf32, #tpu.memory_space<vmem>>, vector<1x14x8xf32>
      %76 = vector.shape_cast %75 : vector<1x14x8xf32> to vector<14x8xf32>
      %77 = vector.shape_cast %73 : vector<14x8xf32> to vector<1x14x8xf32>
      tpu.vector_store %arg9[%74, %c0_21, %c0_22], %77 {strides = array<i32>} : memref<14x14x8xf32, #tpu.memory_space<vmem>>, vector<1x14x8xf32>,
    }
    %c14_i32_9 = arith.constant 14 : i32
    %c0_i32_10 = arith.constant 0 : i32
    %c12_i32 = arith.constant 12 : i32
    %6 = arith.addi %c0_i32_10, %c12_i32 : i32
    %c1_i32_11 = arith.constant 1 : i32
    scf.for %arg10 = %c0_i32_10 to %6 step %c1_i32_11  : i32 {
      %7 = arith.index_cast %arg10 : i32 to index
      %c0_13 = arith.constant 0 : index
      %c0_14 = arith.constant 0 : index
      %8 = vector.load %arg9[%7, %c0_13, %c0_14] : memref<14x14x8xf32, #tpu.memory_space<vmem>>, vector<3x14x8xf32>
      %9 = vector.extract_strided_slice %8 {offsets = [0, 0, 0], sizes = [1, 14, 8], strides = [1, 1, 1]} : vector<3x14x8xf32> to vector<1x14x8xf32>
      %10 = vector.shape_cast %9 : vector<1x14x8xf32> to vector<14x8xf32>
      %11 = vector.extract_strided_slice %10 {offsets = [0, 0], sizes = [12, 8], strides = [1, 1]} : vector<14x8xf32> to vector<12x8xf32>
      %12 = vector.extract_strided_slice %8 {offsets = [0, 0, 0], sizes = [1, 14, 8], strides = [1, 1, 1]} : vector<3x14x8xf32> to vector<1x14x8xf32>
      %13 = vector.shape_cast %12 : vector<1x14x8xf32> to vector<14x8xf32>
      %14 = vector.extract_strided_slice %13 {offsets = [1, 0], sizes = [12, 8], strides = [1, 1]} : vector<14x8xf32> to vector<12x8xf32>
      %15 = vector.extract_strided_slice %8 {offsets = [0, 0, 0], sizes = [1, 14, 8], strides = [1, 1, 1]} : vector<3x14x8xf32> to vector<1x14x8xf32>
      %16 = vector.shape_cast %15 : vector<1x14x8xf32> to vector<14x8xf32>
      %17 = vector.extract_strided_slice %16 {offsets = [2, 0], sizes = [12, 8], strides = [1, 1]} : vector<14x8xf32> to vector<12x8xf32>
      %18 = vector.extract_strided_slice %8 {offsets = [1, 0, 0], sizes = [1, 14, 8], strides = [1, 1, 1]} : vector<3x14x8xf32> to vector<1x14x8xf32>
      %19 = vector.shape_cast %18 : vector<1x14x8xf32> to vector<14x8xf32>
      %20 = vector.extract_strided_slice %19 {offsets = [0, 0], sizes = [12, 8], strides = [1, 1]} : vector<14x8xf32> to vector<12x8xf32>
      %21 = vector.extract_strided_slice %8 {offsets = [1, 0, 0], sizes = [1, 14, 8], strides = [1, 1, 1]} : vector<3x14x8xf32> to vector<1x14x8xf32>
      %22 = vector.shape_cast %21 : vector<1x14x8xf32> to vector<14x8xf32>
      %23 = vector.extract_strided_slice %22 {offsets = [1, 0], sizes = [12, 8], strides = [1, 1]} : vector<14x8xf32> to vector<12x8xf32>
      %24 = vector.extract_strided_slice %8 {offsets = [1, 0, 0], sizes = [1, 14, 8], strides = [1, 1, 1]} : vector<3x14x8xf32> to vector<1x14x8xf32>
      %25 = vector.shape_cast %24 : vector<1x14x8xf32> to vector<14x8xf32>
      %26 = vector.extract_strided_slice %25 {offsets = [2, 0], sizes = [12, 8], strides = [1, 1]} : vector<14x8xf32> to vector<12x8xf32>
      %27 = vector.extract_strided_slice %8 {offsets = [2, 0, 0], sizes = [1, 14, 8], strides = [1, 1, 1]} : vector<3x14x8xf32> to vector<1x14x8xf32>
      %28 = vector.shape_cast %27 : vector<1x14x8xf32> to vector<14x8xf32>
      %29 = vector.extract_strided_slice %28 {offsets = [0, 0], sizes = [12, 8], strides = [1, 1]} : vector<14x8xf32> to vector<12x8xf32>
      %30 = vector.extract_strided_slice %8 {offsets = [2, 0, 0], sizes = [1, 14, 8], strides = [1, 1, 1]} : vector<3x14x8xf32> to vector<1x14x8xf32>
      %31 = vector.shape_cast %30 : vector<1x14x8xf32> to vector<14x8xf32>
      %32 = vector.extract_strided_slice %31 {offsets = [1, 0], sizes = [12, 8], strides = [1, 1]} : vector<14x8xf32> to vector<12x8xf32>
      %33 = vector.extract_strided_slice %8 {offsets = [2, 0, 0], sizes = [1, 14, 8], strides = [1, 1, 1]} : vector<3x14x8xf32> to vector<1x14x8xf32>
      %34 = vector.shape_cast %33 : vector<1x14x8xf32> to vector<14x8xf32>
      %35 = vector.extract_strided_slice %34 {offsets = [2, 0], sizes = [12, 8], strides = [1, 1]} : vector<14x8xf32> to vector<12x8xf32>
      %36 = tpu.concatenate %11, %14, %17, %20, %23, %26, %29, %32, %35 in 1 : vector<12x8xf32>, vector<12x8xf32>, vector<12x8xf32>, vector<12x8xf32>, vector<12x8xf32>, vector<12x8xf32>, vector<12x8xf32>, vector<12x8xf32>, vector<12x8xf32> -> vector<12x72xf32>
      %cst = arith.constant dense<0.000000e+00> : vector<12x8xf32>
      %37 = tpu.matmul %36, %2, %cst {dimension_numbers = #tpu.dot_dimension_numbers<[1], [0], [0], [1], [0, 0, 1, 1], [], []>} : vector<12x72xf32>, vector<72x8xf32>, vector<12x8xf32> -> vector<12x8xf32>
      %cst_15 = arith.constant 0.000000e+00 : f32
      %38 = vector.broadcast %cst_15 : f32 to vector<12x8xf32>
      %39 = arith.maximumf %37, %38 : vector<12x8xf32>
      %cst_16 = arith.constant dense<0.000000e+00> : vector<12x16xf32>
      %40 = tpu.matmul %39, %3, %cst_16 {dimension_numbers = #tpu.dot_dimension_numbers<[1], [0], [0], [1], [0, 0, 1, 1], [], []>} : vector<12x8xf32>, vector<8x16xf32>, vector<12x16xf32> -> vector<12x16xf32>
      %41 = vector.broadcast %4 : vector<1x16xf32> to vector<12x16xf32>
      %42 = arith.addf %40, %41 : vector<12x16xf32>
      %c0_17 = arith.constant 0 : index
      %43 = arith.index_cast %arg10 : i32 to index
      %c0_18 = arith.constant 0 : index
      %c0_19 = arith.constant 0 : index
      %44 = vector.load %arg8[%c0_17, %43, %c0_18, %c0_19] : memref<1x12x12x16xf32, #tpu.memory_space<vmem>>, vector<1x1x12x16xf32>
      %45 = vector.shape_cast %44 : vector<1x1x12x16xf32> to vector<12x16xf32>
      %46 = vector.shape_cast %42 : vector<12x16xf32> to vector<1x1x12x16xf32>
      tpu.vector_store %arg8[%c0_17, %43, %c0_18, %c0_19], %46 {strides = array<i32>} : memref<1x12x12x16xf32, #tpu.memory_space<vmem>>, vector<1x1x12x16xf32>,
    }
    %c12_i32_12 = arith.constant 12 : i32
    return
  }
  func.func @transform_0(%arg0: i32) -> (i32, i32, i32, i32) {
    %c0_i32 = arith.constant 0 : i32
    %c0_i32_0 = arith.constant 0 : i32
    %c0_i32_1 = arith.constant 0 : i32
    %c0_i32_2 = arith.constant 0 : i32
    return %arg0, %c0_i32, %c0_i32_0, %c0_i32_1 : i32, i32, i32, i32
  }
  func.func @transform_1(%arg0: i32) -> (i32, i32, i32, i32) {
    %c0_i32 = arith.constant 0 : i32
    %c0_i32_0 = arith.constant 0 : i32
    %c0_i32_1 = arith.constant 0 : i32
    %c0_i32_2 = arith.constant 0 : i32
    return %arg0, %c0_i32, %c0_i32_0, %c0_i32_1 : i32, i32, i32, i32
  }
  func.func @transform_2(%arg0: i32) -> (i32, i32) {
    %c0_i32 = arith.constant 0 : i32
    %c0_i32_0 = arith.constant 0 : i32
    %c0_i32_1 = arith.constant 0 : i32
    return %c0_i32, %c0_i32_0 : i32, i32
  }
  func.func @transform_3(%arg0: i32) -> (i32, i32) {
    %c0_i32 = arith.constant 0 : i32
    %c0_i32_0 = arith.constant 0 : i32
    %c0_i32_1 = arith.constant 0 : i32
    return %c0_i32, %c0_i32_0 : i32, i32
  }
  func.func @transform_4(%arg0: i32) -> (i32, i32) {
    %c0_i32 = arith.constant 0 : i32
    %c0_i32_0 = arith.constant 0 : i32
    %c0_i32_1 = arith.constant 0 : i32
    return %c0_i32, %c0_i32_0 : i32, i32
  }
  func.func @transform_5(%arg0: i32) -> (i32, i32) {
    %c0_i32 = arith.constant 0 : i32
    %c0_i32_0 = arith.constant 0 : i32
    %c0_i32_1 = arith.constant 0 : i32
    return %c0_i32, %c0_i32_0 : i32, i32
  }
  func.func @transform_6(%arg0: i32) -> (i32, i32) {
    %c0_i32 = arith.constant 0 : i32
    %c0_i32_0 = arith.constant 0 : i32
    %c0_i32_1 = arith.constant 0 : i32
    return %c0_i32, %c0_i32_0 : i32, i32
  }
  func.func @transform_7(%arg0: i32) -> (i32, i32, i32, i32) {
    %c0_i32 = arith.constant 0 : i32
    %c0_i32_0 = arith.constant 0 : i32
    %c0_i32_1 = arith.constant 0 : i32
    %c0_i32_2 = arith.constant 0 : i32
    return %arg0, %c0_i32, %c0_i32_0, %c0_i32_1 : i32, i32, i32, i32
  }
}

module attributes {stable_mosaic.version = 11 : i64} {
  func.func @_up_block_kernel(%arg0: i32, %arg1: memref<1x24x24x4xf32, #tpu.memory_space<vmem>>, %arg2: memref<1x24x24x4xf32, #tpu.memory_space<vmem>>, %arg3: memref<36x4xf32, #tpu.memory_space<vmem>>, %arg4: memref<36x4xf32, #tpu.memory_space<vmem>>, %arg5: memref<36x4xf32, #tpu.memory_space<vmem>>, %arg6: memref<4x2xf32, #tpu.memory_space<vmem>>, %arg7: memref<1x2xf32, #tpu.memory_space<vmem>>, %arg8: memref<1x20x20x2xf32, #tpu.memory_space<vmem>>, %arg9: memref<22x22x4xf32, #tpu.memory_space<vmem>>) attributes {dimension_semantics = [#tpu.dimension_semantics<parallel>], iteration_bounds = array<i64: 2>, scalar_prefetch = 0 : i64, scratch_operands = 1 : i64, tpu.core_type = #tpu.core_type<tc>, window_params = [{transform_indices = @transform_0, window_bounds = array<i64: 1, 24, 24, 4>}, {transform_indices = @transform_1, window_bounds = array<i64: 1, 24, 24, 4>}, {pipeline_mode = #tpu.pipeline_mode<synchronous>, transform_indices = @transform_2, window_bounds = array<i64: 36, 4>}, {pipeline_mode = #tpu.pipeline_mode<synchronous>, transform_indices = @transform_3, window_bounds = array<i64: 36, 4>}, {pipeline_mode = #tpu.pipeline_mode<synchronous>, transform_indices = @transform_4, window_bounds = array<i64: 36, 4>}, {pipeline_mode = #tpu.pipeline_mode<synchronous>, transform_indices = @transform_5, window_bounds = array<i64: 4, 2>}, {pipeline_mode = #tpu.pipeline_mode<synchronous>, transform_indices = @transform_6, window_bounds = array<i64: 1, 2>}, {transform_indices = @transform_7, window_bounds = array<i64: 1, 20, 20, 2>}]} {
    %c0 = arith.constant 0 : index
    %c0_0 = arith.constant 0 : index
    %0 = vector.load %arg3[%c0, %c0_0] : memref<36x4xf32, #tpu.memory_space<vmem>>, vector<36x4xf32>
    %c0_1 = arith.constant 0 : index
    %c0_2 = arith.constant 0 : index
    %1 = vector.load %arg4[%c0_1, %c0_2] : memref<36x4xf32, #tpu.memory_space<vmem>>, vector<36x4xf32>
    %c0_3 = arith.constant 0 : index
    %c0_4 = arith.constant 0 : index
    %2 = vector.load %arg5[%c0_3, %c0_4] : memref<36x4xf32, #tpu.memory_space<vmem>>, vector<36x4xf32>
    %c0_5 = arith.constant 0 : index
    %c0_6 = arith.constant 0 : index
    %3 = vector.load %arg6[%c0_5, %c0_6] : memref<4x2xf32, #tpu.memory_space<vmem>>, vector<4x2xf32>
    %c0_7 = arith.constant 0 : index
    %c0_8 = arith.constant 0 : index
    %4 = vector.load %arg7[%c0_7, %c0_8] : memref<1x2xf32, #tpu.memory_space<vmem>>, vector<1x2xf32>
    %c0_i32 = arith.constant 0 : i32
    %c22_i32 = arith.constant 22 : i32
    %5 = arith.addi %c0_i32, %c22_i32 : i32
    %c1_i32 = arith.constant 1 : i32
    scf.for %arg10 = %c0_i32 to %5 step %c1_i32  : i32 {
      %c0_13 = arith.constant 0 : index
      %7 = arith.index_cast %arg10 : i32 to index
      %c0_14 = arith.constant 0 : index
      %c0_15 = arith.constant 0 : index
      %8 = vector.load %arg1[%c0_13, %7, %c0_14, %c0_15] : memref<1x24x24x4xf32, #tpu.memory_space<vmem>>, vector<1x3x24x4xf32>
      %9 = vector.shape_cast %8 : vector<1x3x24x4xf32> to vector<3x24x4xf32>
      %c0_16 = arith.constant 0 : index
      %10 = arith.index_cast %arg10 : i32 to index
      %c0_17 = arith.constant 0 : index
      %c0_18 = arith.constant 0 : index
      %11 = vector.load %arg2[%c0_16, %10, %c0_17, %c0_18] : memref<1x24x24x4xf32, #tpu.memory_space<vmem>>, vector<1x3x24x4xf32>
      %12 = vector.shape_cast %11 : vector<1x3x24x4xf32> to vector<3x24x4xf32>
      %13 = vector.extract_strided_slice %9 {offsets = [0, 0, 0], sizes = [1, 24, 4], strides = [1, 1, 1]} : vector<3x24x4xf32> to vector<1x24x4xf32>
      %14 = vector.shape_cast %13 : vector<1x24x4xf32> to vector<24x4xf32>
      %15 = vector.extract_strided_slice %14 {offsets = [0, 0], sizes = [22, 4], strides = [1, 1]} : vector<24x4xf32> to vector<22x4xf32>
      %16 = vector.extract_strided_slice %9 {offsets = [0, 0, 0], sizes = [1, 24, 4], strides = [1, 1, 1]} : vector<3x24x4xf32> to vector<1x24x4xf32>
      %17 = vector.shape_cast %16 : vector<1x24x4xf32> to vector<24x4xf32>
      %18 = vector.extract_strided_slice %17 {offsets = [1, 0], sizes = [22, 4], strides = [1, 1]} : vector<24x4xf32> to vector<22x4xf32>
      %19 = vector.extract_strided_slice %9 {offsets = [0, 0, 0], sizes = [1, 24, 4], strides = [1, 1, 1]} : vector<3x24x4xf32> to vector<1x24x4xf32>
      %20 = vector.shape_cast %19 : vector<1x24x4xf32> to vector<24x4xf32>
      %21 = vector.extract_strided_slice %20 {offsets = [2, 0], sizes = [22, 4], strides = [1, 1]} : vector<24x4xf32> to vector<22x4xf32>
      %22 = vector.extract_strided_slice %9 {offsets = [1, 0, 0], sizes = [1, 24, 4], strides = [1, 1, 1]} : vector<3x24x4xf32> to vector<1x24x4xf32>
      %23 = vector.shape_cast %22 : vector<1x24x4xf32> to vector<24x4xf32>
      %24 = vector.extract_strided_slice %23 {offsets = [0, 0], sizes = [22, 4], strides = [1, 1]} : vector<24x4xf32> to vector<22x4xf32>
      %25 = vector.extract_strided_slice %9 {offsets = [1, 0, 0], sizes = [1, 24, 4], strides = [1, 1, 1]} : vector<3x24x4xf32> to vector<1x24x4xf32>
      %26 = vector.shape_cast %25 : vector<1x24x4xf32> to vector<24x4xf32>
      %27 = vector.extract_strided_slice %26 {offsets = [1, 0], sizes = [22, 4], strides = [1, 1]} : vector<24x4xf32> to vector<22x4xf32>
      %28 = vector.extract_strided_slice %9 {offsets = [1, 0, 0], sizes = [1, 24, 4], strides = [1, 1, 1]} : vector<3x24x4xf32> to vector<1x24x4xf32>
      %29 = vector.shape_cast %28 : vector<1x24x4xf32> to vector<24x4xf32>
      %30 = vector.extract_strided_slice %29 {offsets = [2, 0], sizes = [22, 4], strides = [1, 1]} : vector<24x4xf32> to vector<22x4xf32>
      %31 = vector.extract_strided_slice %9 {offsets = [2, 0, 0], sizes = [1, 24, 4], strides = [1, 1, 1]} : vector<3x24x4xf32> to vector<1x24x4xf32>
      %32 = vector.shape_cast %31 : vector<1x24x4xf32> to vector<24x4xf32>
      %33 = vector.extract_strided_slice %32 {offsets = [0, 0], sizes = [22, 4], strides = [1, 1]} : vector<24x4xf32> to vector<22x4xf32>
      %34 = vector.extract_strided_slice %9 {offsets = [2, 0, 0], sizes = [1, 24, 4], strides = [1, 1, 1]} : vector<3x24x4xf32> to vector<1x24x4xf32>
      %35 = vector.shape_cast %34 : vector<1x24x4xf32> to vector<24x4xf32>
      %36 = vector.extract_strided_slice %35 {offsets = [1, 0], sizes = [22, 4], strides = [1, 1]} : vector<24x4xf32> to vector<22x4xf32>
      %37 = vector.extract_strided_slice %9 {offsets = [2, 0, 0], sizes = [1, 24, 4], strides = [1, 1, 1]} : vector<3x24x4xf32> to vector<1x24x4xf32>
      %38 = vector.shape_cast %37 : vector<1x24x4xf32> to vector<24x4xf32>
      %39 = vector.extract_strided_slice %38 {offsets = [2, 0], sizes = [22, 4], strides = [1, 1]} : vector<24x4xf32> to vector<22x4xf32>
      %40 = tpu.concatenate %15, %18, %21, %24, %27, %30, %33, %36, %39 in 1 : vector<22x4xf32>, vector<22x4xf32>, vector<22x4xf32>, vector<22x4xf32>, vector<22x4xf32>, vector<22x4xf32>, vector<22x4xf32>, vector<22x4xf32>, vector<22x4xf32> -> vector<22x36xf32>
      %41 = vector.extract_strided_slice %12 {offsets = [0, 0, 0], sizes = [1, 24, 4], strides = [1, 1, 1]} : vector<3x24x4xf32> to vector<1x24x4xf32>
      %42 = vector.shape_cast %41 : vector<1x24x4xf32> to vector<24x4xf32>
      %43 = vector.extract_strided_slice %42 {offsets = [0, 0], sizes = [22, 4], strides = [1, 1]} : vector<24x4xf32> to vector<22x4xf32>
      %44 = vector.extract_strided_slice %12 {offsets = [0, 0, 0], sizes = [1, 24, 4], strides = [1, 1, 1]} : vector<3x24x4xf32> to vector<1x24x4xf32>
      %45 = vector.shape_cast %44 : vector<1x24x4xf32> to vector<24x4xf32>
      %46 = vector.extract_strided_slice %45 {offsets = [1, 0], sizes = [22, 4], strides = [1, 1]} : vector<24x4xf32> to vector<22x4xf32>
      %47 = vector.extract_strided_slice %12 {offsets = [0, 0, 0], sizes = [1, 24, 4], strides = [1, 1, 1]} : vector<3x24x4xf32> to vector<1x24x4xf32>
      %48 = vector.shape_cast %47 : vector<1x24x4xf32> to vector<24x4xf32>
      %49 = vector.extract_strided_slice %48 {offsets = [2, 0], sizes = [22, 4], strides = [1, 1]} : vector<24x4xf32> to vector<22x4xf32>
      %50 = vector.extract_strided_slice %12 {offsets = [1, 0, 0], sizes = [1, 24, 4], strides = [1, 1, 1]} : vector<3x24x4xf32> to vector<1x24x4xf32>
      %51 = vector.shape_cast %50 : vector<1x24x4xf32> to vector<24x4xf32>
      %52 = vector.extract_strided_slice %51 {offsets = [0, 0], sizes = [22, 4], strides = [1, 1]} : vector<24x4xf32> to vector<22x4xf32>
      %53 = vector.extract_strided_slice %12 {offsets = [1, 0, 0], sizes = [1, 24, 4], strides = [1, 1, 1]} : vector<3x24x4xf32> to vector<1x24x4xf32>
      %54 = vector.shape_cast %53 : vector<1x24x4xf32> to vector<24x4xf32>
      %55 = vector.extract_strided_slice %54 {offsets = [1, 0], sizes = [22, 4], strides = [1, 1]} : vector<24x4xf32> to vector<22x4xf32>
      %56 = vector.extract_strided_slice %12 {offsets = [1, 0, 0], sizes = [1, 24, 4], strides = [1, 1, 1]} : vector<3x24x4xf32> to vector<1x24x4xf32>
      %57 = vector.shape_cast %56 : vector<1x24x4xf32> to vector<24x4xf32>
      %58 = vector.extract_strided_slice %57 {offsets = [2, 0], sizes = [22, 4], strides = [1, 1]} : vector<24x4xf32> to vector<22x4xf32>
      %59 = vector.extract_strided_slice %12 {offsets = [2, 0, 0], sizes = [1, 24, 4], strides = [1, 1, 1]} : vector<3x24x4xf32> to vector<1x24x4xf32>
      %60 = vector.shape_cast %59 : vector<1x24x4xf32> to vector<24x4xf32>
      %61 = vector.extract_strided_slice %60 {offsets = [0, 0], sizes = [22, 4], strides = [1, 1]} : vector<24x4xf32> to vector<22x4xf32>
      %62 = vector.extract_strided_slice %12 {offsets = [2, 0, 0], sizes = [1, 24, 4], strides = [1, 1, 1]} : vector<3x24x4xf32> to vector<1x24x4xf32>
      %63 = vector.shape_cast %62 : vector<1x24x4xf32> to vector<24x4xf32>
      %64 = vector.extract_strided_slice %63 {offsets = [1, 0], sizes = [22, 4], strides = [1, 1]} : vector<24x4xf32> to vector<22x4xf32>
      %65 = vector.extract_strided_slice %12 {offsets = [2, 0, 0], sizes = [1, 24, 4], strides = [1, 1, 1]} : vector<3x24x4xf32> to vector<1x24x4xf32>
      %66 = vector.shape_cast %65 : vector<1x24x4xf32> to vector<24x4xf32>
      %67 = vector.extract_strided_slice %66 {offsets = [2, 0], sizes = [22, 4], strides = [1, 1]} : vector<24x4xf32> to vector<22x4xf32>
      %68 = tpu.concatenate %43, %46, %49, %52, %55, %58, %61, %64, %67 in 1 : vector<22x4xf32>, vector<22x4xf32>, vector<22x4xf32>, vector<22x4xf32>, vector<22x4xf32>, vector<22x4xf32>, vector<22x4xf32>, vector<22x4xf32>, vector<22x4xf32> -> vector<22x36xf32>
      %cst = arith.constant dense<0.000000e+00> : vector<22x4xf32>
      %69 = tpu.matmul %40, %0, %cst {dimension_numbers = #tpu.dot_dimension_numbers<[1], [0], [0], [1], [0, 0, 1, 1], [], []>} : vector<22x36xf32>, vector<36x4xf32>, vector<22x4xf32> -> vector<22x4xf32>
      %cst_19 = arith.constant dense<0.000000e+00> : vector<22x4xf32>
      %70 = tpu.matmul %68, %1, %cst_19 {dimension_numbers = #tpu.dot_dimension_numbers<[1], [0], [0], [1], [0, 0, 1, 1], [], []>} : vector<22x36xf32>, vector<36x4xf32>, vector<22x4xf32> -> vector<22x4xf32>
      %71 = arith.addf %69, %70 : vector<22x4xf32>
      %cst_20 = arith.constant 0.000000e+00 : f32
      %72 = vector.broadcast %cst_20 : f32 to vector<22x4xf32>
      %73 = arith.maximumf %71, %72 : vector<22x4xf32>
      %74 = arith.index_cast %arg10 : i32 to index
      %c0_21 = arith.constant 0 : index
      %c0_22 = arith.constant 0 : index
      %75 = vector.load %arg9[%74, %c0_21, %c0_22] : memref<22x22x4xf32, #tpu.memory_space<vmem>>, vector<1x22x4xf32>
      %76 = vector.shape_cast %75 : vector<1x22x4xf32> to vector<22x4xf32>
      %77 = vector.shape_cast %73 : vector<22x4xf32> to vector<1x22x4xf32>
      tpu.vector_store %arg9[%74, %c0_21, %c0_22], %77 {strides = array<i32>} : memref<22x22x4xf32, #tpu.memory_space<vmem>>, vector<1x22x4xf32>,
    }
    %c22_i32_9 = arith.constant 22 : i32
    %c0_i32_10 = arith.constant 0 : i32
    %c20_i32 = arith.constant 20 : i32
    %6 = arith.addi %c0_i32_10, %c20_i32 : i32
    %c1_i32_11 = arith.constant 1 : i32
    scf.for %arg10 = %c0_i32_10 to %6 step %c1_i32_11  : i32 {
      %7 = arith.index_cast %arg10 : i32 to index
      %c0_13 = arith.constant 0 : index
      %c0_14 = arith.constant 0 : index
      %8 = vector.load %arg9[%7, %c0_13, %c0_14] : memref<22x22x4xf32, #tpu.memory_space<vmem>>, vector<3x22x4xf32>
      %9 = vector.extract_strided_slice %8 {offsets = [0, 0, 0], sizes = [1, 22, 4], strides = [1, 1, 1]} : vector<3x22x4xf32> to vector<1x22x4xf32>
      %10 = vector.shape_cast %9 : vector<1x22x4xf32> to vector<22x4xf32>
      %11 = vector.extract_strided_slice %10 {offsets = [0, 0], sizes = [20, 4], strides = [1, 1]} : vector<22x4xf32> to vector<20x4xf32>
      %12 = vector.extract_strided_slice %8 {offsets = [0, 0, 0], sizes = [1, 22, 4], strides = [1, 1, 1]} : vector<3x22x4xf32> to vector<1x22x4xf32>
      %13 = vector.shape_cast %12 : vector<1x22x4xf32> to vector<22x4xf32>
      %14 = vector.extract_strided_slice %13 {offsets = [1, 0], sizes = [20, 4], strides = [1, 1]} : vector<22x4xf32> to vector<20x4xf32>
      %15 = vector.extract_strided_slice %8 {offsets = [0, 0, 0], sizes = [1, 22, 4], strides = [1, 1, 1]} : vector<3x22x4xf32> to vector<1x22x4xf32>
      %16 = vector.shape_cast %15 : vector<1x22x4xf32> to vector<22x4xf32>
      %17 = vector.extract_strided_slice %16 {offsets = [2, 0], sizes = [20, 4], strides = [1, 1]} : vector<22x4xf32> to vector<20x4xf32>
      %18 = vector.extract_strided_slice %8 {offsets = [1, 0, 0], sizes = [1, 22, 4], strides = [1, 1, 1]} : vector<3x22x4xf32> to vector<1x22x4xf32>
      %19 = vector.shape_cast %18 : vector<1x22x4xf32> to vector<22x4xf32>
      %20 = vector.extract_strided_slice %19 {offsets = [0, 0], sizes = [20, 4], strides = [1, 1]} : vector<22x4xf32> to vector<20x4xf32>
      %21 = vector.extract_strided_slice %8 {offsets = [1, 0, 0], sizes = [1, 22, 4], strides = [1, 1, 1]} : vector<3x22x4xf32> to vector<1x22x4xf32>
      %22 = vector.shape_cast %21 : vector<1x22x4xf32> to vector<22x4xf32>
      %23 = vector.extract_strided_slice %22 {offsets = [1, 0], sizes = [20, 4], strides = [1, 1]} : vector<22x4xf32> to vector<20x4xf32>
      %24 = vector.extract_strided_slice %8 {offsets = [1, 0, 0], sizes = [1, 22, 4], strides = [1, 1, 1]} : vector<3x22x4xf32> to vector<1x22x4xf32>
      %25 = vector.shape_cast %24 : vector<1x22x4xf32> to vector<22x4xf32>
      %26 = vector.extract_strided_slice %25 {offsets = [2, 0], sizes = [20, 4], strides = [1, 1]} : vector<22x4xf32> to vector<20x4xf32>
      %27 = vector.extract_strided_slice %8 {offsets = [2, 0, 0], sizes = [1, 22, 4], strides = [1, 1, 1]} : vector<3x22x4xf32> to vector<1x22x4xf32>
      %28 = vector.shape_cast %27 : vector<1x22x4xf32> to vector<22x4xf32>
      %29 = vector.extract_strided_slice %28 {offsets = [0, 0], sizes = [20, 4], strides = [1, 1]} : vector<22x4xf32> to vector<20x4xf32>
      %30 = vector.extract_strided_slice %8 {offsets = [2, 0, 0], sizes = [1, 22, 4], strides = [1, 1, 1]} : vector<3x22x4xf32> to vector<1x22x4xf32>
      %31 = vector.shape_cast %30 : vector<1x22x4xf32> to vector<22x4xf32>
      %32 = vector.extract_strided_slice %31 {offsets = [1, 0], sizes = [20, 4], strides = [1, 1]} : vector<22x4xf32> to vector<20x4xf32>
      %33 = vector.extract_strided_slice %8 {offsets = [2, 0, 0], sizes = [1, 22, 4], strides = [1, 1, 1]} : vector<3x22x4xf32> to vector<1x22x4xf32>
      %34 = vector.shape_cast %33 : vector<1x22x4xf32> to vector<22x4xf32>
      %35 = vector.extract_strided_slice %34 {offsets = [2, 0], sizes = [20, 4], strides = [1, 1]} : vector<22x4xf32> to vector<20x4xf32>
      %36 = tpu.concatenate %11, %14, %17, %20, %23, %26, %29, %32, %35 in 1 : vector<20x4xf32>, vector<20x4xf32>, vector<20x4xf32>, vector<20x4xf32>, vector<20x4xf32>, vector<20x4xf32>, vector<20x4xf32>, vector<20x4xf32>, vector<20x4xf32> -> vector<20x36xf32>
      %cst = arith.constant dense<0.000000e+00> : vector<20x4xf32>
      %37 = tpu.matmul %36, %2, %cst {dimension_numbers = #tpu.dot_dimension_numbers<[1], [0], [0], [1], [0, 0, 1, 1], [], []>} : vector<20x36xf32>, vector<36x4xf32>, vector<20x4xf32> -> vector<20x4xf32>
      %cst_15 = arith.constant 0.000000e+00 : f32
      %38 = vector.broadcast %cst_15 : f32 to vector<20x4xf32>
      %39 = arith.maximumf %37, %38 : vector<20x4xf32>
      %cst_16 = arith.constant dense<0.000000e+00> : vector<20x2xf32>
      %40 = tpu.matmul %39, %3, %cst_16 {dimension_numbers = #tpu.dot_dimension_numbers<[1], [0], [0], [1], [0, 0, 1, 1], [], []>} : vector<20x4xf32>, vector<4x2xf32>, vector<20x2xf32> -> vector<20x2xf32>
      %41 = vector.broadcast %4 : vector<1x2xf32> to vector<20x2xf32>
      %42 = arith.addf %40, %41 : vector<20x2xf32>
      %c0_17 = arith.constant 0 : index
      %43 = arith.index_cast %arg10 : i32 to index
      %c0_18 = arith.constant 0 : index
      %c0_19 = arith.constant 0 : index
      %44 = vector.load %arg8[%c0_17, %43, %c0_18, %c0_19] : memref<1x20x20x2xf32, #tpu.memory_space<vmem>>, vector<1x1x20x2xf32>
      %45 = vector.shape_cast %44 : vector<1x1x20x2xf32> to vector<20x2xf32>
      %46 = vector.shape_cast %42 : vector<20x2xf32> to vector<1x1x20x2xf32>
      tpu.vector_store %arg8[%c0_17, %43, %c0_18, %c0_19], %46 {strides = array<i32>} : memref<1x20x20x2xf32, #tpu.memory_space<vmem>>, vector<1x1x20x2xf32>,
    }
    %c20_i32_12 = arith.constant 20 : i32
    return
  }
  func.func @transform_0(%arg0: i32) -> (i32, i32, i32, i32) {
    %c0_i32 = arith.constant 0 : i32
    %c0_i32_0 = arith.constant 0 : i32
    %c0_i32_1 = arith.constant 0 : i32
    %c0_i32_2 = arith.constant 0 : i32
    return %arg0, %c0_i32, %c0_i32_0, %c0_i32_1 : i32, i32, i32, i32
  }
  func.func @transform_1(%arg0: i32) -> (i32, i32, i32, i32) {
    %c0_i32 = arith.constant 0 : i32
    %c0_i32_0 = arith.constant 0 : i32
    %c0_i32_1 = arith.constant 0 : i32
    %c0_i32_2 = arith.constant 0 : i32
    return %arg0, %c0_i32, %c0_i32_0, %c0_i32_1 : i32, i32, i32, i32
  }
  func.func @transform_2(%arg0: i32) -> (i32, i32) {
    %c0_i32 = arith.constant 0 : i32
    %c0_i32_0 = arith.constant 0 : i32
    %c0_i32_1 = arith.constant 0 : i32
    return %c0_i32, %c0_i32_0 : i32, i32
  }
  func.func @transform_3(%arg0: i32) -> (i32, i32) {
    %c0_i32 = arith.constant 0 : i32
    %c0_i32_0 = arith.constant 0 : i32
    %c0_i32_1 = arith.constant 0 : i32
    return %c0_i32, %c0_i32_0 : i32, i32
  }
  func.func @transform_4(%arg0: i32) -> (i32, i32) {
    %c0_i32 = arith.constant 0 : i32
    %c0_i32_0 = arith.constant 0 : i32
    %c0_i32_1 = arith.constant 0 : i32
    return %c0_i32, %c0_i32_0 : i32, i32
  }
  func.func @transform_5(%arg0: i32) -> (i32, i32) {
    %c0_i32 = arith.constant 0 : i32
    %c0_i32_0 = arith.constant 0 : i32
    %c0_i32_1 = arith.constant 0 : i32
    return %c0_i32, %c0_i32_0 : i32, i32
  }
  func.func @transform_6(%arg0: i32) -> (i32, i32) {
    %c0_i32 = arith.constant 0 : i32
    %c0_i32_0 = arith.constant 0 : i32
    %c0_i32_1 = arith.constant 0 : i32
    return %c0_i32, %c0_i32_0 : i32, i32
  }
  func.func @transform_7(%arg0: i32) -> (i32, i32, i32, i32) {
    %c0_i32 = arith.constant 0 : i32
    %c0_i32_0 = arith.constant 0 : i32
    %c0_i32_1 = arith.constant 0 : i32
    %c0_i32_2 = arith.constant 0 : i32
    return %arg0, %c0_i32, %c0_i32_0, %c0_i32_1 : i32, i32, i32, i32
  }
}

</mosaic_0001>

<bundles_post_ra>
// kernel: tile.13
= control target key start
LH: loop header
LB: loop body
LE: loop exit
PB: predicated region body
PF: predicated region fallthrough
CT: control target
= control target key end

     0   :  { %s22_s0 = inlined_call_operand.vmem [shape: f32[8], index: 0, kind: input, shape index: {}]   ;;  %s23_s1 = inlined_call_operand.vmem [shape: f32[4,8], index: 1, kind: output, shape index: {}]  }
   0x1   :  { %v4_v0 = vld [vmem:[%s22_s0] ss:$0 sm:$0xff] }
   0x2   :  { %5 = vst [vmem:[%s23_s1] sm:$0xf] %v4_v0 }

// kernel: tile.14
= control target key start
LH: loop header
LB: loop body
LE: loop exit
PB: predicated region body
PF: predicated region fallthrough
CT: control target
= control target key end

     0   :  { %vm7_vm0 = vcmask 64512   ;;  %s37_s8 = smov 8   ;;  %s38_s9 = smov 16   ;;  %vm13_vm1 = vcmask 261312   ;;  %vm19_vm2 = vcmask 195712   ;;  %vm25_vm3 = vcmask 130112   ;;  %s55_s0 = inlined_call_operand.vmem [shape: f32[4,8], index: 0, kind: input, shape index: {}]   ;;  %s56_s1 = inlined_call_operand.vmem [shape: f32[1,32], index: 1, kind: output, shape index: {}]  }
   0x1   :  { %v4_v0 = vld [vmem:[%s55_s0] sm:$0xf]  ;;  %s36_s0 = smov 24  }
   0x2   :  { %5 = vst [vmem:[#allocation1] sm:$0xf] %v4_v0 }
   0x9   :  { %v10_v1 = vld [vmem:[#allocation1 + $0x3] sm:$0x1]   ;;  %v22_v2 = vld [vmem:[#allocation1 + $0x1] sm:$0x1]   ;;  %v6_v3 = vld [vmem:[#allocation1] sm:$0x1]  }
   0xa   :  { %11 = vrot.lane.b32.xlu0 %v10_v1, %s36_s0  ;;  %23 = vrot.lane.b32.xlu1 %v22_v2, %s37_s8  ;;  %v16_v4 = vld [vmem:[#allocation1 + $0x2] sm:$0x1]   ;;  %8 = vst.msk [vmem:[#allocation0] sm:$0x1] %vm7_vm0, %v6_v3  }
   0xe   :  { %17 = vrot.lane.b32.xlu0 %v16_v4, %s38_s9 }
  0x7c   :  { %v12_v5 = vpop.permute.xlu0 %11   ;;  %v24_v6 = vpop.permute.xlu1 %23  }
  0x7d   :  { %14 = vst.msk [vmem:[#allocation0] sm:$0x1] %vm13_vm1, %v12_v5  }
  0x80   :  { %v18_v7 = vpop.permute.xlu0 %17  }
  0x81   :  { %20 = vst.msk [vmem:[#allocation0] sm:$0x1] %vm19_vm2, %v18_v7  }
  0x82   :  { %26 = vst.msk [vmem:[#allocation0] sm:$0x1] %vm25_vm3, %v24_v6  }
  0x89   :  { %v30_v8 = vld [vmem:[#allocation0] sm:$0x1] }
  0x8a   :  { %32 = vst [vmem:[%s56_s1] sm:$0x1] %v30_v8 }

// kernel: unet_forward.6
= control target key start
LH: loop header
LB: loop body
LE: loop exit
PB: predicated region body
PF: predicated region fallthrough
CT: control target
= control target key end

     0   :  { %s1232_s15 = smov 0   ;;  %s1629_s0 = inlined_call_operand.vmem [shape: f32[2,56,28,4], index: 0, kind: input, shape index: {}]   ;;  %s1630_s1 = inlined_call_operand.vmem [shape: f32[2,56,28,4], index: 1, kind: input, shape index: {}]   ;;  %s1631_s2 = inlined_call_operand.vmem [shape: f32[36,8], index: 2, kind: input, shape index: {}]   ;;  %s1632_s3 = inlined_call_operand.vmem [shape: f32[72,8], index: 3, kind: input, shape index: {}]   ;;  %s1633_s4 = inlined_call_operand.vmem [shape: f32[2,24,24,8], index: 4, kind: output, shape index: {}]  }
   0x1 LB: > { %s996_s16 = sadd.s32 4294967295, %s1178_s15   ;;  %p1000_p0 = scmp.ge.s32.totalorder %s1178_s15, 1  ;;  %s1178_s15 = sphi %s1232_s15, %s14_s15  }
   0x2   : > { %p172_p1 = scmp.lt.s32.totalorder %s1178_s15, 3 }
   0x4   : > { %p173_p2 = pnand %p1000_p0, %p172_p1 }
   0x5   : > { %p203_p3 = scmp.lt.s32.totalorder (!%p173_p2), %s996_s16, 1  ;;  %v1243_v0 = vld [vmem:[%s1631_s2] sm:$0xff] (!%p173_p2)  ;;  %v1248_v1 = vld [vmem:[%s1631_s2 + $0x8] sm:$0xff] (!%p173_p2)  ;;  %v1253_v2 = vld [vmem:[%s1631_s2 + $0x10] sm:$0xff] (!%p173_p2)  ;;  %s1325_s6 = smov (!%p173_p2), 0  }
   0x6   : > { %176 = sbr.rel (%p173_p2) target bundleno = 809 (0x329), region = 36  ;;  %v1258_v3 = vld [vmem:[%s1631_s2 + $0x18] sm:$0xff] (!%p173_p2)  ;;  %v1263_v4 = vld [vmem:[%s1631_s2 + $0x20] sm:$0xf] (!%p173_p2)  ;;  %v1273_v6 = vld [vmem:[%s1632_s3 + $0x8] sm:$0xff] (!%p173_p2) }
   0x7   : > { %v1268_v5 = vld [vmem:[%s1632_s3] sm:$0xff] (!%p173_p2)  ;;  %v1278_v7 = vld [vmem:[%s1632_s3 + $0x10] sm:$0xff] (!%p173_p2)  ;;  %v1283_v8 = vld [vmem:[%s1632_s3 + $0x18] sm:$0xff] (!%p173_p2) }
   0x8   : > { %v1288_v9 = vld [vmem:[%s1632_s3 + $0x20] sm:$0xff] (!%p173_p2)  ;;  %v1293_v10 = vld [vmem:[%s1632_s3 + $0x28] sm:$0xff] (!%p173_p2)  ;;  %v1298_v11 = vld [vmem:[%s1632_s3 + $0x30] sm:$0xff] (!%p173_p2) }
   0x9   : > { %v1303_v12 = vld [vmem:[%s1632_s3 + $0x38] sm:$0xff] (!%p173_p2)  ;;  %v1308_v13 = vld [vmem:[%s1632_s3 + $0x40] sm:$0xff] (!%p173_p2) }
   0xd   : > { %s1635_s16 = smov (!%p203_p3, %s996_s16), 1 }
   0xe   : > { %s1119_s17 = smul.u32 1792, %s1635_s16 }
   0xf   : > { %s1120_s22 = smul.u32 576, %s1635_s16 }
  0x10   : > { %s1313_s25 = scalar_lea.vmem %s1629_s0, %s1119_s17  ;;  %s1318_s28 = scalar_lea.vmem %s1630_s1, %s1119_s17 }
  0x11   : > { %s1323_s5 = scalar_lea.vmem %s1633_s4, %s1120_s22 }
  0x12 LB: >> { %s1018_s16 = sshll.u32 %s1182_s6, 6  ;;  %vm330_vm0 = vcmask 1046528   ;;  %s1188_s9 = smov 4   ;;  %vm350_vm1 = vcmask 1045504   ;;  %vm531_vm2 = vcmask 1043456   ;;  %vm478_vm3 = vcmask 31744   ;;  %s1182_s6 = sphi %s1325_s6, %s237_s6  }
  0x13   : >> { %s1332_s7 = scalar_lea.vmem %s1313_s25, %s1018_s16  ;;  %s1335_s8 = scalar_lea.vmem %s1318_s28, %s1018_s16  ;;  %vm488_vm4 = vcmask 97280   ;;  %vm483_vm5 = vcmask 64512   ;;  %vm493_vm6 = vcmask 130048   ;;  %vm498_vm7 = vcmask 162816  }
  0x14   : >> { %v244_v14 = vld [vmem:[%s1332_s7 + $0x18] sm:$0xf]  ;;  %v241_v19 = vld [vmem:[%s1332_s7] sm:$0xff]  ;;  %v242_v20 = vld [vmem:[%s1332_s7 + $0x8] sm:$0xff]  ;;  %s1189_s10 = smov 8   ;;  %s1190_s11 = smov 12  }
  0x15   : >> { %v248_v15 = vld [vmem:[%s1332_s7 + $0x38] sm:$0xf]  ;;  %v245_v22 = vld [vmem:[%s1332_s7 + $0x20] sm:$0xff]  ;;  %v246_v23 = vld [vmem:[%s1332_s7 + $0x28] sm:$0xff]  ;;  %s1191_s12 = smov 16   ;;  %s1192_s13 = smov 20  }
  0x16   : >> { %v269_v16 = vld [vmem:[%s1335_s8 + $0x18] sm:$0xf]  ;;  %v266_v24 = vld [vmem:[%s1335_s8] sm:$0xff]  ;;  %v267_v25 = vld [vmem:[%s1335_s8 + $0x8] sm:$0xff]  ;;  %s1193_s14 = smov 24   ;;  %s1194_s17 = smov 28  }
  0x17   : >> { %v273_v17 = vld [vmem:[%s1335_s8 + $0x38] sm:$0xf]  ;;  %v293_v18 = vmax.f32 %v244_v14, %v269_v16  ;;  %v270_v26 = vld [vmem:[%s1335_s8 + $0x20] sm:$0xff]  ;;  %v271_v27 = vld [vmem:[%s1335_s8 + $0x28] sm:$0xff]  ;;  %v290_v28 = vmax.f32 %v241_v19, %v266_v24  ;;  %v291_v30 = vmax.f32 %v242_v20, %v267_v25  ;;  %s1195_s18 = smov 32   ;;  %vm503_vm8 = vcmask 195584  }
  0x18   : >> { %v297_v21 = vmax.f32 %v248_v15, %v273_v17  ;;  %v294_v31 = vmax.f32 %v245_v22, %v270_v26  ;;  %v295_v32 = vmax.f32 %v246_v23, %v271_v27  ;;  %v243_v33 = vld [vmem:[%s1332_s7 + $0x10] sm:$0xff]  ;;  %v252_v57 = vld [vmem:[%s1332_s7 + $0x58] sm:$0xf]  ;;  %v249_v61 = vld [vmem:[%s1332_s7 + $0x40] sm:$0xff]  ;;  %vm508_vm9 = vcmask 228352   ;;  %s1011_s19 = sshll.u32 %s1182_s6, 5 }
  0x19   : >> { %v247_v34 = vld [vmem:[%s1332_s7 + $0x30] sm:$0xff]  ;;  %v256_v58 = vld [vmem:[%s1332_s7 + $0x78] sm:$0xf]  ;;  %v253_v62 = vld [vmem:[%s1332_s7 + $0x60] sm:$0xff]  ;;  %vm513_vm10 = vcmask 261120   ;;  %vm518_vm11 = vcmask 293888  }
  0x1a   : >> { %v1349_v29 = vmax.f32 %v293_v18, %v297_v21  ;;  %v268_v35 = vld [vmem:[%s1335_s8 + $0x10] sm:$0xff]  ;;  %v1356_v39 = vmax.f32 %v290_v28, %v294_v31  ;;  %v1358_v40 = vmax.f32 %v291_v30, %v295_v32  ;;  %v277_v59 = vld [vmem:[%s1335_s8 + $0x58] sm:$0xf]  ;;  %v274_v16 = vld [vmem:[%s1335_s8 + $0x40] sm:$0xff]  ;;  %vm629_vm12 = vcmask 58368   ;;  %s625_s20 = scalar_lea.vmem [#allocation2], %s1011_s19 }
  0x1b   : >> { %v272_v36 = vld [vmem:[%s1335_s8 + $0x30] sm:$0xff]  ;;  %v292_v37 = vmax.f32 %v243_v33, %v268_v35  ;;  %v281_v60 = vld [vmem:[%s1335_s8 + $0x78] sm:$0xf]  ;;  %v278_v17 = vld [vmem:[%s1335_s8 + $0x60] sm:$0xff]  ;;  %v305_v20 = vmax.f32 %v252_v57, %v277_v59  ;;  %v302_v25 = vmax.f32 %v249_v61, %v274_v16  ;;  %s237_s6 = sadd.s32 1, %s1182_s6  }
  0x1c   : >> { %v336_v38 = vrot.slane %v1349_v29, 1  ;;  %v296_v41 = vmax.f32 %v247_v34, %v272_v36  ;;  %v331_v42 = vrot.slane %v1356_v39, 1  ;;  %v332_v43 = vrot.slane %v1358_v40, 1  ;;  %v251_v50 = vld [vmem:[%s1332_s7 + $0x50] sm:$0xff]  ;;  %v250_v18 = vld [vmem:[%s1332_s7 + $0x48] sm:$0xff]  ;;  %v261_v59 = vld [vmem:[%s1332_s7 + $0xa0] sm:$0xff] }
  0x1d   : >> { %v356_v44 = vrot.slane %v1349_v29, 2  ;;  %v351_v48 = vrot.slane %v1356_v39, 2  ;;  %v352_v49 = vrot.slane %v1358_v40, 2  ;;  %v255_v51 = vld [vmem:[%s1332_s7 + $0x70] sm:$0xff]  ;;  %v309_v21 = vmax.f32 %v256_v58, %v281_v60  ;;  %v254_v22 = vld [vmem:[%s1332_s7 + $0x68] sm:$0xff]  ;;  %v257_v58 = vld [vmem:[%s1332_s7 + $0x80] sm:$0xff] }
  0x1e   : >> { %344 = vrot.lane.b32.xlu1 %v336_v38, %s1188_s9  ;;  %v1363_v45 = vmax.f32 %v292_v37, %v296_v41  ;;  %v333_v46 = vsel %vm330_vm0, %v331_v42, %v332_v43  ;;  %v276_v55 = vld [vmem:[%s1335_s8 + $0x50] sm:$0xff]  ;;  %v275_v23 = vld [vmem:[%s1335_s8 + $0x48] sm:$0xff]  ;;  %v306_v26 = vmax.f32 %v253_v62, %v278_v17  ;;  %v289_v57 = vld [vmem:[%s1335_s8 + $0xb8] sm:$0xf]  ;;  %p234_p4 = scmp.ge.s32.totalorder %s237_s6, 26  }
  0x1f   : >> { %338 = vrot.lane.b32.xlu0 %v333_v46, %s1188_s9  ;;  %v280_v56 = vld [vmem:[%s1335_s8 + $0x70] sm:$0xff]  ;;  %v353_v63 = vsel %vm350_vm1, %v351_v48, %v352_v49  ;;  %v304_v14 = vmax.f32 %v251_v50, %v276_v55  ;;  %v279_v24 = vld [vmem:[%s1335_s8 + $0x68] sm:$0xff]  ;;  %v303_v30 = vmax.f32 %v250_v18, %v275_v23  ;;  %v313_v32 = vmax.f32 %v305_v20, %v309_v21  ;;  %v264_v55 = vld [vmem:[%s1332_s7 + $0xb8] sm:$0xf]  ;;  %s1478_s21 = smov (%p234_p4), 0  }
  0x20   : >> { %v334_v47 = vrot.slane %v1363_v45, 1  ;;  %v354_v54 = vrot.slane %v1363_v45, 2  ;;  %v308_v15 = vmax.f32 %v255_v51, %v280_v56  ;;  %v307_v31 = vmax.f32 %v254_v22, %v279_v24  ;;  %v263_v50 = vld [vmem:[%s1332_s7 + $0xb0] sm:$0xff]  ;;  %v285_v56 = vld [vmem:[%s1335_s8 + $0x98] sm:$0xf]  ;;  %v262_v18 = vld [vmem:[%s1332_s7 + $0xa8] sm:$0xff] }
  0x21   : >> { %v310_v33 = vmax.f32 %v302_v25, %v306_v26  ;;  %v391_v36 = vrot.slane %v313_v32, 1  ;;  %v321_v17 = vmax.f32 %v264_v55, %v289_v57  ;;  %v287_v20 = vld [vmem:[%s1335_s8 + $0xa8] sm:$0xff] }
  0x22   : >> { %364 = vrot.lane.b32.xlu1 %v356_v44, %s1189_s10  ;;  %v337_v52 = vsel %vm330_vm0, %v334_v47, %v336_v38  ;;  %v335_v53 = vsel %vm330_vm0, %v332_v43, %v334_v47  ;;  %v357_v19 = vsel %vm350_vm1, %v354_v54, %v356_v44  ;;  %v355_v27 = vsel %vm350_vm1, %v352_v49, %v354_v54  ;;  %v259_v49 = vld [vmem:[%s1332_s7 + $0x90] sm:$0xff]  ;;  %v260_v54 = vld [vmem:[%s1332_s7 + $0x98] sm:$0xf] }
  0x23   : >> { %342 = vrot.lane.b32.xlu0 %v337_v52, %s1188_s9  ;;  %v312_v28 = vmax.f32 %v304_v14, %v308_v15  ;;  %v311_v34 = vmax.f32 %v303_v30, %v307_v31  ;;  %v386_v37 = vrot.slane %v310_v33, 1  ;;  %v410_v44 = vrot.slane %v313_v32, 2  ;;  %v284_v52 = vld [vmem:[%s1335_s8 + $0x90] sm:$0xff]  ;;  %v286_v14 = vld [vmem:[%s1335_s8 + $0xa0] sm:$0xff]  ;;  %v258_v15 = vld [vmem:[%s1332_s7 + $0x88] sm:$0xff] }
  0x24   : >> { %v405_v47 = vrot.slane %v310_v33, 2  ;;  %v316_v61 = vmax.f32 %v259_v49, %v284_v52  ;;  %v317_v16 = vmax.f32 %v260_v54, %v285_v56  ;;  %v318_v22 = vmax.f32 %v261_v59, %v286_v14 }
  0x25   : >> { %v389_v35 = vrot.slane %v312_v28, 1  ;;  %v387_v38 = vrot.slane %v311_v34, 1  ;;  %v408_v43 = vrot.slane %v312_v28, 2  ;;  %v406_v48 = vrot.slane %v311_v34, 2 }
  0x26   : >> { %340 = vrot.lane.b32.xlu1 %v335_v53, %s1188_s9  ;;  %v288_v53 = vld [vmem:[%s1335_s8 + $0xb0] sm:$0xff]  ;;  %v319_v26 = vmax.f32 %v262_v18, %v287_v20 }
  0x27   : >> { %358 = vrot.lane.b32.xlu0 %v353_v63, %s1189_s10  ;;  %v392_v41 = vsel %vm330_vm0, %v389_v35, %v391_v36  ;;  %v388_v42 = vsel %vm330_vm0, %v386_v37, %v387_v38  ;;  %v390_v46 = vsel %vm330_vm0, %v387_v38, %v389_v35  ;;  %v411_v51 = vsel %vm350_vm1, %v408_v43, %v410_v44  ;;  %v282_v63 = vld [vmem:[%s1335_s8 + $0x80] sm:$0xff] }
  0x28   : >> { %v407_v60 = vsel %vm350_vm1, %v405_v47, %v406_v48  ;;  %v320_v62 = vmax.f32 %v263_v50, %v288_v53  ;;  %v314_v21 = vmax.f32 %v257_v58, %v282_v63  ;;  %v409_v23 = vsel %vm350_vm1, %v406_v48, %v408_v43 }
  0x2a   : >> { %362 = vrot.lane.b32.xlu1 %v357_v19, %s1189_s10  ;;  %v283_v19 = vld [vmem:[%s1335_s8 + $0x88] sm:$0xff]  ;;  %v324_v24 = vmax.f32 %v316_v61, %v320_v62  ;;  %v322_v30 = vmax.f32 %v314_v21, %v318_v22 }
  0x2b   : >> { %360 = vrot.lane.b32.xlu0 %v355_v27, %s1189_s10  ;;  %v315_v25 = vmax.f32 %v258_v15, %v283_v19  ;;  %v325_v27 = vmax.f32 %v317_v16, %v321_v17 }
  0x2c   : >> { %v440_v35 = vrot.slane %v322_v30, 1 }
  0x2d   : >> { %v323_v31 = vmax.f32 %v315_v25, %v319_v26 }
  0x2e   : >> { %378 = vrot.lane.b32.xlu1 %v312_v28, %s1190_s11  ;;  %v1083_v28 = vpack.c.bf16 %v1248_v1, %v1243_v0 }
  0x2f   : >> { %374 = vrot.lane.b32.xlu0 %v310_v33, %s1190_s11  ;;  %v445_v33 = vrot.slane %v325_v27, 1 }
  0x30   : >> { %1103 = vmatprep.subr.bf16.mxu1 %v1083_v28  ;;  %1084 = vmatprep.subr.bf16.mxu0 %v1083_v28 }
  0x31   : >> { %1106 = vmatpush3.bf16.msra.mxu1 %v1083_v28  ;;  %1086 = vmatpush3.bf16.msra.mxu0 %v1083_v28 }
  0x32   : >> { %380 = vrot.lane.b32.xlu1 %v313_v32, %s1190_s11  ;;  %v443_v32 = vrot.slane %v324_v24, 1 }
  0x33   : >> { %376 = vrot.lane.b32.xlu0 %v311_v34, %s1190_s11  ;;  %v1087_v34 = vpack.c.bf16 %v1258_v3, %v1253_v2 }
  0x34   : >> { %v446_v37 = vsel %vm330_vm0, %v443_v32, %v445_v33 }
  0x35   : >> { %1104 = vmatprep.subr.bf16.mxu1 %v1087_v34  ;;  %1088 = vmatprep.subr.bf16.mxu0 %v1087_v34 }
  0x36   : >> { %397 = vrot.lane.b32.xlu1 %v392_v41, %s1191_s12  ;;  %1107 = vmatpush3.bf16.msra.mxu1 %v1087_v34  ;;  %v462_v41 = vrot.slane %v324_v24, 2 }
  0x37   : >> { %393 = vrot.lane.b32.xlu0 %v388_v42, %s1191_s12  ;;  %1090 = vmatpush3.bf16.msra.mxu0 %v1087_v34  ;;  %v464_v42 = vrot.slane %v325_v27, 2 }
  0x38   : >> { %1105 = vmatprep.subr.msk.mxu1 %vm531_vm2, %v1263_v4  ;;  %1048 = vmatprep.subr.msk.mxu0 %vm531_vm2, %v1263_v4 }
  0x39   : >> { %v465_v47 = vsel %vm350_vm1, %v462_v41, %v464_v42 }
  0x3a   : >> { %399 = vrot.lane.b32.xlu1 %v391_v36, %s1191_s12  ;;  %v441_v36 = vrot.slane %v323_v31, 1  ;;  %1108 = vmatpush3.msk.msra.mxu1 %vm531_vm2, %v1263_v4 }
  0x3b   : >> { %395 = vrot.lane.b32.xlu0 %v390_v46, %s1191_s12  ;;  %1049 = vmatpush3.msk.msra.mxu0 %vm531_vm2, %v1263_v4  ;;  %v460_v46 = vrot.slane %v323_v31, 2 }
  0x3c   : >> { %v442_v38 = vsel %vm330_vm0, %v440_v35, %v441_v36  ;;  %v444_v43 = vsel %vm330_vm0, %v441_v36, %v443_v32 }
  0x3d   : >> { %v463_v49 = vsel %vm350_vm1, %v460_v46, %v462_v41 }
  0x3e   : >> { %416 = vrot.lane.b32.xlu1 %v411_v51, %s1192_s13 }
  0x3f   : >> { %412 = vrot.lane.b32.xlu0 %v407_v60, %s1192_s13 }
  0x42   : >> { %418 = vrot.lane.b32.xlu1 %v410_v44, %s1192_s13  ;;  %v459_v44 = vrot.slane %v322_v30, 2 }
  0x43   : >> { %414 = vrot.lane.b32.xlu0 %v409_v23, %s1192_s13 }
  0x44   : >> { %v461_v48 = vsel %vm350_vm1, %v459_v44, %v460_v46 }
  0x46   : >> { %432 = vrot.lane.b32.xlu1 %v324_v24, %s1193_s14 }
  0x47   : >> { %428 = vrot.lane.b32.xlu0 %v322_v30, %s1193_s14 }
  0x4a   : >> { %434 = vrot.lane.b32.xlu1 %v325_v27, %s1193_s14 }
  0x4b   : >> { %430 = vrot.lane.b32.xlu0 %v323_v31, %s1193_s14 }
  0x4e   : >> { %451 = vrot.lane.b32.xlu1 %v446_v37, %s1194_s17 }
  0x4f   : >> { %447 = vrot.lane.b32.xlu0 %v442_v38, %s1194_s17 }
  0x52   : >> { %453 = vrot.lane.b32.xlu1 %v445_v33, %s1194_s17 }
  0x53   : >> { %449 = vrot.lane.b32.xlu0 %v444_v43, %s1194_s17 }
  0x56   : >> { %470 = vrot.lane.b32.xlu1 %v465_v47, %s1195_s18 }
  0x57   : >> { %466 = vrot.lane.b32.xlu0 %v461_v48, %s1195_s18 }
  0x5a   : >> { %472 = vrot.lane.b32.xlu1 %v464_v42, %s1195_s18 }
  0x5b   : >> { %468 = vrot.lane.b32.xlu0 %v463_v49, %s1195_s18 }
  0x90   : >> { %v345_v50 = vpop.permute.xlu1 %344 }
  0x91   : >> { %v339_v51 = vpop.permute.xlu0 %338  ;;  %v482_v33 = vsel %vm478_vm3, %v1349_v29, %v345_v50 }
  0x92   : >> { %v479_v31 = vsel %vm478_vm3, %v1356_v39, %v339_v51 }
  0x94   : >> { %v365_v52 = vpop.permute.xlu1 %364 }
  0x95   : >> { %v343_v53 = vpop.permute.xlu0 %342  ;;  %v487_v35 = vsel %vm483_vm5, %v482_v33, %v365_v52 }
  0x96   : >> { %v481_v25 = vsel %vm478_vm3, %v1363_v45, %v343_v53 }
  0x98   : >> { %v341_v54 = vpop.permute.xlu1 %340 }
  0x99   : >> { %v359_v55 = vpop.permute.xlu0 %358  ;;  %v480_v43 = vsel %vm478_vm3, %v1358_v40, %v341_v54 }
  0x9a   : >> { %v484_v45 = vsel %vm483_vm5, %v479_v31, %v359_v55 }
  0x9c   : >> { %v363_v56 = vpop.permute.xlu1 %362 }
  0x9d   : >> { %v361_v57 = vpop.permute.xlu0 %360  ;;  %v486_v26 = vsel %vm483_vm5, %v481_v25, %v363_v56 }
  0x9e   : >> { %v485_v48 = vsel %vm483_vm5, %v480_v43, %v361_v57 }
  0xa0   : >> { %v379_v58 = vpop.permute.xlu1 %378 }
  0xa1   : >> { %v375_v59 = vpop.permute.xlu0 %374  ;;  %v491_v28 = vsel %vm488_vm4, %v486_v26, %v379_v58 }
  0xa2   : >> { %v489_v36 = vsel %vm488_vm4, %v484_v45, %v375_v59 }
  0xa4   : >> { %v381_v60 = vpop.permute.xlu1 %380 }
  0xa5   : >> { %v377_v61 = vpop.permute.xlu0 %376  ;;  %v492_v39 = vsel %vm488_vm4, %v487_v35, %v381_v60 }
  0xa6   : >> { %v490_v51 = vsel %vm488_vm4, %v485_v48, %v377_v61 }
  0xa8   : >> { %v398_v62 = vpop.permute.xlu1 %397 }
  0xa9   : >> { %v394_v63 = vpop.permute.xlu0 %393  ;;  %v496_v32 = vsel %vm493_vm6, %v491_v28, %v398_v62 }
  0xaa   : >> { %v494_v41 = vsel %vm493_vm6, %v489_v36, %v394_v63 }
  0xac   : >> { %v400_v14 = vpop.permute.xlu1 %399 }
  0xad   : >> { %v396_v15 = vpop.permute.xlu0 %395  ;;  %v497_v44 = vsel %vm493_vm6, %v492_v39, %v400_v14 }
  0xae   : >> { %v495_v54 = vsel %vm493_vm6, %v490_v51, %v396_v15 }
  0xb0   : >> { %v417_v16 = vpop.permute.xlu1 %416 }
  0xb1   : >> { %v413_v17 = vpop.permute.xlu0 %412  ;;  %v501_v34 = vsel %vm498_vm7, %v496_v32, %v417_v16 }
  0xb2   : >> { %v499_v46 = vsel %vm498_vm7, %v494_v41, %v413_v17 }
  0xb4   : >> { %v419_v18 = vpop.permute.xlu1 %418 }
  0xb5   : >> { %v415_v19 = vpop.permute.xlu0 %414  ;;  %v502_v49 = vsel %vm498_vm7, %v497_v44, %v419_v18 }
  0xb6   : >> { %v500_v58 = vsel %vm498_vm7, %v495_v54, %v415_v19 }
  0xb8   : >> { %v433_v20 = vpop.permute.xlu1 %432 }
  0xb9   : >> { %v429_v21 = vpop.permute.xlu0 %428  ;;  %v506_v37 = vsel %vm503_vm8, %v501_v34, %v433_v20 }
  0xba   : >> { %v504_v50 = vsel %vm503_vm8, %v499_v46, %v429_v21 }
  0xbc   : >> { %v435_v22 = vpop.permute.xlu1 %434 }
  0xbd   : >> { %v431_v23 = vpop.permute.xlu0 %430  ;;  %v507_v52 = vsel %vm503_vm8, %v502_v49, %v435_v22 }
  0xbe   : >> { %v505_v60 = vsel %vm503_vm8, %v500_v58, %v431_v23 }
  0xc0   : >> { %v452_v24 = vpop.permute.xlu1 %451 }
  0xc1   : >> { %v448_v27 = vpop.permute.xlu0 %447  ;;  %v511_v42 = vsel %vm508_vm9, %v506_v37, %v452_v24 }
  0xc2   : >> { %v509_v40 = vsel %vm508_vm9, %v504_v50, %v448_v27 }
  0xc4   : >> { %v454_v30 = vpop.permute.xlu1 %453 }
  0xc5   : >> { %v450_v38 = vpop.permute.xlu0 %449  ;;  %v512_v55 = vsel %vm508_vm9, %v507_v52, %v454_v30 }
  0xc6   : >> { %v510_v61 = vsel %vm508_vm9, %v505_v60, %v450_v38 }
  0xc8   : >> { %v471_v29 = vpop.permute.xlu1 %470 }
  0xc9   : >> { %v516_v47 = vsel %vm513_vm10, %v511_v42, %v471_v29  ;;  %v467_v53 = vpop.permute.xlu0 %466 }
  0xca   : >> { %1053 = vmatprep.mubr.msk.f32.mxu1 %vm518_vm11, %v516_v47  ;;  %v514_v56 = vsel %vm513_vm10, %v509_v40, %v467_v53 }
  0xcb   : >> { %1050 = vmatprep.mubr.msk.f32.mxu0 %vm518_vm11, %v514_v56 }
  0xcc   : >> { %v473_v57 = vpop.permute.xlu1 %472 }
  0xcd   : >> { %v517_v59 = vsel %vm513_vm10, %v512_v55, %v473_v57  ;;  %v469_v62 = vpop.permute.xlu0 %468 }
  0xce   : >> { %1054 = vmatmul.mubr.msk.f32.vlgmr.msra.gmra.mrb[0].mxu1 %vm518_vm11, %v517_v59  ;;  %v515_v63 = vsel %vm513_vm10, %v510_v61, %v469_v62 }
  0xcf   : >> { %1051 = vmatmul.mubr.msk.f32.vlgmr.msra.gmra.mrb[0].mxu0 %vm518_vm11, %v515_v63 }
 0x1a0   : > { %236 = sbr.rel (!%p234_p4) target bundleno = 18 (0x12), region = 88 }
 0x1a1   : >> { %v1055_v14 = vpop.f32.mrb[0].mxu1 }
 0x1a2   : >> { %v623_v15 = vmax.f32 %v1055_v14, 0.0  ;;  %v611_v16 = vpop.f32.mrb[1].mxu1  ;;  %v1052_v18 = vpop.f32.mrb[0].mxu0 }
 0x1a3   : >> { %v622_v17 = vmax.f32 %v611_v16, 0.0  ;;  %v621_v19 = vmax.f32 %v1052_v18, 0.0  ;;  %v601_v20 = vpop.f32.mrb[1].mxu0 }
 0x1a4   : >> { %630 = vst.msk [vmem:[%s625_s20 + $0x18] sm:$0x3] %vm629_vm12, %v623_v15  ;;  %v620_v21 = vmax.f32 %v601_v20, 0.0 }
 0x1a5   : >> { %628 = vst.msk [vmem:[%s625_s20 + $0x10] sm:$0xff] %vm483_vm5, %v622_v17  ;;  %627 = vst.msk [vmem:[%s625_s20 + $0x8] sm:$0xff] %vm483_vm5, %v621_v19 }
 0x1a6   : >> { %626 = vst.msk [vmem:[%s625_s20] sm:$0xff] %vm483_vm5, %v620_v21 }
 0x1a7 LB: >> { %s1012_s22 = sshll.u32 %s1186_s21, 5  ;;  %v1092_v22 = vpack.c.bf16 %v1273_v6, %v1268_v5  ;;  %v1196_v23 = vmov 0.0|0.0   ;;  %s1197_s24 = smov 24   ;;  %v1095_v29 = vpack.c.bf16 %v1283_v8, %v1278_v7  ;;  %v1098_v46 = vpack.c.bf16 %v1293_v10, %v1288_v9  ;;  %s1186_s21 = sphi %s1478_s21, %s636_s21  }
 0x1a8   : >> { %1109 = vmatprep.subr.bf16.mxu1 %v1196_v23  ;;  %1091 = vmatprep.subr.bf16.mxu0 %v1196_v23  ;;  %s1488_s23 = scalar_lea.vmem [#allocation2], %s1012_s22  ;;  %s1198_s25 = smov 8   ;;  %vm1202_vm13 = vmmov 0   ;;  %v1203_v49 = vmov 0.0   ;;  %v1101_v51 = vpack.c.bf16 %v1303_v12, %v1298_v11  ;;  %vm795_vm14 = vcmask 326656  }
 0x1a9   : >> { %1114 = vmatpush3.bf16.msra.mxu1 %v1092_v22  ;;  %1093 = vmatpush3.bf16.msra.mxu0 %v1092_v22  ;;  %s1199_s26 = smov 32   ;;  %s1200_s27 = smov 16   ;;  %vm799_vm15 = vcmask 392192   ;;  %vm803_vm2 = vcmask 457728   ;;  %vm807_vm3 = vcmask 523264   ;;  %vm811_vm4 = vcmask 588800  }
 0x1aa   : >> { %1110 = vmatprep.subr.bf16.mxu1 %v1196_v23  ;;  %1094 = vmatprep.subr.bf16.mxu0 %v1196_v23  ;;  %s1201_s28 = smov 40   ;;  %s1204_s29 = smov 48  }
 0x1ab   : >> { %1077 = vmatprep.mubr.msk.f32.mxu1 %vm1202_vm13, %v1203_v49  ;;  %1074 = vmatprep.mubr.msk.f32.mxu0 %vm1202_vm13, %v1203_v49  ;;  %s1205_s30 = smov 56   ;;  %s1206_s6 = smov 64  }
 0x1ac   : >> { %s904_s16 = smul.u32 24, %s1186_s21  ;;  %s636_s21 = sadd.s32 1, %s1186_s21  }
 0x1ad   : >> { %v1491_v0 = vld [vmem:[%s1488_s23 + $0x28] sm:$0xff]  ;;  %v1497_v2 = vld [vmem:[%s1488_s23 + $0x10] sm:$0xff]  ;;  %v642_v30 = vld [vmem:[%s1488_s23 + $0x18] sm:$0x3]  ;;  %1115 = vmatpush3.bf16.msra.mxu1 %v1095_v29  ;;  %1096 = vmatpush3.bf16.msra.mxu0 %v1095_v29  ;;  %p633_p5 = scmp.ge.s32.totalorder %s636_s21, 24  }
 0x1ae   : >> { %v1494_v1 = vld [vmem:[%s1488_s23 + $0x8] sm:$0xff]  ;;  %694 = vrot.lane.b32.xlu1 %v1491_v0, %s1197_s24  ;;  %v659_v4 = vrot.slane %v1497_v2, 1  ;;  %v1504_v24 = vld [vmem:[%s1488_s23 + $0x30] sm:$0xff]  ;;  %v703_v25 = vrot.slane %v1491_v0, 1  ;;  %v676_v28 = vrot.slane %v1497_v2, 2  ;;  %v1513_v31 = vld [vmem:[%s1488_s23] sm:$0xff]  ;;  %1111 = vmatprep.subr.bf16.mxu1 %v1196_v23  ;;  %s905_s7 = scalar_lea.vmem %s1323_s5, %s904_s16 }
 0x1af   : >> { %v657_v3 = vrot.slane %v1494_v1, 1  ;;  %v674_v26 = vrot.slane %v1494_v1, 2  ;;  %v705_v27 = vrot.slane %v1504_v24, 1  ;;  %v661_v33 = vrot.slane %v642_v30, 1  ;;  %v1537_v47 = vld [vmem:[%s1488_s23 + $0x48] sm:$0xff]  ;;  %v643_v48 = vld [vmem:[%s1488_s23 + $0x20] sm:$0xff]  ;;  %1097 = vmatprep.subr.bf16.mxu0 %v1196_v23 }
 0x1b0   : >> { %v656_v35 = vrot.slane %v1513_v31, 1  ;;  %v673_v37 = vrot.slane %v1513_v31, 2  ;;  %v719_v39 = vrot.slane %v1491_v0, 2  ;;  %v721_v41 = vrot.slane %v1504_v24, 2  ;;  %v649_v40 = vld [vmem:[%s1488_s23 + $0x50] sm:$0xff]  ;;  %v647_v18 = vld [vmem:[%s1488_s23 + $0x40] sm:$0xff] }
 0x1b1   : >> { %v660_v32 = vsel %vm330_vm0, %v657_v3, %v659_v4  ;;  %v706_v45 = vsel %vm330_vm0, %v703_v25, %v705_v27  ;;  %v677_v34 = vsel %vm350_vm1, %v674_v26, %v676_v28  ;;  %v662_v36 = vsel %vm330_vm0, %v659_v4, %v661_v33  ;;  %1116 = vmatpush3.bf16.msra.mxu1 %v1098_v46  ;;  %v646_v58 = vld [vmem:[%s1488_s23 + $0x38] sm:$0x3] }
 0x1b2   : >> { %665 = vrot.lane.b32.xlu0 %v660_v32, %s1198_s25  ;;  %711 = vrot.lane.b32.xlu1 %v706_v45, %s1199_s26  ;;  %v658_v38 = vsel %vm330_vm0, %v656_v35, %v657_v3  ;;  %v675_v42 = vsel %vm350_vm1, %v673_v37, %v674_v26  ;;  %v722_v43 = vsel %vm350_vm1, %v719_v39, %v721_v41  ;;  %v678_v44 = vrot.slane %v642_v30, 2  ;;  %v650_v16 = vld [vmem:[%s1488_s23 + $0x58] sm:$0x3] }
 0x1b3   : >> { %v702_v52 = vrot.slane %v643_v48, 1  ;;  %1112 = vmatprep.subr.bf16.mxu1 %v1196_v23  ;;  %1099 = vmatpush3.bf16.msra.mxu0 %v1098_v46  ;;  %v748_v53 = vrot.slane %v1537_v47, 1  ;;  %v750_v54 = vrot.slane %v649_v40, 1  ;;  %v764_v56 = vrot.slane %v1537_v47, 2 }
 0x1b4   : >> { %v679_v50 = vsel %vm350_vm1, %v676_v28, %v678_v44  ;;  %1100 = vmatprep.subr.bf16.mxu0 %v1196_v23  ;;  %v766_v57 = vrot.slane %v649_v40, 2  ;;  %v707_v60 = vrot.slane %v646_v58, 1  ;;  %v723_v62 = vrot.slane %v646_v58, 2 }
 0x1b5   : >> { %1117 = vmatpush3.bf16.msra.mxu1 %v1101_v51  ;;  %v704_v55 = vsel %vm330_vm0, %v702_v52, %v703_v25  ;;  %v751_v59 = vsel %vm330_vm0, %v748_v53, %v750_v54  ;;  %v718_v14 = vrot.slane %v643_v48, 2  ;;  %v752_v19 = vrot.slane %v650_v16, 1 }
 0x1b6   : >> { %682 = vrot.lane.b32.xlu0 %v677_v34, %s1200_s27  ;;  %667 = vrot.lane.b32.xlu1 %v662_v36, %s1198_s25  ;;  %v767_v61 = vsel %vm350_vm1, %v764_v56, %v766_v57  ;;  %v708_v63 = vsel %vm330_vm0, %v705_v27, %v707_v60  ;;  %v724_v15 = vsel %vm350_vm1, %v721_v41, %v723_v62  ;;  %v747_v20 = vrot.slane %v647_v18, 1 }
 0x1b7   : >> { %1113 = vmatprep.subr.mxu1 %v1203_v49  ;;  %1102 = vmatpush3.bf16.msra.mxu0 %v1101_v51  ;;  %v720_v17 = vsel %vm350_vm1, %v718_v14, %v719_v39  ;;  %v753_v21 = vsel %vm330_vm0, %v750_v54, %v752_v19  ;;  %v768_v22 = vrot.slane %v650_v16, 2  ;;  %v763_v0 = vrot.slane %v647_v18, 2 }
 0x1b8   : >> { %1072 = vmatprep.subr.mxu0 %v1203_v49  ;;  %v749_v23 = vsel %vm330_vm0, %v747_v20, %v748_v53 }
 0x1b9   : >> { %1118 = vmatpush3.msra.mxu1 %v1308_v13  ;;  %v769_v3 = vsel %vm350_vm1, %v766_v57, %v768_v22  ;;  %v765_v4 = vsel %vm350_vm1, %v763_v0, %v764_v56 }
 0x1ba   : >> { %663 = vrot.lane.b32.xlu0 %v658_v38, %s1198_s25  ;;  %680 = vrot.lane.b32.xlu1 %v675_v42, %s1200_s27 }
 0x1bb   : >> { %1073 = vmatpush3.msra.mxu0 %v1308_v13 }
 0x1be   : >> { %727 = vrot.lane.b32.xlu0 %v722_v43, %s1201_s28  ;;  %739 = vrot.lane.b32.xlu1 %v1537_v47, %s1204_s29 }
 0x1c2   : >> { %684 = vrot.lane.b32.xlu0 %v679_v50, %s1200_s27  ;;  %696 = vrot.lane.b32.xlu1 %v1504_v24, %s1197_s24 }
 0x1c6   : >> { %692 = vrot.lane.b32.xlu0 %v643_v48, %s1197_s24  ;;  %709 = vrot.lane.b32.xlu1 %v704_v55, %s1199_s26 }
 0x1ca   : >> { %756 = vrot.lane.b32.xlu0 %v751_v59, %s1205_s30  ;;  %772 = vrot.lane.b32.xlu1 %v767_v61, %s1206_s6 }
 0x1ce   : >> { %713 = vrot.lane.b32.xlu0 %v708_v63, %s1199_s26  ;;  %729 = vrot.lane.b32.xlu1 %v724_v15, %s1201_s28 }
 0x1d2   : >> { %725 = vrot.lane.b32.xlu0 %v720_v17, %s1201_s28  ;;  %741 = vrot.lane.b32.xlu1 %v649_v40, %s1204_s29 }
 0x1d6   : >> { %737 = vrot.lane.b32.xlu0 %v647_v18, %s1204_s29  ;;  %758 = vrot.lane.b32.xlu1 %v753_v21, %s1205_s30 }
 0x1da   : >> { %754 = vrot.lane.b32.xlu0 %v749_v23, %s1205_s30  ;;  %774 = vrot.lane.b32.xlu1 %v769_v3, %s1206_s6 }
 0x1de   : >> { %770 = vrot.lane.b32.xlu0 %v765_v4, %s1206_s6 }
 0x220   : >> { %v695_v24 = vpop.permute.xlu1 %694 }
 0x224   : >> { %v666_v25 = vpop.permute.xlu0 %665  ;;  %v712_v26 = vpop.permute.xlu1 %711 }
 0x225   : >> { %v781_v45 = vsel %vm483_vm5, %v1494_v1, %v666_v25 }
 0x228   : >> { %v683_v27 = vpop.permute.xlu0 %682  ;;  %v668_v28 = vpop.permute.xlu1 %667 }
 0x229   : >> { %v785_v35 = vsel %vm493_vm6, %v781_v45, %v683_v27  ;;  %v782_v51 = vsel %vm483_vm5, %v1497_v2, %v668_v28 }
 0x22a   : >> { %v789_v37 = vsel %vm503_vm8, %v785_v35, %v695_v24 }
 0x22b   : >> { %v793_v39 = vsel %vm513_vm10, %v789_v37, %v712_v26 }
 0x22c   : >> { %v664_v30 = vpop.permute.xlu0 %663  ;;  %v681_v32 = vpop.permute.xlu1 %680 }
 0x22d   : >> { %v780_v54 = vsel %vm483_vm5, %v1513_v31, %v664_v30 }
 0x22e   : >> { %v784_v58 = vsel %vm493_vm6, %v780_v54, %v681_v32 }
 0x230   : >> { %v728_v33 = vpop.permute.xlu0 %727  ;;  %v740_v34 = vpop.permute.xlu1 %739 }
 0x231   : >> { %v797_v42 = vsel %vm795_vm14, %v793_v39, %v728_v33 }
 0x232   : >> { %v801_v43 = vsel %vm799_vm15, %v797_v42, %v740_v34 }
 0x234   : >> { %v685_v36 = vpop.permute.xlu0 %684  ;;  %v697_v38 = vpop.permute.xlu1 %696 }
 0x235   : >> { %v786_v52 = vsel %vm493_vm6, %v782_v51, %v685_v36 }
 0x236   : >> { %v790_v55 = vsel %vm503_vm8, %v786_v52, %v697_v38 }
 0x238   : >> { %v693_v41 = vpop.permute.xlu0 %692  ;;  %v710_v29 = vpop.permute.xlu1 %709 }
 0x23c   : >> { %v757_v1 = vpop.permute.xlu0 %756  ;;  %v773_v46 = vpop.permute.xlu1 %772 }
 0x23d   : >> { %v805_v44 = vsel %vm803_vm2, %v801_v43, %v757_v1 }
 0x23e   : >> { %v809_v47 = vsel %vm807_vm3, %v805_v44, %v773_v46 }
 0x23f   : >> { %1078 = vmatmul.mubr.msk.f32.vlgmr.msra.gmra.mrb[0].mxu1 %vm811_vm4, %v809_v47 }
 0x240   : >> { %v714_v48 = vpop.permute.xlu0 %713  ;;  %1080 = vmatprep.mubr.msk.f32.mxu1 %vm1202_vm13, %v1203_v49  ;;  %v730_v50 = vpop.permute.xlu1 %729  ;;  %v788_v49 = vsel %vm503_vm8, %v784_v58, %v693_v41 }
 0x241   : >> { %v794_v56 = vsel %vm513_vm10, %v790_v55, %v714_v48  ;;  %v792_v62 = vsel %vm513_vm10, %v788_v49, %v710_v29 }
 0x242   : >> { %v798_v2 = vsel %vm795_vm14, %v794_v56, %v730_v50 }
 0x244   : >> { %v726_v40 = vpop.permute.xlu0 %725  ;;  %v742_v53 = vpop.permute.xlu1 %741 }
 0x245   : >> { %v802_v60 = vsel %vm799_vm15, %v798_v2, %v742_v53  ;;  %v796_v14 = vsel %vm795_vm14, %v792_v62, %v726_v40 }
 0x248   : >> { %v738_v57 = vpop.permute.xlu0 %737  ;;  %v759_v59 = vpop.permute.xlu1 %758 }
 0x249   : >> { %v806_v31 = vsel %vm803_vm2, %v802_v60, %v759_v59  ;;  %v800_v16 = vsel %vm799_vm15, %v796_v14, %v738_v57 }
 0x24c   : >> { %v755_v61 = vpop.permute.xlu0 %754  ;;  %v775_v63 = vpop.permute.xlu1 %774 }
 0x24d   : >> { %v810_v15 = vsel %vm807_vm3, %v806_v31, %v775_v63  ;;  %v804_v17 = vsel %vm803_vm2, %v800_v16, %v755_v61 }
 0x24e   : >> { %1081 = vmatmul.mubr.msk.f32.gmra.mrb[2].mxu1 %vm811_vm4, %v810_v15 }
 0x250   : >> { %v771_v18 = vpop.permute.xlu0 %770 }
 0x251   : >> { %v808_v19 = vsel %vm807_vm3, %v804_v17, %v771_v18 }
 0x252   : >> { %1075 = vmatmul.mubr.msk.f32.vlgmr.msra.gmra.mrb[0].mxu0 %vm811_vm4, %v808_v19 }
 0x312   : >> { %v892_v20 = vpop.f32.mrb[0].mxu1 }
 0x313   : >> { %v902_v21 = vmax.f32 %v892_v20, 0.0  ;;  %v1079_v22 = vpop.f32.mrb[1].mxu1 }
 0x315   : >> { %907 = vst.msk [vmem:[%s905_s7 + $0x8] sm:$0xff] %vm483_vm5, %v902_v21 }
 0x321   : >> { %v897_v23 = vpop.f32.mrb[2].mxu1 }
 0x322   : >> { %v903_v0 = vmax.f32 %v897_v23, 0.0  ;;  %v1082_v3 = vpop.f32.mrb[3].mxu1  ;;  %635 = sbr.rel (!%p633_p5) target bundleno = 423 (0x1a7), region = 99 }
 0x324   : >> { %908 = vst.msk [vmem:[%s905_s7 + $0x10] sm:$0xff] %vm483_vm5, %v903_v0 }
 0x325   : >> { %v887_v4 = vpop.f32.mrb[0].mxu0 }
 0x326   : >> { %v901_v24 = vmax.f32 %v887_v4, 0.0  ;;  %v1076_v25 = vpop.f32.mrb[1].mxu0 }
 0x328   : >> { %906 = vst.msk [vmem:[%s905_s7] sm:$0xff] %vm483_vm5, %v901_v24 }
 0x329 PF: > { %s14_s15 = sadd.s32 1, %s1178_s15  }
 0x32a   : > { %p11_p6 = scmp.ge.s32.totalorder %s14_s15, 4  }
 0x32c   :  { %13 = sbr.rel (!%p11_p6) target bundleno = 1 (0x1), region = 110 }

// kernel: unet_forward.5
= control target key start
LH: loop header
LB: loop body
LE: loop exit
PB: predicated region body
PF: predicated region fallthrough
CT: control target
= control target key end

     0   :  { %s1564_s12 = smov 0   ;;  %s2503_s0 = inlined_call_operand.vmem [shape: f32[2,60,60,1], index: 0, kind: input, shape index: {}]   ;;  %s2504_s1 = inlined_call_operand.vmem [shape: f32[9,4], index: 1, kind: input, shape index: {}]   ;;  %s2505_s2 = inlined_call_operand.vmem [shape: f32[36,4], index: 2, kind: input, shape index: {}]   ;;  %s2506_s3 = inlined_call_operand.vmem [shape: f32[2,56,56,4], index: 3, kind: output, shape index: {}]  }
   0x1 LB: > { %s1337_s13 = sadd.s32 4294967295, %s1514_s12   ;;  %p1341_p0 = scmp.ge.s32.totalorder %s1514_s12, 1  ;;  %s1514_s12 = sphi %s1564_s12, %s13_s12  }
   0x2   : > { %p137_p1 = scmp.lt.s32.totalorder %s1514_s12, 3 }
   0x4   : > { %p138_p2 = pnand %p1341_p0, %p137_p1 }
   0x5   : > { %p161_p3 = scmp.lt.s32.totalorder (!%p138_p2), %s1337_s13, 1  ;;  %v1575_v0 = vld [vmem:[%s2504_s1] sm:$0xff] (!%p138_p2)  ;;  %v1580_v1 = vld [vmem:[%s2504_s1 + $0x8] sm:$0x1] (!%p138_p2)  ;;  %v1595_v4 = vld [vmem:[%s2505_s2 + $0x10] sm:$0xff] (!%p138_p2)  ;;  %s1617_s9 = smov (!%p138_p2), 0  }
   0x6   : > { %141 = sbr.rel (%p138_p2) target bundleno = 931 (0x3a3), region = 32  ;;  %v1585_v2 = vld [vmem:[%s2505_s2] sm:$0xff] (!%p138_p2)  ;;  %v1590_v3 = vld [vmem:[%s2505_s2 + $0x8] sm:$0xff] (!%p138_p2)  ;;  %v1600_v5 = vld [vmem:[%s2505_s2 + $0x18] sm:$0xff] (!%p138_p2) }
   0x7   : > { %v1605_v6 = vld [vmem:[%s2505_s2 + $0x20] sm:$0xf] (!%p138_p2) }
   0xd   : > { %s2539_s13 = smov (!%p161_p3, %s1337_s13), 1 }
   0xe   : > { %s1454_s28 = smul.u32 3840, %s2539_s13 }
   0xf   : > { %s1455_s29 = smul.u32 3136, %s2539_s13 }
  0x10   : > { %s1610_s5 = scalar_lea.vmem %s2503_s0, %s1454_s28 }
  0x11   : > { %s1615_s8 = scalar_lea.vmem %s2506_s3, %s1455_s29 }
  0x12 LB: >> { %s1344_s10 = sshll.u32 %s1518_s9, 6  ;;  %vm218_vm0 = vcmask 1046528   ;;  %s1524_s13 = smov 1   ;;  %vm258_vm1 = vcmask 1045504   ;;  %vm615_vm2 = vcmask 1040384   ;;  %vm1531_vm3 = vmmov 1   ;;  %s1518_s9 = sphi %s1617_s9, %s183_s9  }
  0x13   : >> { %s1626_s11 = scalar_lea.vmem %s1610_s5, %s1344_s10  ;;  %s1525_s14 = smov 2   ;;  %vm1435_vm4 = vmpackc.low %vm615_vm2, %vm1531_vm3  ;;  %vm518_vm5 = vcmask 7168   ;;  %vm527_vm6 = vcmask 15360   ;;  %vm536_vm7 = vcmask 23552   ;;  %vm545_vm8 = vcmask 31744  }
  0x14   : >> { %v1629_v7 = vld [vmem:[%s1626_s11 + $0x8] sm:$0xff]  ;;  %v1632_v8 = vld [vmem:[%s1626_s11 + $0x10] sm:$0xff]  ;;  %v1635_v9 = vld [vmem:[%s1626_s11] sm:$0xff]  ;;  %s1526_s15 = smov 3   ;;  %s1527_s16 = smov 4   ;;  %vm554_vm9 = vcmask 39936  }
  0x15   : >> { %v220_v10 = vrot.slane %v1629_v7, 1  ;;  %v2518_v11 = vrot.slane %v1632_v8, 1  ;;  %v219_v12 = vrot.slane %v1635_v9, 1  ;;  %v1641_v13 = vld [vmem:[%s1626_s11 + $0x28] sm:$0xff]  ;;  %v1644_v14 = vld [vmem:[%s1626_s11 + $0x30] sm:$0xff]  ;;  %v1647_v15 = vld [vmem:[%s1626_s11 + $0x20] sm:$0xff] }
  0x16   : >> { %v228_v16 = vrot.slane %v1641_v13, 1  ;;  %v2519_v17 = vrot.slane %v1644_v14, 1  ;;  %v2514_v18 = vrot.slane %v1647_v15, 1  ;;  %v2509_v21 = vrot.slane %v1647_v15, 2  ;;  %v1677_v31 = vld [vmem:[%s1626_s11 + $0x60] sm:$0xff]  ;;  %v1680_v32 = vld [vmem:[%s1626_s11 + $0x68] sm:$0xff] }
  0x17   : >> { %v223_v19 = vsel %vm218_vm0, %v220_v10, %v2518_v11  ;;  %v221_v20 = vsel %vm218_vm0, %v219_v12, %v220_v10  ;;  %v268_v22 = vrot.slane %v1641_v13, 2  ;;  %v259_v25 = vrot.slane %v1635_v9, 2  ;;  %v1683_v33 = vld [vmem:[%s1626_s11 + $0x40] sm:$0xff]  ;;  %v1686_v34 = vld [vmem:[%s1626_s11 + $0x70] sm:$0xff]  ;;  %v1703_v41 = vld [vmem:[%s1626_s11 + $0xa8] sm:$0xff]  ;;  %s1528_s17 = smov 5  }
  0x18   : >> { %236 = vrot.lane.b32.xlu1 %v223_v19, %s1524_s13  ;;  %234 = vrot.lane.b32.xlu0 %v221_v20, %s1524_s13  ;;  %v231_v23 = vsel %vm218_vm0, %v228_v16, %v2519_v17  ;;  %v229_v24 = vsel %vm218_vm0, %v2514_v18, %v228_v16  ;;  %v260_v26 = vrot.slane %v1629_v7, 2  ;;  %v2513_v27 = vrot.slane %v1644_v14, 2  ;;  %v1689_v35 = vld [vmem:[%s1626_s11 + $0x50] sm:$0xff]  ;;  %v1697_v39 = vld [vmem:[%s1626_s11 + $0xa0] sm:$0xff]  ;;  %s1529_s18 = smov 6   ;;  %s1530_s19 = smov 7  }
  0x19   : >> { %v2512_v28 = vrot.slane %v1632_v8, 2  ;;  %v269_v29 = vsel %vm258_vm1, %v2509_v21, %v268_v22  ;;  %v337_v37 = vrot.slane %v1677_v31, 1  ;;  %v2517_v38 = vrot.slane %v1677_v31, 2  ;;  %v1700_v40 = vld [vmem:[%s1626_s11 + $0x80] sm:$0xff]  ;;  %v1714_v46 = vld [vmem:[%s1626_s11 + $0x88] sm:$0xff]  ;;  %v1724_v52 = vld [vmem:[%s1626_s11 + $0x58] sm:$0xff] }
  0x1a   : >> { %v261_v30 = vsel %vm258_vm1, %v259_v25, %v260_v26  ;;  %v271_v36 = vsel %vm258_vm1, %v268_v22, %v2513_v27  ;;  %v339_v44 = vrot.slane %v1680_v32, 1  ;;  %v447_v45 = vrot.slane %v1697_v39, 1  ;;  %v1717_v47 = vld [vmem:[%s1626_s11 + $0x78] sm:$0xf]  ;;  %v1731_v57 = vld [vmem:[%s1626_s11 + $0xb0] sm:$0xff]  ;;  %v1764_v25 = vld [vmem:[%s1626_s11 + $0x48] sm:$0xff] }
  0x1b   : >> { %v263_v42 = vsel %vm258_vm1, %v260_v26, %v2512_v28  ;;  %v2516_v48 = vrot.slane %v1686_v34, 1  ;;  %v2515_v49 = vrot.slane %v1689_v35, 1  ;;  %v2511_v50 = vrot.slane %v1686_v34, 2  ;;  %v1734_v58 = vld [vmem:[%s1626_s11 + $0x90] sm:$0xff]  ;;  %v1820_v18 = vld [vmem:[%s1626_s11 + $0x38] sm:$0xf] }
  0x1c   : >> { %244 = vrot.lane.b32.xlu1 %v231_v23, %s1524_s13  ;;  %242 = vrot.lane.b32.xlu0 %v229_v24, %s1524_s13  ;;  %v440_v51 = vrot.slane %v1700_v40, 1  ;;  %v2510_v53 = vrot.slane %v1689_v35, 2  ;;  %v486_v54 = vrot.slane %v1697_v39, 2  ;;  %v479_v55 = vrot.slane %v1700_v40, 2  ;;  %v1761_v24 = vld [vmem:[%s1626_s11 + $0xb8] sm:$0xf] }
  0x1d   : >> { %v449_v56 = vrot.slane %v1703_v41, 1  ;;  %v488_v59 = vrot.slane %v1703_v41, 2  ;;  %v441_v60 = vrot.slane %v1714_v46, 1  ;;  %v480_v61 = vrot.slane %v1714_v46, 2  ;;  %s1532_s20 = smov 8   ;;  %s732_s21 = scalar_lea.vmem [#allocation2], %s1344_s10 }
  0x1e   : >> { %v2507_v62 = vrot.slane %v1717_v47, 1  ;;  %v2508_v10 = vrot.slane %v1717_v47, 2  ;;  %v335_v12 = vrot.slane %v1724_v52, 1  ;;  %v374_v16 = vrot.slane %v1724_v52, 2  ;;  %s183_s9 = sadd.s32 1, %s1518_s9  }
  0x1f   : >> { %v1743_v63 = vsel %vm218_vm0, %v447_v45, %v449_v56  ;;  %v1749_v19 = vsel %vm218_vm0, %v440_v51, %v441_v60  ;;  %v451_v22 = vrot.slane %v1731_v57, 1  ;;  %v443_v23 = vrot.slane %v1734_v58, 1  ;;  %p180_p4 = scmp.ge.s32.totalorder %s183_s9, 58  }
  0x20   : >> { %282 = vrot.lane.b32.xlu1 %v269_v29, %s1525_s14  ;;  %274 = vrot.lane.b32.xlu0 %v261_v30, %s1525_s14  ;;  %v1756_v20 = vsel %vm218_vm0, %v2516_v48, %v2507_v62  ;;  %v1769_v26 = vsel %vm218_vm0, %v2515_v49, %v335_v12  ;;  %v1772_v29 = vsel %vm258_vm1, %v486_v54, %v488_v59  ;;  %v2521_v21 = vrot.slane %v1761_v24, 1  ;;  %v1823_v49 = vld [vmem:[%s1626_s11 + $0x18] sm:$0xff]  ;;  %s2124_s22 = smov (%p180_p4), 0  }
  0x21   : >> { %v1775_v30 = vsel %vm258_vm1, %v479_v55, %v480_v61  ;;  %v1786_v51 = vsel %vm218_vm0, %v449_v56, %v451_v22  ;;  %v1789_v62 = vsel %vm218_vm0, %v441_v60, %v443_v23  ;;  %v1796_v55 = vsel %vm258_vm1, %v2511_v50, %v2508_v10 }
  0x22   : >> { %v490_v56 = vrot.slane %v1731_v57, 2  ;;  %v482_v60 = vrot.slane %v1734_v58, 2  ;;  %v1812_v10 = vsel %vm258_vm1, %v374_v16, %v2517_v38  ;;  %v2520_v50 = vrot.slane %v1761_v24, 2 }
  0x23   : >> { %v1834_v38 = vsel %vm218_vm0, %v451_v22, %v2521_v21  ;;  %v2526_v21 = vrot.slane %v1689_v35, 1  ;;  %vm563_vm10 = vcmask 48128   ;;  %vm572_vm11 = vcmask 56320  }
  0x24   : >> { %284 = vrot.lane.b32.xlu1 %v271_v36, %s1525_s14  ;;  %276 = vrot.lane.b32.xlu0 %v263_v42, %s1525_s14  ;;  %v1780_v36 = vsel %vm218_vm0, %v335_v12, %v337_v37  ;;  %v1783_v42 = vld [vmem:[%s1626_s11 + $0x98] sm:$0xff]  ;;  %v1801_v12 = vsel %vm258_vm1, %v2510_v53, %v374_v16  ;;  %v331_v53 = vrot.slane %v1764_v25, 1  ;;  %v1826_v48 = vsel %vm258_vm1, %v488_v59, %v490_v56 }
  0x25   : >> { %v445_v28 = vrot.slane %v1783_v42, 1  ;;  %v484_v27 = vrot.slane %v1783_v42, 2  ;;  %v1829_v16 = vsel %vm258_vm1, %v480_v61, %v482_v60  ;;  %v1845_v43 = vsel %vm258_vm1, %v490_v56, %v2520_v50 }
  0x26   : >> { %v224_v56 = vrot.slane %v1823_v49, 1  ;;  %v369_v50 = vrot.slane %v1683_v33, 2  ;;  %vm581_vm12 = vcmask 64512   ;;  %vm590_vm13 = vcmask 72704  }
  0x27   : >> { %v1837_v11 = vsel %vm218_vm0, %v443_v23, %v445_v28  ;;  %v1840_v17 = vsel %vm218_vm0, %v445_v28, %v447_v45  ;;  %v1848_v59 = vsel %vm258_vm1, %v482_v60, %v484_v27  ;;  %v1855_v61 = vsel %vm258_vm1, %v484_v27, %v486_v54 }
  0x28   : >> { %314 = vrot.lane.b32.xlu1 %v1677_v31, %s1526_s15  ;;  %306 = vrot.lane.b32.xlu0 %v1683_v33, %s1526_s15  ;;  %v340_v28 = vsel %vm218_vm0, %v337_v37, %v339_v44  ;;  %v2522_v45 = vrot.slane %v1683_v33, 1  ;;  %v232_v23 = vrot.slane %v1820_v18, 1  ;;  %v2523_v27 = vrot.slane %v1644_v14, 1 }
  0x29   : >> { %v2524_v60 = vrot.slane %v1632_v8, 1  ;;  %v2527_v33 = vrot.slane %v1677_v31, 2  ;;  %v2529_v31 = vrot.slane %v1644_v14, 2  ;;  %vm740_vm14 = vcmask 25600  }
  0x2a   : >> { %v332_v22 = vsel %vm218_vm0, %v2522_v45, %v331_v53  ;;  %v233_v54 = vsel %vm218_vm0, %v2523_v27, %v232_v23  ;;  %v378_v45 = vrot.slane %v1680_v32, 2 }
  0x2b   : >> { %v225_v37 = vsel %vm218_vm0, %v2524_v60, %v224_v56  ;;  %v334_v60 = vsel %vm218_vm0, %v331_v53, %v2526_v21  ;;  %v272_v21 = vrot.slane %v1820_v18, 2  ;;  %v264_v53 = vrot.slane %v1823_v49, 2 }
  0x2c   : >> { %316 = vrot.lane.b32.xlu1 %v1680_v32, %s1526_s15  ;;  %308 = vrot.lane.b32.xlu0 %v1764_v25, %s1526_s15  ;;  %v2528_v32 = vrot.slane %v1647_v15, 1 }
  0x30   : >> { %353 = vrot.lane.b32.xlu1 %v340_v28, %s1527_s16  ;;  %345 = vrot.lane.b32.xlu0 %v332_v22, %s1527_s16  ;;  %v370_v28 = vrot.slane %v1764_v25, 2  ;;  %v2525_v22 = vrot.slane %v1686_v34, 1 }
  0x32   : >> { %v342_v27 = vsel %vm218_vm0, %v339_v44, %v2525_v22  ;;  %v371_v25 = vsel %vm258_vm1, %v369_v50, %v370_v28  ;;  %v227_v44 = vsel %vm218_vm0, %v224_v56, %v2528_v32  ;;  %v273_v50 = vsel %vm258_vm1, %v2529_v31, %v272_v21 }
  0x33   : >> { %v2531_v56 = vrot.slane %v1686_v34, 2 }
  0x34   : >> { %246 = vrot.lane.b32.xlu1 %v233_v54, %s1524_s13  ;;  %238 = vrot.lane.b32.xlu0 %v225_v37, %s1524_s13  ;;  %v379_v54 = vsel %vm258_vm1, %v2527_v33, %v378_v45  ;;  %v2530_v37 = vrot.slane %v1632_v8, 2  ;;  %v2533_v33 = vrot.slane %v1647_v15, 2 }
  0x36   : >> { %v265_v22 = vsel %vm258_vm1, %v2530_v37, %v264_v53 }
  0x38   : >> { %355 = vrot.lane.b32.xlu1 %v342_v27, %s1527_s16  ;;  %347 = vrot.lane.b32.xlu0 %v334_v60, %s1527_s16  ;;  %v381_v27 = vsel %vm258_vm1, %v378_v45, %v2531_v56 }
  0x3c   : >> { %392 = vrot.lane.b32.xlu1 %v379_v54, %s1528_s17  ;;  %384 = vrot.lane.b32.xlu0 %v371_v25, %s1528_s17  ;;  %v267_v54 = vsel %vm258_vm1, %v264_v53, %v2533_v33 }
  0x40   : >> { %248 = vrot.lane.b32.xlu1 %v232_v23, %s1524_s13  ;;  %240 = vrot.lane.b32.xlu0 %v227_v44, %s1524_s13  ;;  %v2532_v23 = vrot.slane %v1689_v35, 2 }
  0x42   : >> { %v373_v60 = vsel %vm258_vm1, %v370_v28, %v2532_v23 }
  0x44   : >> { %286 = vrot.lane.b32.xlu1 %v273_v50, %s1525_s14  ;;  %278 = vrot.lane.b32.xlu0 %v265_v22, %s1525_s14 }
  0x48   : >> { %394 = vrot.lane.b32.xlu1 %v381_v27, %s1528_s17  ;;  %386 = vrot.lane.b32.xlu0 %v373_v60, %s1528_s17 }
  0x4c   : >> { %424 = vrot.lane.b32.xlu1 %v1697_v39, %s1529_s18  ;;  %416 = vrot.lane.b32.xlu0 %v1700_v40, %s1529_s18  ;;  %v2535_v39 = vrot.slane %v1717_v47, 2 }
  0x50   : >> { %288 = vrot.lane.b32.xlu1 %v272_v21, %s1525_s14  ;;  %280 = vrot.lane.b32.xlu0 %v267_v54, %s1525_s14 }
  0x54   : >> { %318 = vrot.lane.b32.xlu1 %v1686_v34, %s1526_s15  ;;  %310 = vrot.lane.b32.xlu0 %v1689_v35, %s1526_s15  ;;  %v1434_v34 = vpack.c.bf16 %v1580_v1, %v1575_v0  ;;  %v2534_v35 = vrot.slane %v1717_v47, 1 }
  0x56   : >> { %1436 = vmatprep.subr.msk.bf16.mxu0 %vm1435_vm4, %v1434_v34  ;;  %1446 = vmatprep.subr.msk.bf16.mxu1 %vm1435_vm4, %v1434_v34 }
  0x57   : >> { %1439 = vmatpush3.bf16.msk.msra.mxu0 %vm1435_vm4, %v1434_v34  ;;  %1447 = vmatpush3.bf16.msk.msra.mxu1 %vm1435_vm4, %v1434_v34 }
  0x58   : >> { %426 = vrot.lane.b32.xlu1 %v1703_v41, %s1529_s18  ;;  %418 = vrot.lane.b32.xlu0 %v1714_v46, %s1529_s18  ;;  %v2536_v46 = vrot.slane %v1761_v24, 1 }
  0x5c   : >> { %463 = vrot.lane.b32.xlu1 %v1743_v63, %s1530_s19  ;;  %455 = vrot.lane.b32.xlu0 %v1749_v19, %s1530_s19 }
  0x60   : >> { %320 = vrot.lane.b32.xlu1 %v1717_v47, %s1526_s15  ;;  %312 = vrot.lane.b32.xlu0 %v1724_v52, %s1526_s15 }
  0x64   : >> { %357 = vrot.lane.b32.xlu1 %v1756_v20, %s1527_s16  ;;  %349 = vrot.lane.b32.xlu0 %v1769_v26, %s1527_s16 }
  0x68   : >> { %465 = vrot.lane.b32.xlu1 %v1786_v51, %s1530_s19  ;;  %457 = vrot.lane.b32.xlu0 %v1789_v62, %s1530_s19  ;;  %v2537_v62 = vrot.slane %v1761_v24, 2 }
  0x6c   : >> { %502 = vrot.lane.b32.xlu1 %v1772_v29, %s1532_s20  ;;  %494 = vrot.lane.b32.xlu0 %v1775_v30, %s1532_s20 }
  0x70   : >> { %359 = vrot.lane.b32.xlu1 %v2534_v35, %s1527_s16  ;;  %351 = vrot.lane.b32.xlu0 %v1780_v36, %s1527_s16 }
  0x74   : >> { %396 = vrot.lane.b32.xlu1 %v1796_v55, %s1528_s17  ;;  %388 = vrot.lane.b32.xlu0 %v1801_v12, %s1528_s17 }
  0x78   : >> { %504 = vrot.lane.b32.xlu1 %v1826_v48, %s1532_s20  ;;  %496 = vrot.lane.b32.xlu0 %v1829_v16, %s1532_s20 }
  0x7c   : >> { %398 = vrot.lane.b32.xlu1 %v2535_v39, %s1528_s17  ;;  %390 = vrot.lane.b32.xlu0 %v1812_v10, %s1528_s17 }
  0x80   : >> { %428 = vrot.lane.b32.xlu1 %v1731_v57, %s1529_s18  ;;  %420 = vrot.lane.b32.xlu0 %v1734_v58, %s1529_s18 }
  0x84   : >> { %430 = vrot.lane.b32.xlu1 %v1761_v24, %s1529_s18  ;;  %422 = vrot.lane.b32.xlu0 %v1783_v42, %s1529_s18 }
  0x88   : >> { %467 = vrot.lane.b32.xlu1 %v1834_v38, %s1530_s19  ;;  %459 = vrot.lane.b32.xlu0 %v1837_v11, %s1530_s19 }
  0x8a   : >> { %v237_v40 = vpop.permute.xlu1 %236  ;;  %v235_v41 = vpop.permute.xlu0 %234 }
  0x8b   : >> { %v519_v11 = vsel %vm518_vm5, %v1635_v9, %v235_v41 }
  0x8c   : >> { %469 = vrot.lane.b32.xlu1 %v2536_v46, %s1530_s19  ;;  %461 = vrot.lane.b32.xlu0 %v1840_v17, %s1530_s19 }
  0x8e   : >> { %v245_v47 = vpop.permute.xlu1 %244  ;;  %v243_v48 = vpop.permute.xlu0 %242 }
  0x8f   : >> { %v523_v38 = vsel %vm518_vm5, %v1647_v15, %v243_v48  ;;  %v524_v9 = vsel %vm518_vm5, %v1641_v13, %v245_v47 }
  0x90   : >> { %506 = vrot.lane.b32.xlu1 %v1845_v43, %s1532_s20  ;;  %498 = vrot.lane.b32.xlu0 %v1848_v59, %s1532_s20  ;;  %v520_v43 = vsel %vm518_vm5, %v1629_v7, %v237_v40 }
  0x92   : >> { %v283_v52 = vpop.permute.xlu1 %282  ;;  %v275_v57 = vpop.permute.xlu0 %274 }
  0x93   : >> { %v532_v17 = vsel %vm527_vm6, %v523_v38, %v283_v52  ;;  %v528_v58 = vsel %vm527_vm6, %v519_v11, %v275_v57 }
  0x94   : >> { %508 = vrot.lane.b32.xlu1 %v2537_v62, %s1532_s20  ;;  %500 = vrot.lane.b32.xlu0 %v1855_v61, %s1532_s20 }
  0x96   : >> { %v285_v15 = vpop.permute.xlu1 %284  ;;  %v277_v63 = vpop.permute.xlu0 %276 }
  0x97   : >> { %v533_v10 = vsel %vm527_vm6, %v524_v9, %v285_v15  ;;  %v529_v19 = vsel %vm527_vm6, %v520_v43, %v277_v63 }
  0x9a   : >> { %v315_v20 = vpop.permute.xlu1 %314  ;;  %v307_v26 = vpop.permute.xlu0 %306 }
  0x9b   : >> { %v541_v41 = vsel %vm536_vm7, %v532_v17, %v315_v20  ;;  %v537_v46 = vsel %vm536_vm7, %v528_v58, %v307_v26 }
  0x9e   : >> { %v317_v24 = vpop.permute.xlu1 %316  ;;  %v309_v29 = vpop.permute.xlu0 %308 }
  0x9f   : >> { %v2015_v30 = vsel %vm536_vm7, %v533_v10, %v317_v24  ;;  %v2018_v36 = vsel %vm536_vm7, %v529_v19, %v309_v29 }
  0xa2   : >> { %v354_v7 = vpop.permute.xlu1 %353  ;;  %v346_v42 = vpop.permute.xlu0 %345 }
  0xa3   : >> { %v550_v11 = vsel %vm545_vm8, %v541_v41, %v354_v7  ;;  %v546_v38 = vsel %vm545_vm8, %v537_v46, %v346_v42 }
  0xa6   : >> { %v247_v13 = vpop.permute.xlu1 %246  ;;  %v239_v51 = vpop.permute.xlu0 %238 }
  0xa7   : >> { %v525_v28 = vsel %vm518_vm5, %v1644_v14, %v247_v13  ;;  %v521_v25 = vsel %vm518_vm5, %v1632_v8, %v239_v51 }
  0xaa   : >> { %v356_v55 = vpop.permute.xlu1 %355  ;;  %v348_v12 = vpop.permute.xlu0 %347 }
  0xab   : >> { %v551_v29 = vsel %vm545_vm8, %v2015_v30, %v356_v55  ;;  %v547_v7 = vsel %vm545_vm8, %v2018_v36, %v348_v12 }
  0xae   : >> { %v393_v16 = vpop.permute.xlu1 %392  ;;  %v385_v59 = vpop.permute.xlu0 %384 }
  0xaf   : >> { %v559_v52 = vsel %vm554_vm9, %v550_v11, %v393_v16  ;;  %v555_v57 = vsel %vm554_vm9, %v546_v38, %v385_v59 }
  0xb2   : >> { %v2020_v61 = vpop.permute.xlu1 %248  ;;  %v2022_v45 = vpop.permute.xlu0 %240 }
  0xb3   : >> { %v522_v11 = vsel %vm518_vm5, %v1823_v49, %v2022_v45 }
  0xb6   : >> { %v287_v32 = vpop.permute.xlu1 %286  ;;  %v279_v44 = vpop.permute.xlu0 %278 }
  0xb7   : >> { %v2029_v21 = vsel %vm527_vm6, %v525_v28, %v287_v32  ;;  %v2032_v53 = vsel %vm527_vm6, %v521_v25, %v279_v44 }
  0xba   : >> { %v395_v31 = vpop.permute.xlu1 %394  ;;  %v387_v50 = vpop.permute.xlu0 %386 }
  0xbb   : >> { %v560_v42 = vsel %vm554_vm9, %v551_v29, %v395_v31  ;;  %v556_v13 = vsel %vm554_vm9, %v547_v7, %v387_v50 }
  0xbe   : >> { %v425_v37 = vpop.permute.xlu1 %424  ;;  %v417_v22 = vpop.permute.xlu0 %416 }
  0xbf   : >> { %v568_v62 = vsel %vm563_vm10, %v559_v52, %v425_v37  ;;  %v564_v43 = vsel %vm563_vm10, %v555_v57, %v417_v22 }
  0xc2   : >> { %v2034_v56 = vpop.permute.xlu1 %288  ;;  %v2036_v27 = vpop.permute.xlu0 %280 }
  0xc6   : >> { %v319_v14 = vpop.permute.xlu1 %318  ;;  %v311_v23 = vpop.permute.xlu0 %310 }
  0xca   : >> { %v427_v60 = vpop.permute.xlu1 %426  ;;  %v419_v8 = vpop.permute.xlu0 %418 }
  0xcb   : >> { %v569_v51 = vsel %vm563_vm10, %v560_v42, %v427_v60  ;;  %v565_v16 = vsel %vm563_vm10, %v556_v13, %v419_v8  ;;  %v543_v8 = vsel %vm536_vm7, %v2029_v21, %v319_v14  ;;  %v531_v14 = vsel %vm527_vm6, %v522_v11, %v2036_v27 }
  0xce   : >> { %v464_v33 = vpop.permute.xlu1 %463  ;;  %v456_v54 = vpop.permute.xlu0 %455 }
  0xcf   : >> { %v577_v17 = vsel %vm572_vm11, %v568_v62, %v464_v33  ;;  %v573_v58 = vsel %vm572_vm11, %v564_v43, %v456_v54  ;;  %v539_v33 = vsel %vm536_vm7, %v2032_v53, %v311_v23 }
  0xd2   : >> { %v2038_v34 = vpop.permute.xlu1 %320  ;;  %v2040_v35 = vpop.permute.xlu0 %312 }
  0xd3   : >> { %v540_v49 = vsel %vm536_vm7, %v531_v14, %v2040_v35 }
  0xd6   : >> { %v358_v39 = vpop.permute.xlu1 %357  ;;  %v350_v40 = vpop.permute.xlu0 %349 }
  0xd7   : >> { %v552_v46 = vsel %vm545_vm8, %v543_v8, %v358_v39 }
  0xda   : >> { %v466_v47 = vpop.permute.xlu1 %465  ;;  %v458_v48 = vpop.permute.xlu0 %457 }
  0xdb   : >> { %v578_v59 = vsel %vm572_vm11, %v569_v51, %v466_v47  ;;  %v574_v28 = vsel %vm572_vm11, %v565_v16, %v458_v48  ;;  %v548_v47 = vsel %vm545_vm8, %v539_v33, %v350_v40  ;;  %v526_v48 = vsel %vm518_vm5, %v1820_v18, %v2020_v61 }
  0xdc   : >> { %v535_v53 = vsel %vm527_vm6, %v526_v48, %v2034_v56 }
  0xdd   : >> { %v544_v18 = vsel %vm536_vm7, %v535_v53, %v2038_v34 }
  0xde   : >> { %v503_v9 = vpop.permute.xlu1 %502  ;;  %v495_v15 = vpop.permute.xlu0 %494 }
  0xdf   : >> { %v582_v63 = vsel %vm581_vm12, %v573_v58, %v495_v15  ;;  %v586_v10 = vsel %vm581_vm12, %v577_v17, %v503_v9 }
  0xe0   : >> { %1391 = vmatprep.mubr.msk.f32.mxu0 %vm590_vm13, %v582_v63  ;;  %1397 = vmatprep.mubr.msk.f32.mxu1 %vm590_vm13, %v586_v10 }
  0xe2   : >> { %v360_v19 = vpop.permute.xlu1 %359  ;;  %v352_v20 = vpop.permute.xlu0 %351 }
  0xe3   : >> { %v553_v56 = vsel %vm545_vm8, %v544_v18, %v360_v19  ;;  %v549_v27 = vsel %vm545_vm8, %v540_v49, %v352_v20 }
  0xe6   : >> { %v397_v26 = vpop.permute.xlu1 %396  ;;  %v389_v24 = vpop.permute.xlu0 %388 }
  0xe7   : >> { %v561_v38 = vsel %vm554_vm9, %v552_v46, %v397_v26  ;;  %v557_v21 = vsel %vm554_vm9, %v548_v47, %v389_v24 }
  0xea   : >> { %v505_v25 = vpop.permute.xlu1 %504  ;;  %v497_v32 = vpop.permute.xlu0 %496 }
  0xeb   : >> { %v587_v44 = vsel %vm581_vm12, %v578_v59, %v505_v25  ;;  %v583_v30 = vsel %vm581_vm12, %v574_v28, %v497_v32 }
  0xec   : >> { %1392 = vmatmul.mubr.msk.f32.vlgmr.msra.gmra.mrb[0].mxu0 %vm590_vm13, %v583_v30  ;;  %1398 = vmatmul.mubr.msk.f32.vlgmr.msra.gmra.mrb[0].mxu1 %vm590_vm13, %v587_v44 }
  0xee   : >> { %v399_v36 = vpop.permute.xlu1 %398  ;;  %v391_v55 = vpop.permute.xlu0 %390 }
  0xef   : >> { %v562_v43 = vsel %vm554_vm9, %v553_v56, %v399_v36  ;;  %v558_v34 = vsel %vm554_vm9, %v549_v27, %v391_v55 }
  0xf2   : >> { %v429_v12 = vpop.permute.xlu1 %428  ;;  %v421_v31 = vpop.permute.xlu0 %420 }
  0xf3   : >> { %v570_v23 = vsel %vm563_vm10, %v561_v38, %v429_v12  ;;  %v566_v39 = vsel %vm563_vm10, %v557_v21, %v421_v31 }
  0xf6   : >> { %v431_v50 = vpop.permute.xlu1 %430  ;;  %v423_v37 = vpop.permute.xlu0 %422 }
  0xf7   : >> { %v571_v35 = vsel %vm563_vm10, %v562_v43, %v431_v50  ;;  %v567_v17 = vsel %vm563_vm10, %v558_v34, %v423_v37 }
  0xfa   : >> { %v468_v22 = vpop.permute.xlu1 %467  ;;  %v460_v60 = vpop.permute.xlu0 %459 }
  0xfb   : >> { %v579_v61 = vsel %vm572_vm11, %v570_v23, %v468_v22  ;;  %v575_v45 = vsel %vm572_vm11, %v566_v39, %v460_v60 }
  0xfe   : >> { %v470_v54 = vpop.permute.xlu1 %469  ;;  %v462_v41 = vpop.permute.xlu0 %461 }
  0xff   : >> { %v580_v58 = vsel %vm572_vm11, %v571_v35, %v470_v54  ;;  %v576_v9 = vsel %vm572_vm11, %v567_v17, %v462_v41 }
 0x102   : >> { %v507_v40 = vpop.permute.xlu1 %506  ;;  %v499_v52 = vpop.permute.xlu0 %498 }
 0x103   : >> { %v588_v57 = vsel %vm581_vm12, %v579_v61, %v507_v40  ;;  %v584_v62 = vsel %vm581_vm12, %v575_v45, %v499_v52 }
 0x104   : >> { %1394 = vmatprep.mubr.msk.f32.mxu0 %vm590_vm13, %v584_v62  ;;  %1400 = vmatprep.mubr.msk.f32.mxu1 %vm590_vm13, %v588_v57 }
 0x106   : >> { %v509_v15 = vpop.permute.xlu1 %508  ;;  %v501_v63 = vpop.permute.xlu0 %500 }
 0x107   : >> { %v589_v10 = vsel %vm581_vm12, %v580_v58, %v509_v15  ;;  %v585_v19 = vsel %vm581_vm12, %v576_v9, %v501_v63 }
 0x108   : >> { %1395 = vmatmul.mubr.msk.f32.gmra.mrb[2].mxu0 %vm590_vm13, %v585_v19  ;;  %1401 = vmatmul.mubr.msk.f32.gmra.mrb[2].mxu1 %vm590_vm13, %v589_v10 }
 0x1bf   : >> { %v1393_v20 = vpop.f32.mrb[0].mxu0  ;;  %v1399_v26 = vpop.f32.mrb[0].mxu1 }
 0x1c0   : >> { %v725_v24 = vmax.f32 %v1393_v20, 0.0  ;;  %v729_v29 = vmax.f32 %v1399_v26, 0.0  ;;  %v685_v7 = vpop.f32.mrb[1].mxu0  ;;  %v705_v42 = vpop.f32.mrb[1].mxu1 }
 0x1c1   : >> { %v724_v13 = vmax.f32 %v685_v7, 0.0  ;;  %v728_v51 = vmax.f32 %v705_v42, 0.0 }
 0x1c2   : >> { %734 = vst.msk [vmem:[%s732_s21 + $0x8] sm:$0xff] %vm545_vm8, %v725_v24  ;;  %738 = vst.msk [vmem:[%s732_s21 + $0x28] sm:$0xff] %vm545_vm8, %v729_v29 }
 0x1c3   : >> { %733 = vst.msk [vmem:[%s732_s21] sm:$0xff] %vm545_vm8, %v724_v13  ;;  %737 = vst.msk [vmem:[%s732_s21 + $0x20] sm:$0xff] %vm545_vm8, %v728_v51 }
 0x1da   : > { %182 = sbr.rel (!%p180_p4) target bundleno = 18 (0x12), region = 80 }
 0x1db   : >> { %v1396_v16 = vpop.f32.mrb[2].mxu0  ;;  %v1402_v59 = vpop.f32.mrb[2].mxu1 }
 0x1dc   : >> { %v727_v28 = vmax.f32 %v1396_v16, 0.0  ;;  %v731_v25 = vmax.f32 %v1402_v59, 0.0  ;;  %v695_v32 = vpop.f32.mrb[3].mxu0  ;;  %v715_v44 = vpop.f32.mrb[3].mxu1 }
 0x1dd   : >> { %v726_v30 = vmax.f32 %v695_v32, 0.0  ;;  %v730_v36 = vmax.f32 %v715_v44, 0.0 }
 0x1de   : >> { %736 = vst.msk [vmem:[%s732_s21 + $0x18] sm:$0xff] %vm545_vm8, %v727_v28 }
 0x1df   : >> { %741 = vst.msk [vmem:[%s732_s21 + $0x38] sm:$0x3] %vm740_vm14, %v731_v25 }
 0x1e0   : >> { %735 = vst.msk [vmem:[%s732_s21 + $0x10] sm:$0xff] %vm545_vm8, %v726_v30  ;;  %739 = vst.msk [vmem:[%s732_s21 + $0x30] sm:$0xff] %vm545_vm8, %v730_v36 }
 0x1e1 LB: >> { %s1354_s23 = sshll.u32 %s1522_s22, 6  ;;  %s1533_s25 = smov 12   ;;  %v1441_v10 = vpack.c.bf16 %v1590_v3, %v1585_v2  ;;  %v1539_v20 = vmov 0.0|0.0   ;;  %v1444_v29 = vpack.c.bf16 %v1600_v5, %v1595_v4  ;;  %vm1540_vm15 = vmmov 0   ;;  %s1522_s22 = sphi %s2124_s22, %s747_s22  }
 0x1e2   : >> { %s2130_s24 = scalar_lea.vmem [#allocation2], %s1354_s23  ;;  %s1534_s26 = smov 4   ;;  %1440 = vmatprep.subr.bf16.mxu0 %v1539_v20  ;;  %v1541_v51 = vmov 0.0   ;;  %1448 = vmatprep.subr.bf16.mxu1 %v1539_v20  ;;  %vm1144_vm2 = vcmask 1043456   ;;  %vm1074_vm3 = vcmask 97280   ;;  %vm1082_vm4 = vcmask 130048  }
 0x1e3   : >> { %s1535_s27 = smov 16   ;;  %s1536_s28 = smov 8   ;;  %1442 = vmatpush3.bf16.msra.mxu0 %v1441_v10  ;;  %1413 = vmatprep.mubr.msk.f32.mxu0 %vm1540_vm15, %v1541_v51  ;;  %vm1090_vm5 = vcmask 162816   ;;  %vm1098_vm6 = vcmask 195584   ;;  %vm1106_vm7 = vcmask 228352   ;;  %vm1114_vm9 = vcmask 261120  }
 0x1e4   : >> { %s1537_s29 = smov 20   ;;  %s1538_s30 = smov 24   ;;  %1443 = vmatprep.subr.bf16.mxu0 %v1539_v20  ;;  %1425 = vmatprep.mubr.msk.f32.mxu1 %vm1540_vm15, %v1541_v51  ;;  %vm1122_vm10 = vcmask 293888  }
 0x1e5   : >> { %s1542_s4 = smov 28   ;;  %1451 = vmatpush3.bf16.msra.mxu1 %v1441_v10  ;;  %s1543_s5 = smov 32  }
 0x1e6   : >> { %1449 = vmatprep.subr.bf16.mxu1 %v1539_v20  ;;  %s1255_s6 = smul.u32 56, %s1522_s22  ;;  %s747_s22 = sadd.s32 1, %s1522_s22  }
 0x1e7   : >> { %v758_v55 = vld [vmem:[%s2130_s24 + $0x40] sm:$0xff]  ;;  %v2137_v0 = vld [vmem:[%s2130_s24 + $0x8] sm:$0xff]  ;;  %v2156_v46 = vld [vmem:[%s2130_s24 + $0x10] sm:$0xff]  ;;  %1445 = vmatpush3.bf16.msra.mxu0 %v1444_v29  ;;  %p744_p5 = scmp.ge.s32.totalorder %s747_s22, 56  }
 0x1e8   : >> { %v2134_v12 = vld [vmem:[%s2130_s24] sm:$0xff]  ;;  %863 = vrot.lane.b32.xlu1 %v758_v55, %s1533_s25  ;;  %v784_v31 = vrot.slane %v2137_v0, 1  ;;  %v2143_v50 = vld [vmem:[%s2130_s24 + $0x48] sm:$0xff]  ;;  %v885_v37 = vrot.slane %v758_v55, 1  ;;  %v821_v33 = vrot.slane %v2137_v0, 2  ;;  %v786_v21 = vrot.slane %v2156_v46, 1  ;;  %1411 = vmatprep.subr.mxu0 %v1541_v51  ;;  %s1256_s7 = scalar_lea.vmem %s1615_s8, %s1255_s6 }
 0x1e9   : >> { %v783_v1 = vrot.slane %v2134_v12, 1  ;;  %v820_v22 = vrot.slane %v2134_v12, 2  ;;  %v2147_v60 = vld [vmem:[%s2130_s24 + $0x20] sm:$0xff]  ;;  %v886_v8 = vrot.slane %v2143_v50, 1  ;;  %v2152_v54 = vld [vmem:[%s2130_s24 + $0x28] sm:$0xff]  ;;  %v823_v14 = vrot.slane %v2156_v46, 2  ;;  %1452 = vmatpush3.bf16.msra.mxu1 %v1444_v29 }
 0x1ea   : >> { %v790_v41 = vrot.slane %v2147_v60, 1  ;;  %v792_v48 = vrot.slane %v2152_v54, 1  ;;  %v787_v23 = vsel %vm218_vm0, %v784_v31, %v786_v21  ;;  %v921_v39 = vrot.slane %v758_v55, 2  ;;  %v766_v52 = vld [vmem:[%s2130_s24 + $0x80] sm:$0xff]  ;;  %v2189_v56 = vld [vmem:[%s2130_s24 + $0x50] sm:$0xff]  ;;  %v2203_v43 = vld [vmem:[%s2130_s24 + $0x88] sm:$0xff]  ;;  %1450 = vmatprep.subr.mxu1 %v1541_v51 }
 0x1eb   : >> { %v785_v47 = vsel %vm218_vm0, %v783_v1, %v784_v31  ;;  %v887_v11 = vsel %vm218_vm0, %v885_v37, %v886_v8  ;;  %v822_v38 = vsel %vm258_vm1, %v820_v22, %v821_v33  ;;  %v922_v18 = vrot.slane %v2143_v50, 2  ;;  %v2199_v57 = vld [vmem:[%s2130_s24 + $0x60] sm:$0xff]  ;;  %v2214_v15 = vld [vmem:[%s2130_s24 + $0x68] sm:$0xff]  ;;  %v2217_v63 = vld [vmem:[%s2130_s24 + $0x30] sm:$0xff]  ;;  %1412 = vmatpush3.msk.msra.mxu0 %vm1144_vm2, %v1605_v6 }
 0x1ec   : >> { %798 = vrot.lane.b32.xlu0 %v785_v47, %s1534_s26  ;;  %900 = vrot.lane.b32.xlu1 %v887_v11, %s1535_s27  ;;  %v793_v53 = vsel %vm218_vm0, %v790_v41, %v792_v48  ;;  %v824_v49 = vsel %vm258_vm1, %v821_v33, %v823_v14  ;;  %v827_v45 = vrot.slane %v2147_v60, 2  ;;  %v829_v40 = vrot.slane %v2152_v54, 2  ;;  %v2236_v13 = vld [vmem:[%s2130_s24 + $0x18] sm:$0xff]  ;;  %v2300_v11 = vld [vmem:[%s2130_s24 + $0x70] sm:$0xff] }
 0x1ed   : >> { %v923_v61 = vsel %vm258_vm1, %v921_v39, %v922_v18  ;;  %v888_v62 = vrot.slane %v2189_v56, 1  ;;  %v986_v34 = vrot.slane %v766_v52, 1  ;;  %v987_v35 = vrot.slane %v2203_v43, 1  ;;  %1453 = vmatpush3.msk.msra.mxu1 %vm1144_vm2, %v1605_v6  ;;  %v769_v29 = vld [vmem:[%s2130_s24 + $0x98] sm:$0xff] }
 0x1ee   : >> { %v830_v27 = vsel %vm258_vm1, %v827_v45, %v829_v40  ;;  %v1022_v58 = vrot.slane %v766_v52, 2  ;;  %v1023_v9 = vrot.slane %v2203_v43, 2  ;;  %v892_v19 = vrot.slane %v2199_v57, 1 }
 0x1ef   : >> { %v889_v17 = vsel %vm218_vm0, %v886_v8, %v888_v62  ;;  %v988_v26 = vsel %vm218_vm0, %v986_v34, %v987_v35  ;;  %v894_v24 = vrot.slane %v2214_v15, 1  ;;  %v794_v42 = vrot.slane %v2217_v63, 1  ;;  %v2286_v8 = vld [vmem:[%s2130_s24 + $0xa0] sm:$0xff] }
 0x1f0   : >> { %835 = vrot.lane.b32.xlu0 %v822_v38, %s1536_s28  ;;  %806 = vrot.lane.b32.xlu1 %v793_v53, %s1534_s26  ;;  %v1024_v7 = vsel %vm258_vm1, %v1022_v58, %v1023_v9  ;;  %v788_v59 = vrot.slane %v2236_v13, 1  ;;  %v928_v25 = vrot.slane %v2199_v57, 2  ;;  %v930_v32 = vrot.slane %v2214_v15, 2 }
 0x1f1   : >> { %v895_v16 = vsel %vm218_vm0, %v892_v19, %v894_v24  ;;  %v795_v28 = vsel %vm218_vm0, %v792_v48, %v794_v42  ;;  %v924_v30 = vrot.slane %v2189_v56, 2  ;;  %v831_v55 = vrot.slane %v2217_v63, 2  ;;  %v2297_v48 = vld [vmem:[%s2130_s24 + $0x90] sm:$0xff] }
 0x1f2   : >> { %v789_v44 = vsel %vm218_vm0, %v786_v21, %v788_v59  ;;  %v931_v36 = vsel %vm258_vm1, %v928_v25, %v930_v32  ;;  %v825_v31 = vrot.slane %v2236_v13, 2  ;;  %v993_v33 = vrot.slane %v2286_v8, 1 }
 0x1f3   : >> { %v925_v1 = vsel %vm258_vm1, %v922_v18, %v924_v30  ;;  %v832_v37 = vsel %vm258_vm1, %v829_v40, %v831_v55  ;;  %v989_v38 = vrot.slane %v2297_v48, 1  ;;  %v896_v53 = vrot.slane %v2300_v11, 1  ;;  %v757_v40 = vld [vmem:[%s2130_s24 + $0x38] sm:$0x3] }
 0x1f4   : >> { %800 = vrot.lane.b32.xlu0 %v787_v23, %s1534_s26  ;;  %837 = vrot.lane.b32.xlu1 %v824_v49, %s1536_s28  ;;  %v826_v22 = vsel %vm258_vm1, %v823_v14, %v825_v31  ;;  %v2312_v14 = vld [vmem:[%s2130_s24 + $0x58] sm:$0xff]  ;;  %v1029_v49 = vrot.slane %v2286_v8, 2  ;;  %v791_v58 = vsel %vm218_vm0, %v788_v59, %v790_v41  ;;  %v828_v41 = vsel %vm258_vm1, %v825_v31, %v827_v45 }
 0x1f5   : >> { %v990_v23 = vsel %vm218_vm0, %v987_v35, %v989_v38  ;;  %v890_v39 = vrot.slane %v2312_v14, 1  ;;  %v897_v18 = vsel %vm218_vm0, %v894_v24, %v896_v53  ;;  %v796_v35 = vrot.slane %v757_v40, 1 }
 0x1f8   : >> { %936 = vrot.lane.b32.xlu0 %v923_v61, %s1537_s29  ;;  %964 = vrot.lane.b32.xlu1 %v766_v52, %s1538_s30  ;;  %v891_v52 = vsel %vm218_vm0, %v888_v62, %v890_v39  ;;  %v932_v62 = vrot.slane %v2300_v11, 2 }
 0x1fc   : >> { %843 = vrot.lane.b32.xlu0 %v830_v27, %s1536_s28  ;;  %871 = vrot.lane.b32.xlu1 %v2199_v57, %s1533_s25  ;;  %v1025_v27 = vrot.slane %v2297_v48, 2 }
 0x200   : >> { %865 = vrot.lane.b32.xlu0 %v2143_v50, %s1533_s25  ;;  %902 = vrot.lane.b32.xlu1 %v889_v17, %s1535_s27  ;;  %v2289_v50 = vld [vmem:[%s2130_s24 + $0xa8] sm:$0xff]  ;;  %v1026_v17 = vsel %vm258_vm1, %v1023_v9, %v1025_v27  ;;  %v933_v9 = vsel %vm258_vm1, %v930_v32, %v932_v62 }
 0x201   : >> { %v995_v47 = vrot.slane %v2289_v50, 1  ;;  %v1031_v61 = vrot.slane %v2289_v50, 2 }
 0x203   : >> { %v996_v21 = vsel %vm218_vm0, %v993_v33, %v995_v47  ;;  %v1032_v34 = vsel %vm258_vm1, %v1029_v49, %v1031_v61 }
 0x204   : >> { %1001 = vrot.lane.b32.xlu0 %v988_v26, %s1542_s4  ;;  %1037 = vrot.lane.b32.xlu1 %v1024_v7, %s1543_s5  ;;  %v772_v26 = vld [vmem:[%s2130_s24 + $0xb0] sm:$0xff]  ;;  %v765_v7 = vld [vmem:[%s2130_s24 + $0x78] sm:$0x3] }
 0x205   : >> { %v997_v24 = vrot.slane %v772_v26, 1  ;;  %v898_v59 = vrot.slane %v765_v7, 1  ;;  %v1033_v32 = vrot.slane %v772_v26, 2 }
 0x208   : >> { %908 = vrot.lane.b32.xlu0 %v895_v16, %s1535_s27  ;;  %808 = vrot.lane.b32.xlu1 %v795_v28, %s1534_s26  ;;  %v998_v16 = vsel %vm218_vm0, %v995_v47, %v997_v24  ;;  %v899_v28 = vsel %vm218_vm0, %v896_v53, %v898_v59 }
 0x20c   : >> { %802 = vrot.lane.b32.xlu0 %v789_v44, %s1534_s26  ;;  %944 = vrot.lane.b32.xlu1 %v931_v36, %s1537_s29  ;;  %v893_v44 = vsel %vm218_vm0, %v890_v39, %v892_v19  ;;  %v1034_v36 = vsel %vm258_vm1, %v1031_v61, %v1033_v32 }
 0x210   : >> { %938 = vrot.lane.b32.xlu0 %v925_v1, %s1537_s29  ;;  %845 = vrot.lane.b32.xlu1 %v832_v37, %s1536_s28  ;;  %v773_v37 = vld [vmem:[%s2130_s24 + $0xb8] sm:$0x3] }
 0x211   : >> { %v1035_v47 = vrot.slane %v773_v37, 2 }
 0x213   : >> { %v1036_v57 = vsel %vm258_vm1, %v1033_v32, %v1035_v47 }
 0x214   : >> { %839 = vrot.lane.b32.xlu0 %v826_v22, %s1536_s28  ;;  %972 = vrot.lane.b32.xlu1 %v2286_v8, %s1538_s30  ;;  %v999_v22 = vrot.slane %v773_v37, 1 }
 0x218   : >> { %966 = vrot.lane.b32.xlu0 %v2203_v43, %s1538_s30  ;;  %873 = vrot.lane.b32.xlu1 %v2214_v15, %s1533_s25  ;;  %v926_v43 = vrot.slane %v2312_v14, 2  ;;  %v833_v15 = vrot.slane %v757_v40, 2 }
 0x21a   : >> { %v927_v10 = vsel %vm258_vm1, %v924_v30, %v926_v43  ;;  %v834_v20 = vsel %vm258_vm1, %v831_v55, %v833_v15  ;;  %v1027_v30 = vrot.slane %v769_v29, 2  ;;  %v934_v55 = vrot.slane %v765_v7, 2 }
 0x21b   : >> { %v929_v19 = vsel %vm258_vm1, %v926_v43, %v928_v25 }
 0x21c   : >> { %867 = vrot.lane.b32.xlu0 %v2189_v56, %s1533_s25  ;;  %1009 = vrot.lane.b32.xlu1 %v996_v21, %s1542_s4  ;;  %v797_v56 = vsel %vm218_vm0, %v794_v42, %v796_v35  ;;  %v991_v42 = vrot.slane %v769_v29, 1  ;;  %v1028_v1 = vsel %vm258_vm1, %v1025_v27, %v1027_v30  ;;  %v935_v31 = vsel %vm258_vm1, %v932_v62, %v934_v55 }
 0x21d   : >> { %v1030_v25 = vsel %vm258_vm1, %v1027_v30, %v1029_v49 }
 0x21e   : >> { %v992_v45 = vsel %vm218_vm0, %v989_v38, %v991_v42 }
 0x220   : >> { %1003 = vrot.lane.b32.xlu0 %v990_v23, %s1542_s4  ;;  %910 = vrot.lane.b32.xlu1 %v897_v18, %s1535_s27 }
 0x224   : >> { %904 = vrot.lane.b32.xlu0 %v891_v52, %s1535_s27  ;;  %1045 = vrot.lane.b32.xlu1 %v1032_v34, %s1543_s5 }
 0x228   : >> { %1039 = vrot.lane.b32.xlu0 %v1026_v17, %s1543_s5  ;;  %810 = vrot.lane.b32.xlu1 %v797_v56, %s1534_s26 }
 0x22c   : >> { %804 = vrot.lane.b32.xlu0 %v791_v58, %s1534_s26  ;;  %946 = vrot.lane.b32.xlu1 %v933_v9, %s1537_s29 }
 0x230   : >> { %940 = vrot.lane.b32.xlu0 %v927_v10, %s1537_s29  ;;  %847 = vrot.lane.b32.xlu1 %v834_v20, %s1536_s28 }
 0x234   : >> { %841 = vrot.lane.b32.xlu0 %v828_v41, %s1536_s28  ;;  %974 = vrot.lane.b32.xlu1 %v2289_v50, %s1538_s30  ;;  %v1000_v50 = vsel %vm218_vm0, %v997_v24, %v999_v22 }
 0x238   : >> { %968 = vrot.lane.b32.xlu0 %v2297_v48, %s1538_s30  ;;  %875 = vrot.lane.b32.xlu1 %v2300_v11, %s1533_s25  ;;  %v994_v48 = vsel %vm218_vm0, %v991_v42, %v993_v33 }
 0x23c   : >> { %869 = vrot.lane.b32.xlu0 %v2312_v14, %s1533_s25  ;;  %1011 = vrot.lane.b32.xlu1 %v998_v16, %s1542_s4 }
 0x240   : >> { %1005 = vrot.lane.b32.xlu0 %v992_v45, %s1542_s4  ;;  %912 = vrot.lane.b32.xlu1 %v899_v28, %s1535_s27 }
 0x244   : >> { %906 = vrot.lane.b32.xlu0 %v893_v44, %s1535_s27  ;;  %1047 = vrot.lane.b32.xlu1 %v1034_v36, %s1543_s5 }
 0x248   : >> { %1041 = vrot.lane.b32.xlu0 %v1028_v1, %s1543_s5  ;;  %948 = vrot.lane.b32.xlu1 %v935_v31, %s1537_s29 }
 0x24c   : >> { %942 = vrot.lane.b32.xlu0 %v929_v19, %s1537_s29  ;;  %976 = vrot.lane.b32.xlu1 %v772_v26, %s1538_s30 }
 0x250   : >> { %970 = vrot.lane.b32.xlu0 %v769_v29, %s1538_s30  ;;  %1013 = vrot.lane.b32.xlu1 %v1000_v50, %s1542_s4 }
 0x254   : >> { %1007 = vrot.lane.b32.xlu0 %v994_v48, %s1542_s4  ;;  %1049 = vrot.lane.b32.xlu1 %v1036_v57, %s1543_s5 }
 0x258   : >> { %1043 = vrot.lane.b32.xlu0 %v1030_v25, %s1543_s5 }
 0x25a   : >> { %v864_v11 = vpop.permute.xlu1 %863 }
 0x25e   : >> { %v799_v38 = vpop.permute.xlu0 %798  ;;  %v901_v21 = vpop.permute.xlu1 %900 }
 0x25f   : >> { %v1059_v18 = vsel %vm545_vm8, %v2134_v12, %v799_v38 }
 0x262   : >> { %v836_v53 = vpop.permute.xlu0 %835  ;;  %v807_v14 = vpop.permute.xlu1 %806 }
 0x263   : >> { %v1067_v40 = vsel %vm581_vm12, %v1059_v18, %v836_v53  ;;  %v1063_v59 = vsel %vm545_vm8, %v2147_v60, %v807_v14 }
 0x264   : >> { %v1075_v49 = vsel %vm1074_vm3, %v1067_v40, %v864_v11 }
 0x265   : >> { %v1083_v27 = vsel %vm1082_vm4, %v1075_v49, %v901_v21 }
 0x266   : >> { %v801_v23 = vpop.permute.xlu0 %800  ;;  %v838_v39 = vpop.permute.xlu1 %837 }
 0x267   : >> { %v1060_v28 = vsel %vm545_vm8, %v2137_v0, %v801_v23 }
 0x268   : >> { %v1068_v30 = vsel %vm581_vm12, %v1060_v28, %v838_v39 }
 0x26a   : >> { %v937_v33 = vpop.permute.xlu0 %936  ;;  %v965_v61 = vpop.permute.xlu1 %964 }
 0x26b   : >> { %v1091_v35 = vsel %vm1090_vm5, %v1083_v27, %v937_v33 }
 0x26c   : >> { %v1099_v12 = vsel %vm1098_vm6, %v1091_v35, %v965_v61 }
 0x26e   : >> { %v844_v8 = vpop.permute.xlu0 %843  ;;  %v872_v52 = vpop.permute.xlu1 %871 }
 0x26f   : >> { %v1071_v32 = vsel %vm581_vm12, %v1063_v59, %v844_v8 }
 0x270   : >> { %v1079_v36 = vsel %vm1074_vm3, %v1071_v32, %v872_v52 }
 0x272   : >> { %v866_v34 = vpop.permute.xlu0 %865  ;;  %v903_v17 = vpop.permute.xlu1 %902 }
 0x273   : >> { %v1076_v1 = vsel %vm1074_vm3, %v1068_v30, %v866_v34 }
 0x274   : >> { %v1084_v22 = vsel %vm1082_vm4, %v1076_v1, %v903_v17 }
 0x276   : >> { %v1002_v56 = vpop.permute.xlu0 %1001  ;;  %v1038_v58 = vpop.permute.xlu1 %1037 }
 0x277   : >> { %v1107_v62 = vsel %vm1106_vm7, %v1099_v12, %v1002_v56 }
 0x278   : >> { %v1115_v43 = vsel %vm1114_vm9, %v1107_v62, %v1038_v58 }
 0x279   : >> { %1414 = vmatmul.mubr.msk.f32.vlgmr.msra.gmra.mrb[0].mxu0 %vm1122_vm10, %v1115_v43 }
 0x27a   : >> { %v909_v9 = vpop.permute.xlu0 %908  ;;  %1416 = vmatprep.mubr.msk.f32.mxu0 %vm1540_vm15, %v1541_v51  ;;  %v809_v15 = vpop.permute.xlu1 %808 }
 0x27b   : >> { %v1087_v31 = vsel %vm1082_vm4, %v1079_v36, %v909_v9  ;;  %v1064_v52 = vsel %vm545_vm8, %v2152_v54, %v809_v15 }
 0x27e   : >> { %v803_v10 = vpop.permute.xlu0 %802  ;;  %v945_v20 = vpop.permute.xlu1 %944 }
 0x27f   : >> { %v1095_v37 = vsel %vm1090_vm5, %v1087_v31, %v945_v20  ;;  %v1061_v12 = vsel %vm545_vm8, %v2156_v46, %v803_v10 }
 0x282   : >> { %v939_v41 = vpop.permute.xlu0 %938  ;;  %v846_v26 = vpop.permute.xlu1 %845 }
 0x283   : >> { %v1092_v47 = vsel %vm1090_vm5, %v1084_v22, %v939_v41  ;;  %v1072_v27 = vsel %vm581_vm12, %v1064_v52, %v846_v26 }
 0x286   : >> { %v840_v24 = vpop.permute.xlu0 %839  ;;  %v973_v29 = vpop.permute.xlu1 %972 }
 0x287   : >> { %v1103_v60 = vsel %vm1098_vm6, %v1095_v37, %v973_v29  ;;  %v1069_v62 = vsel %vm581_vm12, %v1061_v12, %v840_v24 }
 0x28a   : >> { %v967_v7 = vpop.permute.xlu0 %966  ;;  %v874_v42 = vpop.permute.xlu1 %873 }
 0x28b   : >> { %v1100_v57 = vsel %vm1098_vm6, %v1092_v47, %v967_v7  ;;  %v1080_v35 = vsel %vm1074_vm3, %v1072_v27, %v874_v42 }
 0x28e   : >> { %v868_v16 = vpop.permute.xlu0 %867  ;;  %v1010_v45 = vpop.permute.xlu1 %1009 }
 0x28f   : >> { %v1111_v0 = vsel %vm1106_vm7, %v1103_v60, %v1010_v45  ;;  %v1077_v43 = vsel %vm1074_vm3, %v1069_v62, %v868_v16 }
 0x292   : >> { %v1004_v44 = vpop.permute.xlu0 %1003  ;;  %v911_v55 = vpop.permute.xlu1 %910 }
 0x293   : >> { %v1108_v25 = vsel %vm1106_vm7, %v1100_v57, %v1004_v44  ;;  %v1088_v56 = vsel %vm1082_vm4, %v1080_v35, %v911_v55 }
 0x296   : >> { %v905_v19 = vpop.permute.xlu0 %904  ;;  %v1046_v50 = vpop.permute.xlu1 %1045 }
 0x297   : >> { %v1119_v48 = vsel %vm1114_vm9, %v1111_v0, %v1046_v50  ;;  %v1085_v15 = vsel %vm1082_vm4, %v1077_v43, %v905_v19 }
 0x298   : >> { %1426 = vmatmul.mubr.msk.f32.vlgmr.msra.gmra.mrb[0].mxu1 %vm1122_vm10, %v1119_v48 }
 0x299   : >> { %1428 = vmatprep.mubr.msk.f32.mxu1 %vm1540_vm15, %v1541_v51 }
 0x29a   : >> { %v1040_v11 = vpop.permute.xlu0 %1039  ;;  %v811_v21 = vpop.permute.xlu1 %810 }
 0x29b   : >> { %v1116_v38 = vsel %vm1114_vm9, %v1108_v25, %v1040_v11  ;;  %v1065_v45 = vsel %vm545_vm8, %v2217_v63, %v811_v21 }
 0x29c   : >> { %1417 = vmatmul.mubr.msk.f32.gmra.mrb[2].mxu0 %vm1122_vm10, %v1116_v38 }
 0x29d   : >> { %1419 = vmatprep.mubr.msk.f32.mxu0 %vm1540_vm15, %v1541_v51 }
 0x29e   : >> { %v805_v53 = vpop.permute.xlu0 %804  ;;  %v947_v14 = vpop.permute.xlu1 %946 }
 0x29f   : >> { %v1096_v58 = vsel %vm1090_vm5, %v1088_v56, %v947_v14  ;;  %v1062_v36 = vsel %vm545_vm8, %v2236_v13, %v805_v53 }
 0x2a2   : >> { %v941_v23 = vpop.permute.xlu0 %940  ;;  %v848_v39 = vpop.permute.xlu1 %847 }
 0x2a3   : >> { %v1093_v26 = vsel %vm1090_vm5, %v1085_v15, %v941_v23  ;;  %v1073_v28 = vsel %vm581_vm12, %v1065_v45, %v848_v39 }
 0x2a6   : >> { %v842_v33 = vpop.permute.xlu0 %841  ;;  %v975_v18 = vpop.permute.xlu1 %974 }
 0x2a7   : >> { %v1104_v9 = vsel %vm1098_vm6, %v1096_v58, %v975_v18  ;;  %v1070_v1 = vsel %vm581_vm12, %v1062_v36, %v842_v33 }
 0x2aa   : >> { %v969_v61 = vpop.permute.xlu0 %968  ;;  %v876_v40 = vpop.permute.xlu1 %875 }
 0x2ab   : >> { %v1101_v10 = vsel %vm1098_vm6, %v1093_v26, %v969_v61  ;;  %v1081_v44 = vsel %vm1074_vm3, %v1073_v28, %v876_v40 }
 0x2ae   : >> { %v870_v8 = vpop.permute.xlu0 %869  ;;  %v1012_v49 = vpop.permute.xlu1 %1011 }
 0x2af   : >> { %v1112_v20 = vsel %vm1106_vm7, %v1104_v9, %v1012_v49  ;;  %v1078_v31 = vsel %vm1074_vm3, %v1070_v1, %v870_v8 }
 0x2b2   : >> { %v1006_v34 = vpop.permute.xlu0 %1005  ;;  %v913_v17 = vpop.permute.xlu1 %912 }
 0x2b3   : >> { %v1109_v24 = vsel %vm1106_vm7, %v1101_v10, %v1006_v34  ;;  %v1089_v55 = vsel %vm1082_vm4, %v1081_v44, %v913_v17 }
 0x2b6   : >> { %v907_v54 = vpop.permute.xlu0 %906  ;;  %v1048_v41 = vpop.permute.xlu1 %1047 }
 0x2b7   : >> { %v1120_v46 = vsel %vm1114_vm9, %v1112_v20, %v1048_v41  ;;  %v1086_v60 = vsel %vm1082_vm4, %v1078_v31, %v907_v54 }
 0x2b8   : >> { %1429 = vmatmul.mubr.msk.f32.gmra.mrb[2].mxu1 %vm1122_vm10, %v1120_v46 }
 0x2b9   : >> { %1431 = vmatprep.mubr.msk.f32.mxu1 %vm1540_vm15, %v1541_v51 }
 0x2ba   : >> { %v1042_v29 = vpop.permute.xlu0 %1041  ;;  %v949_v42 = vpop.permute.xlu1 %948 }
 0x2bb   : >> { %v1117_v7 = vsel %vm1114_vm9, %v1109_v24, %v1042_v29 }
 0x2bc   : >> { %1420 = vmatmul.mubr.msk.f32.gmra.mrb[4].mxu0 %vm1122_vm10, %v1117_v7 }
 0x2bd   : >> { %1422 = vmatprep.mubr.msk.f32.mxu0 %vm1540_vm15, %v1541_v51  ;;  %v1097_v51 = vsel %vm1090_vm5, %v1089_v55, %v949_v42 }
 0x2be   : >> { %v943_v16 = vpop.permute.xlu0 %942  ;;  %v977_v59 = vpop.permute.xlu1 %976 }
 0x2bf   : >> { %v1105_v63 = vsel %vm1098_vm6, %v1097_v51, %v977_v59  ;;  %v1094_v13 = vsel %vm1090_vm5, %v1086_v60, %v943_v16 }
 0x2c2   : >> { %v971_v32 = vpop.permute.xlu0 %970  ;;  %v1014_v30 = vpop.permute.xlu1 %1013 }
 0x2c3   : >> { %v1113_v19 = vsel %vm1106_vm7, %v1105_v63, %v1014_v30  ;;  %v1102_v50 = vsel %vm1098_vm6, %v1094_v13, %v971_v32 }
 0x2c6   : >> { %v1008_v37 = vpop.permute.xlu0 %1007  ;;  %v1050_v22 = vpop.permute.xlu1 %1049 }
 0x2c7   : >> { %v1121_v0 = vsel %vm1114_vm9, %v1113_v19, %v1050_v22  ;;  %v1110_v47 = vsel %vm1106_vm7, %v1102_v50, %v1008_v37 }
 0x2c8   : >> { %1432 = vmatmul.mubr.msk.f32.gmra.mrb[4].mxu1 %vm1122_vm10, %v1121_v0 }
 0x2ca   : >> { %v1044_v48 = vpop.permute.xlu0 %1043 }
 0x2cb   : >> { %v1118_v57 = vsel %vm1114_vm9, %v1110_v47, %v1044_v48 }
 0x2cc   : >> { %1423 = vmatmul.mubr.msk.f32.gmra.mrb[6].mxu0 %vm1122_vm10, %v1118_v57 }
 0x34c   : >> { %v1214_v25 = vpop.f32.mrb[0].mxu0 }
 0x34d   : >> { %v1248_v11 = vmax.f32 %v1214_v25, 0.0  ;;  %v1415_v38 = vpop.f32.mrb[1].mxu0 }
 0x34f   : >> { %1257 = vst.msk [vmem:[%s1256_s7] sm:$0xff] %vm545_vm8, %v1248_v11 }
 0x36b   : >> { %v1234_v21 = vpop.f32.mrb[0].mxu1 }
 0x36c   : >> { %v1252_v53 = vmax.f32 %v1234_v21, 0.0  ;;  %v1427_v14 = vpop.f32.mrb[1].mxu1 }
 0x36e   : >> { %1261 = vst.msk [vmem:[%s1256_s7 + $0x20] sm:$0xff] %vm545_vm8, %v1252_v53 }
 0x36f   : >> { %v1219_v23 = vpop.f32.mrb[2].mxu0 }
 0x370   : >> { %v1249_v39 = vmax.f32 %v1219_v23, 0.0  ;;  %v1418_v33 = vpop.f32.mrb[3].mxu0 }
 0x372   : >> { %1258 = vst.msk [vmem:[%s1256_s7 + $0x8] sm:$0xff] %vm545_vm8, %v1249_v39 }
 0x38b   : >> { %v1239_v18 = vpop.f32.mrb[2].mxu1 }
 0x38c   : >> { %v1253_v61 = vmax.f32 %v1239_v18, 0.0  ;;  %v1430_v40 = vpop.f32.mrb[3].mxu1 }
 0x38e   : >> { %1262 = vst.msk [vmem:[%s1256_s7 + $0x28] sm:$0xff] %vm545_vm8, %v1253_v61 }
 0x38f   : >> { %v1224_v8 = vpop.f32.mrb[4].mxu0 }
 0x390   : >> { %v1250_v49 = vmax.f32 %v1224_v8, 0.0  ;;  %v1421_v52 = vpop.f32.mrb[5].mxu0 }
 0x392   : >> { %1259 = vst.msk [vmem:[%s1256_s7 + $0x10] sm:$0xff] %vm545_vm8, %v1250_v49 }
 0x39b   : >> { %v1244_v27 = vpop.f32.mrb[4].mxu1 }
 0x39c   : >> { %v1254_v34 = vmax.f32 %v1244_v27, 0.0  ;;  %v1433_v35 = vpop.f32.mrb[5].mxu1  ;;  %746 = sbr.rel (!%p744_p5) target bundleno = 481 (0x1e1), region = 91 }
 0x39e   : >> { %1263 = vst.msk [vmem:[%s1256_s7 + $0x30] sm:$0xff] %vm545_vm8, %v1254_v34 }
 0x39f   : >> { %v1229_v17 = vpop.f32.mrb[6].mxu0 }
 0x3a0   : >> { %v1251_v12 = vmax.f32 %v1229_v17, 0.0  ;;  %v1424_v56 = vpop.f32.mrb[7].mxu0 }
 0x3a2   : >> { %1260 = vst.msk [vmem:[%s1256_s7 + $0x18] sm:$0xff] %vm545_vm8, %v1251_v12 }
 0x3a3 PF: > { %s13_s12 = sadd.s32 1, %s1514_s12  }
 0x3a4   : > { %p10_p6 = scmp.ge.s32.totalorder %s13_s12, 4  }
 0x3a6   :  { %12 = sbr.rel (!%p10_p6) target bundleno = 1 (0x1), region = 102 }

// kernel: unet_forward.7
= control target key start
LH: loop header
LB: loop body
LE: loop exit
PB: predicated region body
PF: predicated region fallthrough
CT: control target
= control target key end

     0   :  { %s1089_s21 = smov 0   ;;  %s1407_s0 = inlined_call_operand.vmem [shape: f32[2,24,12,8], index: 0, kind: input, shape index: {}]   ;;  %s1408_s1 = inlined_call_operand.vmem [shape: f32[2,24,12,8], index: 1, kind: input, shape index: {}]   ;;  %s1409_s2 = inlined_call_operand.vmem [shape: f32[72,16], index: 2, kind: input, shape index: {}]   ;;  %s1410_s3 = inlined_call_operand.vmem [shape: f32[144,16], index: 3, kind: input, shape index: {}]   ;;  %s1411_s4 = inlined_call_operand.vmem [shape: f32[16,32], index: 4, kind: input, shape index: {}]   ;;  %s1412_s5 = inlined_call_operand.vmem [shape: f32[1,32], index: 5, kind: input, shape index: {}]   ;;  %s1413_s6 = inlined_call_operand.vmem [shape: f32[2,8,8,32], index: 6, kind: output, shape index: {}]  }
   0x1 LB: > { %s858_s22 = sadd.s32 4294967295, %s1026_s21   ;;  %p862_p0 = scmp.ge.s32.totalorder %s1026_s21, 1  ;;  %s1026_s21 = sphi %s1089_s21, %s16_s21  }
   0x2   : > { %p222_p1 = scmp.lt.s32.totalorder %s1026_s21, 3 }
   0x4   : > { %p223_p2 = pnand %p862_p0, %p222_p1 }
   0x5   : > { %p257_p3 = scmp.lt.s32.totalorder (!%p223_p2), %s858_s22, 1  ;;  %v1100_v0 = vld [vmem:[%s1409_s2] sm:$0xff] (!%p223_p2)  ;;  %v1105_v1 = vld [vmem:[%s1409_s2 + $0x8] sm:$0xff] (!%p223_p2)  ;;  %v1110_v2 = vld [vmem:[%s1409_s2 + $0x10] sm:$0xff] (!%p223_p2)  ;;  %s1262_s30 = smov (!%p223_p2), 0  }
   0x6   : > { %226 = sbr.rel (%p223_p2) target bundleno = 954 (0x3ba), region = 44  ;;  %v1115_v3 = vld [vmem:[%s1409_s2 + $0x18] sm:$0xff] (!%p223_p2)  ;;  %v1120_v4 = vld [vmem:[%s1409_s2 + $0x20] sm:$0xff] (!%p223_p2)  ;;  %v1125_v5 = vld [vmem:[%s1409_s2 + $0x28] sm:$0xff] (!%p223_p2) }
   0x7   : > { %v1130_v6 = vld [vmem:[%s1409_s2 + $0x30] sm:$0xff] (!%p223_p2)  ;;  %v1135_v7 = vld [vmem:[%s1409_s2 + $0x38] sm:$0xff] (!%p223_p2)  ;;  %v1140_v8 = vld [vmem:[%s1409_s2 + $0x40] sm:$0xff] (!%p223_p2) }
   0x8   : > { %v1145_v9 = vld [vmem:[%s1410_s3] sm:$0xff] (!%p223_p2)  ;;  %v1150_v10 = vld [vmem:[%s1410_s3 + $0x8] sm:$0xff] (!%p223_p2)  ;;  %v1155_v11 = vld [vmem:[%s1410_s3 + $0x10] sm:$0xff] (!%p223_p2) }
   0x9   : > { %v1160_v12 = vld [vmem:[%s1410_s3 + $0x18] sm:$0xff] (!%p223_p2)  ;;  %v1165_v13 = vld [vmem:[%s1410_s3 + $0x20] sm:$0xff] (!%p223_p2)  ;;  %v1170_v14 = vld [vmem:[%s1410_s3 + $0x28] sm:$0xff] (!%p223_p2) }
   0xa   : > { %v1180_v15 = vld [vmem:[%s1410_s3 + $0x30] sm:$0xff] (!%p223_p2)  ;;  %v1185_v16 = vld [vmem:[%s1410_s3 + $0x38] sm:$0xff] (!%p223_p2)  ;;  %v1190_v17 = vld [vmem:[%s1410_s3 + $0x40] sm:$0xff] (!%p223_p2) }
   0xb   : > { %v1205_v18 = vld [vmem:[%s1410_s3 + $0x48] sm:$0xff] (!%p223_p2)  ;;  %v1210_v19 = vld [vmem:[%s1410_s3 + $0x50] sm:$0xff] (!%p223_p2)  ;;  %v1215_v20 = vld [vmem:[%s1410_s3 + $0x58] sm:$0xff] (!%p223_p2) }
   0xc   : > { %v1220_v21 = vld [vmem:[%s1410_s3 + $0x60] sm:$0xff] (!%p223_p2)  ;;  %v1225_v22 = vld [vmem:[%s1410_s3 + $0x68] sm:$0xff] (!%p223_p2)  ;;  %v1230_v23 = vld [vmem:[%s1410_s3 + $0x70] sm:$0xff] (!%p223_p2) }
   0xd   : > { %s1415_s22 = smov (!%p257_p3, %s858_s22), 1  ;;  %v1235_v24 = vld [vmem:[%s1410_s3 + $0x78] sm:$0xff]  ;;  %v1240_v25 = vld [vmem:[%s1410_s3 + $0x80] sm:$0xff]  ;;  %v1245_v26 = vld [vmem:[%s1410_s3 + $0x88] sm:$0xff] }
   0xe   : > { %s969_s25 = smul.u32 384, %s1415_s22  ;;  %s879_s26 = sshll.u32 %s1415_s22, 6  ;;  %v1250_v27 = vld [vmem:[%s1411_s4] sm:$0xff]  ;;  %v1255_v28 = vld [vmem:[%s1411_s4 + $0x8] sm:$0xff] }
   0xf   : > { %s1175_s11 = scalar_lea.vmem %s1413_s6, %s879_s26  ;;  %v1260_v29 = vld [vmem:[%s1412_s5] ss:$0 sm:$0xff] }
  0x10   : > { %s1195_s19 = scalar_lea.vmem %s1407_s0, %s969_s25  ;;  %s1200_s24 = scalar_lea.vmem %s1408_s1, %s969_s25 }
  0x11 LB: >> { %s880_s7 = sshll.u32 %s1030_s30, 5  ;;  %v923_v52 = vpack.c.bf16 %v1105_v1, %v1100_v0  ;;  %s1036_s25 = smov 24   ;;  %vm356_vm0 = vcmask 1046528   ;;  %vm366_vm1 = vcmask 1045504   ;;  %v927_v63 = vpack.c.bf16 %v1115_v3, %v1110_v2  ;;  %s1030_s30 = sphi %s1262_s30, %s307_s30  }
  0x12   : >> { %s1269_s8 = scalar_lea.vmem %s1195_s19, %s880_s7  ;;  %s1272_s9 = scalar_lea.vmem %s1200_s24, %s880_s7  ;;  %vm428_vm2 = vcmask 64512   ;;  %vm431_vm3 = vcmask 130048   ;;  %vm434_vm4 = vcmask 195584   ;;  %vm437_vm5 = vcmask 261120  }
  0x13   : >> { %v316_v30 = vld [vmem:[%s1269_s8 + $0x28] sm:$0xf]  ;;  %v318_v31 = vld [vmem:[%s1269_s8 + $0x38] sm:$0xf]  ;;  %v315_v35 = vld [vmem:[%s1269_s8 + $0x20] sm:$0xff]  ;;  %924 = vmatprep.subr.bf16.mxu0 %v923_v52  ;;  %s1037_s10 = smov 16  }
  0x14   : >> { %v329_v32 = vld [vmem:[%s1272_s9 + $0x28] sm:$0xf]  ;;  %v331_v33 = vld [vmem:[%s1272_s9 + $0x38] sm:$0xf]  ;;  %v317_v36 = vld [vmem:[%s1269_s8 + $0x30] sm:$0xff]  ;;  %926 = vmatpush3.bf16.msra.mxu0 %v923_v52  ;;  %s1038_s22 = smov 8  }
  0x15   : >> { %v343_v34 = vmax.f32 %v316_v30, %v329_v32  ;;  %v345_v37 = vmax.f32 %v318_v31, %v331_v33  ;;  %v328_v38 = vld [vmem:[%s1272_s9 + $0x20] sm:$0xff]  ;;  %v330_v39 = vld [vmem:[%s1272_s9 + $0x30] sm:$0xff]  ;;  %v312_v40 = vld [vmem:[%s1269_s8 + $0x8] sm:$0xf]  ;;  %928 = vmatprep.subr.bf16.mxu0 %v927_v63  ;;  %s1039_s12 = smov 32   ;;  %s1040_s13 = smov 40  }
  0x16   : >> { %v342_v41 = vmax.f32 %v315_v35, %v328_v38  ;;  %v344_v42 = vmax.f32 %v317_v36, %v330_v39  ;;  %v314_v43 = vld [vmem:[%s1269_s8 + $0x18] sm:$0xf]  ;;  %v325_v44 = vld [vmem:[%s1272_s9 + $0x8] sm:$0xf]  ;;  %v311_v49 = vld [vmem:[%s1269_s8] sm:$0xff]  ;;  %v931_v38 = vpack.c.bf16 %v1125_v5, %v1120_v4  ;;  %s1041_s14 = smov 48  }
  0x17   : >> { %v327_v45 = vld [vmem:[%s1272_s9 + $0x18] sm:$0xf]  ;;  %v1286_v46 = vmax.f32 %v343_v34, %v345_v37  ;;  %v337_v47 = vmax.f32 %v312_v40, %v325_v44  ;;  %v313_v50 = vld [vmem:[%s1269_s8 + $0x10] sm:$0xff]  ;;  %v324_v51 = vld [vmem:[%s1272_s9] sm:$0xff]  ;;  %s1042_s15 = smov 56   ;;  %s1043_s16 = smov 64  }
  0x18   : >> { %v339_v48 = vmax.f32 %v314_v43, %v327_v45  ;;  %v346_v53 = vmax.f32 %v342_v41, %v344_v42  ;;  %v326_v54 = vld [vmem:[%s1272_s9 + $0x10] sm:$0xff]  ;;  %v336_v55 = vmax.f32 %v311_v49, %v324_v51  ;;  %v320_v31 = vld [vmem:[%s1269_s8 + $0x48] sm:$0xf]  ;;  %v322_v32 = vld [vmem:[%s1269_s8 + $0x58] sm:$0xf]  ;;  %930 = vmatpush3.bf16.msra.mxu0 %v927_v63  ;;  %v935_v51 = vpack.c.bf16 %v1135_v7, %v1130_v6  ;;  %s871_s17 = sshll.u32 %s1030_s30, 4 }
  0x19   : >> { %380 = vrot.lane.b32.xlu1 %v1286_v46, %s1036_s25  ;;  %v338_v57 = vmax.f32 %v313_v50, %v326_v54  ;;  %v385_v61 = vrot.slane %v1286_v46, 1  ;;  %v333_v35 = vld [vmem:[%s1272_s9 + $0x48] sm:$0xf]  ;;  %v335_v36 = vld [vmem:[%s1272_s9 + $0x58] sm:$0xf]  ;;  %v319_v37 = vld [vmem:[%s1269_s8 + $0x40] sm:$0xff]  ;;  %932 = vmatprep.subr.bf16.mxu0 %v931_v38 }
  0x1a   : >> { %v1295_v56 = vmax.f32 %v337_v47, %v339_v48  ;;  %378 = vrot.lane.b32.xlu0 %v346_v53, %s1036_s25  ;;  %v384_v34 = vrot.slane %v346_v53, 1  ;;  %v321_v39 = vld [vmem:[%s1269_s8 + $0x50] sm:$0xff]  ;;  %v332_v40 = vld [vmem:[%s1272_s9 + $0x40] sm:$0xff]  ;;  %v394_v42 = vrot.slane %v1286_v46, 2  ;;  %v393_v44 = vrot.slane %v346_v53, 2  ;;  %s537_s18 = scalar_lea.vmem [#allocation2], %s871_s17 }
  0x1b   : >> { %v1299_v60 = vmax.f32 %v336_v55, %v338_v57  ;;  %v334_v41 = vld [vmem:[%s1272_s9 + $0x50] sm:$0xff]  ;;  %v349_v45 = vmax.f32 %v320_v31, %v333_v35  ;;  %v351_v47 = vmax.f32 %v322_v32, %v335_v36  ;;  %v348_v49 = vmax.f32 %v319_v37, %v332_v40  ;;  %s307_s30 = sadd.s32 1, %s1030_s30  }
  0x1c   : >> { %v368_v58 = vrot.slane %v1295_v56, 2  ;;  %v358_v59 = vrot.slane %v1295_v56, 1  ;;  %v386_v48 = vsel %vm356_vm0, %v384_v34, %v385_v61  ;;  %v350_v50 = vmax.f32 %v321_v39, %v334_v41  ;;  %934 = vmatpush3.bf16.msra.mxu0 %v931_v38  ;;  %p304_p4 = scmp.ge.s32.totalorder %s307_s30, 10  }
  0x1d   : >> { %v357_v62 = vrot.slane %v1299_v60, 1  ;;  %v367_v30 = vrot.slane %v1299_v60, 2  ;;  %936 = vmatprep.subr.bf16.mxu0 %v935_v51  ;;  %v395_v46 = vsel %vm366_vm1, %v393_v44, %v394_v42  ;;  %v353_v52 = vmax.f32 %v349_v45, %v351_v47  ;;  %s1344_s20 = smov (%p304_p4), 0  }
  0x1e   : >> { %372 = vrot.lane.b32.xlu1 %v368_v58, %s1037_s10  ;;  %362 = vrot.lane.b32.xlu0 %v358_v59, %s1038_s22  ;;  %v352_v54 = vmax.f32 %v348_v49, %v350_v50  ;;  %vm440_vm6 = vcmask 326656   ;;  %vm443_vm7 = vcmask 392192   ;;  %vm446_vm8 = vcmask 457728  }
  0x1f   : >> { %v359_v33 = vsel %vm356_vm0, %v357_v62, %v358_v59  ;;  %v369_v43 = vsel %vm366_vm1, %v367_v30, %v368_v58  ;;  %v411_v53 = vrot.slane %v353_v52, 1  ;;  %v420_v58 = vrot.slane %v353_v52, 2 }
  0x20   : >> { %938 = vmatpush3.bf16.msra.mxu0 %v935_v51  ;;  %v410_v55 = vrot.slane %v352_v54, 1  ;;  %v419_v59 = vrot.slane %v352_v54, 2  ;;  %vm449_vm9 = vcmask 523264   ;;  %vm452_vm10 = vcmask 588800  }
  0x21   : >> { %911 = vmatprep.subr.mxu0 %v1140_v8  ;;  %vm539_vm11 = vcmask 123904  }
  0x22   : >> { %389 = vrot.lane.b32.xlu1 %v385_v61, %s1039_s12  ;;  %360 = vrot.lane.b32.xlu0 %v359_v33, %s1038_s22  ;;  %v412_v57 = vsel %vm356_vm0, %v410_v55, %v411_v53  ;;  %v421_v61 = vsel %vm366_vm1, %v419_v59, %v420_v58 }
  0x24   : >> { %912 = vmatpush3.msra.mxu0 %v1140_v8 }
  0x26   : >> { %370 = vrot.lane.b32.xlu1 %v369_v43, %s1037_s10  ;;  %387 = vrot.lane.b32.xlu0 %v386_v48, %s1039_s12 }
  0x2a   : >> { %398 = vrot.lane.b32.xlu1 %v394_v42, %s1040_s13  ;;  %396 = vrot.lane.b32.xlu0 %v395_v46, %s1040_s13 }
  0x2e   : >> { %406 = vrot.lane.b32.xlu1 %v353_v52, %s1041_s14  ;;  %404 = vrot.lane.b32.xlu0 %v352_v54, %s1041_s14 }
  0x32   : >> { %415 = vrot.lane.b32.xlu1 %v411_v53, %s1042_s15  ;;  %413 = vrot.lane.b32.xlu0 %v412_v57, %s1042_s15 }
  0x36   : >> { %424 = vrot.lane.b32.xlu1 %v420_v58, %s1043_s16  ;;  %422 = vrot.lane.b32.xlu0 %v421_v61, %s1043_s16 }
  0x8b   : >> { %v381_v62 = vpop.permute.xlu1 %380 }
  0x8c   : >> { %v379_v63 = vpop.permute.xlu0 %378 }
  0x90   : >> { %v373_v30 = vpop.permute.xlu1 %372  ;;  %v363_v31 = vpop.permute.xlu0 %362 }
  0x91   : >> { %v430_v36 = vsel %vm428_vm2, %v1295_v56, %v363_v31 }
  0x92   : >> { %v433_v41 = vsel %vm431_vm3, %v430_v36, %v373_v30 }
  0x93   : >> { %v436_v45 = vsel %vm434_vm4, %v433_v41, %v381_v62 }
  0x94   : >> { %v390_v32 = vpop.permute.xlu1 %389  ;;  %v361_v33 = vpop.permute.xlu0 %360 }
  0x95   : >> { %v429_v38 = vsel %vm428_vm2, %v1299_v60, %v361_v33  ;;  %v439_v56 = vsel %vm437_vm5, %v436_v45, %v390_v32 }
  0x98   : >> { %v371_v34 = vpop.permute.xlu1 %370  ;;  %v388_v35 = vpop.permute.xlu0 %387 }
  0x99   : >> { %v432_v40 = vsel %vm431_vm3, %v429_v38, %v371_v34 }
  0x9a   : >> { %v435_v43 = vsel %vm434_vm4, %v432_v40, %v379_v63 }
  0x9b   : >> { %v438_v47 = vsel %vm437_vm5, %v435_v43, %v388_v35 }
  0x9c   : >> { %v399_v37 = vpop.permute.xlu1 %398  ;;  %v397_v39 = vpop.permute.xlu0 %396 }
  0x9d   : >> { %v442_v49 = vsel %vm440_vm6, %v439_v56, %v399_v37  ;;  %v441_v50 = vsel %vm440_vm6, %v438_v47, %v397_v39 }
  0xa0   : >> { %v407_v42 = vpop.permute.xlu1 %406  ;;  %v405_v44 = vpop.permute.xlu0 %404 }
  0xa1   : >> { %v445_v51 = vsel %vm443_vm7, %v442_v49, %v407_v42  ;;  %v444_v46 = vsel %vm443_vm7, %v441_v50, %v405_v44 }
  0xa4   : >> { %v416_v48 = vpop.permute.xlu1 %415  ;;  %v414_v60 = vpop.permute.xlu0 %413 }
  0xa5   : >> { %v448_v52 = vsel %vm446_vm8, %v445_v51, %v416_v48  ;;  %v447_v53 = vsel %vm446_vm8, %v444_v46, %v414_v60 }
  0xa8   : >> { %v425_v54 = vpop.permute.xlu1 %424  ;;  %v423_v57 = vpop.permute.xlu0 %422 }
  0xa9   : >> { %v451_v55 = vsel %vm449_vm9, %v448_v52, %v425_v54  ;;  %v450_v58 = vsel %vm449_vm9, %v447_v53, %v423_v57 }
  0xaa   : >> { %913 = vmatprep.mubr.msk.f32.mxu0 %vm452_vm10, %v450_v58 }
  0xab   : >> { %914 = vmatmul.mubr.msk.f32.vlgmr.msra.gmra.mrb[0].mxu0 %vm452_vm10, %v451_v55 }
 0x17c   : > { %306 = sbr.rel (!%p304_p4) target bundleno = 17 (0x11), region = 96 }
 0x17e   : >> { %v915_v59 = vpop.f32.mrb[0].mxu0 }
 0x17f   : >> { %v535_v61 = vmax.f32 %v915_v59, 0.0  ;;  %v525_v62 = vpop.f32.mrb[1].mxu0 }
 0x180   : >> { %v534_v63 = vmax.f32 %v525_v62, 0.0 }
 0x181   : >> { %540 = vst.msk [vmem:[%s537_s18 + $0x8] sm:$0x3] %vm539_vm11, %v535_v61 }
 0x182   : >> { %538 = vst.msk [vmem:[%s537_s18] sm:$0xff] %vm431_vm3, %v534_v63 }
 0x183 LB: >> { %v940_v30 = vpack.c.bf16 %v1150_v10, %v1145_v9  ;;  %v1044_v31 = vmov 0.0|0.0   ;;  %s872_s23 = sshll.u32 %s1034_s20, 4  ;;  %v943_v32 = vpack.c.bf16 %v1160_v12, %v1155_v11  ;;  %s1045_s24 = smov 48   ;;  %v946_v35 = vpack.c.bf16 %v1170_v14, %v1165_v13  ;;  %s1034_s20 = sphi %s1344_s20, %s546_s20  }
 0x184   : >> { %939 = vmatprep.subr.bf16.mxu0 %v1044_v31  ;;  %966 = vmatprep.subr.bf16.mxu1 %v1044_v31  ;;  %s548_s19 = scalar_lea.vmem [#allocation2], %s872_s23  ;;  %s1046_s26 = smov 16   ;;  %v949_v44 = vpack.c.bf16 %v1185_v16, %v1180_v15  ;;  %v952_v60 = vpack.c.bf16 %v1205_v18, %v1190_v17  ;;  %v955_v50 = vpack.c.bf16 %v1215_v20, %v1210_v19  ;;  %vm610_vm12 = vcmask 654336  }
 0x185   : >> { %941 = vmatpush1.bf16.msra.mxu0 %v940_v30  ;;  %s1047_s27 = smov 64   ;;  %s1048_s28 = smov 32   ;;  %v958_v51 = vpack.c.bf16 %v1225_v22, %v1220_v21  ;;  %v961_v46 = vpack.c.bf16 %v1235_v24, %v1230_v23  ;;  %v964_v52 = vpack.c.bf16 %v1245_v26, %v1240_v25  ;;  %vm612_vm13 = vcmask 785408  }
 0x186   : >> { %942 = vmatprep.subr.bf16.mxu0 %v1044_v31  ;;  %s1049_s29 = smov 96   ;;  %s1050_s30 = smov 80   ;;  %vm614_vm14 = vcmask 916480   ;;  %vm1052_vm15 = vmmov 0  }
 0x187   : >> { %s1051_s7 = smov 112   ;;  %s876_s8 = sshll.u32 %s1034_s20, 3 }
 0x188   : >> { %s769_s9 = scalar_lea.vmem %s1175_s11, %s876_s8  ;;  %s546_s20 = sadd.s32 1, %s1034_s20  }
 0x189   : >> { %v1357_v0 = vld [vmem:[%s548_s19] sm:$0xff]  ;;  %v550_v1 = vld [vmem:[%s548_s19 + $0x8] sm:$0x3]  ;;  %v551_v2 = vld [vmem:[%s548_s19 + $0x10] sm:$0xff]  ;;  %944 = vmatpush1.bf16.msra.mxu0 %v943_v32  ;;  %p543_p5 = scmp.ge.s32.totalorder %s546_s20, 8  }
 0x18a   : >> { %v558_v3 = vrot.slane %v1357_v0, 1  ;;  %v559_v4 = vrot.slane %v550_v1, 1  ;;  %572 = vrot.lane.b32.xlu1 %v551_v2, %s1045_s24  ;;  %v565_v5 = vrot.slane %v1357_v0, 2  ;;  %v566_v6 = vrot.slane %v550_v1, 2  ;;  %v552_v7 = vld [vmem:[%s548_s19 + $0x18] sm:$0x3]  ;;  %945 = vmatprep.subr.bf16.mxu0 %v1044_v31 }
 0x18b   : >> { %v576_v8 = vrot.slane %v551_v2, 1  ;;  %v577_v33 = vrot.slane %v552_v7, 1  ;;  %v553_v34 = vld [vmem:[%s548_s19 + $0x20] sm:$0xff]  ;;  %v554_v37 = vld [vmem:[%s548_s19 + $0x28] sm:$0x3]  ;;  %v582_v42 = vrot.slane %v551_v2, 2 }
 0x18c   : >> { %v560_v36 = vsel %vm356_vm0, %v558_v3, %v559_v4  ;;  %v599_v38 = vrot.slane %v553_v34, 2  ;;  %v600_v40 = vrot.slane %v554_v37, 2  ;;  %v567_v41 = vsel %vm366_vm1, %v565_v5, %v566_v6 }
 0x18d   : >> { %561 = vrot.lane.b32.xlu0 %v560_v36, %s1046_s26  ;;  %v578_v39 = vsel %vm356_vm0, %v576_v8, %v577_v33  ;;  %v583_v43 = vrot.slane %v552_v7, 2  ;;  %947 = vmatpush1.bf16.msra.mxu0 %v946_v35  ;;  %v593_v48 = vrot.slane %v553_v34, 1  ;;  %v594_v56 = vrot.slane %v554_v37, 1 }
 0x18e   : >> { %579 = vrot.lane.b32.xlu1 %v578_v39, %s1047_s27  ;;  %v601_v45 = vsel %vm366_vm1, %v599_v38, %v600_v40  ;;  %948 = vmatprep.subr.bf16.mxu0 %v1044_v31  ;;  %v1053_v3 = vmov 0.0  }
 0x18f   : >> { %873 = vmatprep.mubr.msk.f32.mxu0 %vm431_vm3, %v601_v45  ;;  %v584_v47 = vsel %vm366_vm1, %v582_v42, %v583_v43  ;;  %v595_v49 = vsel %vm356_vm0, %v593_v48, %v594_v56  ;;  %920 = vmatprep.mubr.msk.f32.mxu1 %vm1052_vm15, %v1053_v3 }
 0x191   : >> { %568 = vrot.lane.b32.xlu0 %v567_v41, %s1048_s28  ;;  %950 = vmatpush1.bf16.msra.mxu0 %v949_v44 }
 0x192   : >> { %589 = vrot.lane.b32.xlu1 %v553_v34, %s1049_s29  ;;  %951 = vmatprep.subr.bf16.mxu0 %v1044_v31 }
 0x195   : >> { %585 = vrot.lane.b32.xlu0 %v584_v47, %s1050_s30  ;;  %953 = vmatpush1.bf16.msra.mxu0 %v952_v60 }
 0x196   : >> { %954 = vmatprep.subr.bf16.mxu0 %v1044_v31 }
 0x199   : >> { %596 = vrot.lane.b32.xlu0 %v595_v49, %s1051_s7  ;;  %956 = vmatpush1.bf16.msra.mxu0 %v955_v50 }
 0x19a   : >> { %957 = vmatprep.subr.bf16.mxu0 %v1044_v31 }
 0x19d   : >> { %959 = vmatpush1.bf16.msra.mxu0 %v958_v51 }
 0x19e   : >> { %960 = vmatprep.subr.bf16.mxu0 %v1044_v31 }
 0x1a1   : >> { %962 = vmatpush1.bf16.msra.mxu0 %v961_v46 }
 0x1a2   : >> { %963 = vmatprep.subr.bf16.mxu0 %v1044_v31 }
 0x1a5   : >> { %965 = vmatpush1.bf16.msra.mxu0 %v964_v52 }
 0x1fc   : >> { %v573_v54 = vpop.permute.xlu1 %572 }
 0x1ff   : >> { %v562_v53 = vpop.permute.xlu0 %561 }
 0x200   : >> { %v580_v55 = vpop.permute.xlu1 %579  ;;  %v603_v57 = vsel %vm431_vm3, %v1357_v0, %v562_v53  ;;  %v967_v0 = vpack.c.bf16 %v1255_v28, %v1250_v27 }
 0x202   : >> { %968 = vmatpush3.bf16.msra.mxu1 %v967_v0 }
 0x203   : >> { %v569_v58 = vpop.permute.xlu0 %568 }
 0x204   : >> { %v605_v59 = vsel %vm437_vm5, %v603_v57, %v569_v58  ;;  %v590_v31 = vpop.permute.xlu1 %589 }
 0x205   : >> { %v607_v61 = vsel %vm443_vm7, %v605_v59, %v573_v54 }
 0x206   : >> { %v609_v62 = vsel %vm449_vm9, %v607_v61, %v580_v55 }
 0x207   : >> { %v586_v63 = vpop.permute.xlu0 %585 }
 0x208   : >> { %v611_v30 = vsel %vm610_vm12, %v609_v62, %v586_v63 }
 0x209   : >> { %v613_v32 = vsel %vm612_vm13, %v611_v30, %v590_v31 }
 0x20b   : >> { %v597_v1 = vpop.permute.xlu0 %596 }
 0x20c   : >> { %v615_v2 = vsel %vm614_vm14, %v613_v32, %v597_v1 }
 0x20d   : >> { %683 = vmatmul.mubr.f32.vlgmr.msra.gmra.mrb[0].mxu0 %v615_v2 }
 0x2e0   : >> { %v684_v4 = vpop.f32.mrb[0].mxu0 }
 0x2e1   : >> { %v688_v5 = vmax.f32 %v684_v4, 0.0  ;;  %v686_v6 = vpop.f32.mrb[1].mxu0 }
 0x2e3   : >> { %921 = vmatmul.mubr.msk.f32.vlgmr.msra.gmra.mrb[0].mxu1 %vm431_vm3, %v688_v5 }
 0x3b3   : > { %545 = sbr.rel (!%p543_p5) target bundleno = 387 (0x183), region = 107 }
 0x3b6   : >> { %v764_v7 = vpop.f32.mrb[0].mxu1 }
 0x3b7   : >> { %v765_v8 = vadd.f32 %v1260_v29, %v764_v7  ;;  %v922_v33 = vpop.f32.mrb[1].mxu1 }
 0x3b9   : >> { %770 = vst.msk [vmem:[%s769_s9] sm:$0xff] %vm437_vm5, %v765_v8 }
 0x3ba PF: > { %s16_s21 = sadd.s32 1, %s1026_s21  }
 0x3bb   : > { %p13_p6 = scmp.ge.s32.totalorder %s16_s21, 4  }
 0x3bd   :  { %15 = sbr.rel (!%p13_p6) target bundleno = 1 (0x1), region = 118 }

// kernel: tile.18
= control target key start
LH: loop header
LB: loop body
LE: loop exit
PB: predicated region body
PF: predicated region fallthrough
CT: control target
= control target key end

     0   :  { %s22_s0 = inlined_call_operand.vmem [shape: f32[4], index: 0, kind: input, shape index: {}]   ;;  %s23_s1 = inlined_call_operand.vmem [shape: f32[4,4], index: 1, kind: output, shape index: {}]  }
   0x1   :  { %v4_v0 = vld [vmem:[%s22_s0] ss:$0 sm:$0xff] }
   0x2   :  { %5 = vst [vmem:[%s23_s1] sm:$0xf] %v4_v0 }

// kernel: tile.19
= control target key start
LH: loop header
LB: loop body
LE: loop exit
PB: predicated region body
PF: predicated region fallthrough
CT: control target
= control target key end

     0   :  { %vm7_vm0 = vcmask 31744   ;;  %s37_s8 = smov 4   ;;  %s38_s9 = smov 8   ;;  %vm13_vm1 = vcmask 130144   ;;  %vm19_vm2 = vcmask 97344   ;;  %vm25_vm3 = vcmask 64544   ;;  %s55_s0 = inlined_call_operand.vmem [shape: f32[4,4], index: 0, kind: input, shape index: {}]   ;;  %s56_s1 = inlined_call_operand.vmem [shape: f32[1,16], index: 1, kind: output, shape index: {}]  }
   0x1   :  { %v4_v0 = vld [vmem:[%s55_s0] sm:$0xf]  ;;  %s36_s0 = smov 12  }
   0x2   :  { %5 = vst [vmem:[#allocation1] sm:$0xf] %v4_v0 }
   0x9   :  { %v10_v1 = vld [vmem:[#allocation1 + $0x3] sm:$0x1]   ;;  %v22_v2 = vld [vmem:[#allocation1 + $0x1] sm:$0x1]   ;;  %v6_v3 = vld [vmem:[#allocation1] sm:$0x1]  }
   0xa   :  { %11 = vrot.lane.b32.xlu0 %v10_v1, %s36_s0  ;;  %23 = vrot.lane.b32.xlu1 %v22_v2, %s37_s8  ;;  %v16_v4 = vld [vmem:[#allocation1 + $0x2] sm:$0x1]   ;;  %8 = vst.msk [vmem:[#allocation0] sm:$0x1] %vm7_vm0, %v6_v3  }
   0xe   :  { %17 = vrot.lane.b32.xlu0 %v16_v4, %s38_s9 }
  0x7c   :  { %v12_v5 = vpop.permute.xlu0 %11   ;;  %v24_v6 = vpop.permute.xlu1 %23  }
  0x7d   :  { %14 = vst.msk [vmem:[#allocation0] sm:$0x1] %vm13_vm1, %v12_v5  }
  0x80   :  { %v18_v7 = vpop.permute.xlu0 %17  }
  0x81   :  { %20 = vst.msk [vmem:[#allocation0] sm:$0x1] %vm19_vm2, %v18_v7  }
  0x82   :  { %26 = vst.msk [vmem:[#allocation0] sm:$0x1] %vm25_vm3, %v24_v6  }
  0x89   :  { %v30_v8 = vld [vmem:[#allocation0] sm:$0x1] }
  0x8a   :  { %32 = vst [vmem:[%s56_s1] sm:$0x1] %v30_v8 }

// kernel: unet_forward.8
= control target key start
LH: loop header
LB: loop body
LE: loop exit
PB: predicated region body
PF: predicated region fallthrough
CT: control target
= control target key end

     0   :  { %s1378_s24 = smov 0   ;;  %s1751_s0 = inlined_call_operand.vmem [shape: f32[2,16,16,8], index: 0, kind: input, shape index: {}]   ;;  %s1752_s1 = inlined_call_operand.vmem [shape: f32[2,16,16,8], index: 1, kind: input, shape index: {}]   ;;  %s1753_s2 = inlined_call_operand.vmem [shape: f32[72,8], index: 2, kind: input, shape index: {}]   ;;  %s1754_s3 = inlined_call_operand.vmem [shape: f32[72,8], index: 3, kind: input, shape index: {}]   ;;  %s1755_s4 = inlined_call_operand.vmem [shape: f32[72,8], index: 4, kind: input, shape index: {}]   ;;  %s1756_s5 = inlined_call_operand.vmem [shape: f32[8,16], index: 5, kind: input, shape index: {}]   ;;  %s1757_s6 = inlined_call_operand.vmem [shape: f32[1,16], index: 6, kind: input, shape index: {}]   ;;  %s1758_s7 = inlined_call_operand.vmem [shape: f32[2,12,12,16], index: 7, kind: output, shape index: {}]  }
   0x1 LB: > { %s1078_s25 = sadd.s32 4294967295, %s1312_s24   ;;  %p1082_p0 = scmp.ge.s32.totalorder %s1312_s24, 1  ;;  %s1312_s24 = sphi %s1378_s24, %s17_s24  }
   0x2   : > { %p247_p1 = scmp.lt.s32.totalorder %s1312_s24, 3 }
   0x4   : > { %p248_p2 = pnand %p1082_p0, %p247_p1 }
   0x6   : > { %251 = sbr.rel (%p248_p2) target bundleno = 1010 (0x3f2), region = 48 }
   0xd   : > { %p284_p3 = scmp.lt.s32.totalorder %s1078_s25, 1  ;;  %v1389_v0 = vld [vmem:[%s1753_s2] sm:$0xff]  ;;  %v1394_v1 = vld [vmem:[%s1753_s2 + $0x8] sm:$0xff]  ;;  %v1399_v2 = vld [vmem:[%s1753_s2 + $0x10] sm:$0xff]  ;;  %s1546_s11 = smov 0  }
   0xe   : > { %1759 = vst [vmem:[#allocation3_spill] sm:$0xff] %v1389_v0  ;;  %v1404_v3 = vld [vmem:[%s1753_s2 + $0x18] sm:$0xff]  ;;  %v1409_v4 = vld [vmem:[%s1753_s2 + $0x20] sm:$0xff]  ;;  %v1414_v5 = vld [vmem:[%s1753_s2 + $0x28] sm:$0xff] }
   0xf   : > { %s1762_s25 = smov (!%p284_p3, %s1078_s25), 1  ;;  %v1419_v6 = vld [vmem:[%s1753_s2 + $0x30] sm:$0xff]  ;;  %v1424_v7 = vld [vmem:[%s1753_s2 + $0x38] sm:$0xff]  ;;  %v1429_v8 = vld [vmem:[%s1753_s2 + $0x40] sm:$0xff] }
  0x10   : > { %v1434_v9 = vld [vmem:[%s1754_s3] sm:$0xff]  ;;  %v1439_v10 = vld [vmem:[%s1754_s3 + $0x8] sm:$0xff]  ;;  %v1444_v11 = vld [vmem:[%s1754_s3 + $0x10] sm:$0xff]  ;;  %s1101_s29 = sshll.u32 %s1762_s25, 8  ;;  %s1257_s30 = smul.u32 192, %s1762_s25 }
  0x11   : > { %v1449_v12 = vld [vmem:[%s1754_s3 + $0x18] sm:$0xff]  ;;  %v1454_v13 = vld [vmem:[%s1754_s3 + $0x20] sm:$0xff]  ;;  %v1459_v14 = vld [vmem:[%s1754_s3 + $0x28] sm:$0xff]  ;;  %s1464_s16 = scalar_lea.vmem %s1751_s0, %s1101_s29  ;;  %s1469_s18 = scalar_lea.vmem %s1752_s1, %s1101_s29 }
  0x12   : > { %v1474_v15 = vld [vmem:[%s1754_s3 + $0x30] sm:$0xff]  ;;  %v1479_v16 = vld [vmem:[%s1754_s3 + $0x38] sm:$0xff]  ;;  %v1484_v17 = vld [vmem:[%s1754_s3 + $0x40] sm:$0xff]  ;;  %s1489_s29 = scalar_lea.vmem %s1758_s7, %s1257_s30 }
  0x13   : > { %v1494_v18 = vld [vmem:[%s1755_s4] sm:$0xff]  ;;  %v1499_v19 = vld [vmem:[%s1755_s4 + $0x8] sm:$0xff]  ;;  %v1504_v20 = vld [vmem:[%s1755_s4 + $0x10] sm:$0xff] }
  0x14   : > { %v1509_v21 = vld [vmem:[%s1755_s4 + $0x18] sm:$0xff]  ;;  %v1514_v22 = vld [vmem:[%s1755_s4 + $0x20] sm:$0xff]  ;;  %v1519_v23 = vld [vmem:[%s1755_s4 + $0x28] sm:$0xff] }
  0x15   : > { %v1524_v24 = vld [vmem:[%s1755_s4 + $0x30] sm:$0xff]  ;;  %v1529_v25 = vld [vmem:[%s1755_s4 + $0x38] sm:$0xff]  ;;  %v1534_v26 = vld [vmem:[%s1755_s4 + $0x40] sm:$0xff] }
  0x16   : > { %v1539_v27 = vld [vmem:[%s1756_s5] sm:$0xff] }
  0x17   : > { %v1544_v28 = vld [vmem:[%s1757_s6] ss:$0 sm:$0xff] }
  0x18 LB: >> { %s1552_s12 = sshll.u32 %s1316_s11, 4  ;;  %vm361_vm0 = vcmask 1045504   ;;  %vm351_vm1 = vcmask 1046528   ;;  %s1322_s15 = smov 8   ;;  %v1207_v60 = vpack.c.bf16 %v1439_v10, %v1434_v9  ;;  %v1760_v0 = vld [vmem:[#allocation3_spill] sm:$0xff]  ;;  %v1211_v63 = vpack.c.bf16 %v1449_v12, %v1444_v11  ;;  %s1316_s11 = sphi %s1546_s11, %s333_s11  }
  0x19   : >> { %s1556_s13 = scalar_lea.vmem %s1469_s18, %s1552_s12  ;;  %s1560_s14 = scalar_lea.vmem %s1464_s16, %s1552_s12  ;;  %v1223_v61 = vpack.c.bf16 %v1394_v1, %v1760_v0  ;;  %vm423_vm2 = vcmask 64512   ;;  %vm426_vm3 = vcmask 130048   ;;  %vm429_vm4 = vcmask 195584  }
  0x1a   : >> { %v1563_v29 = vld [vmem:[%s1556_s13 + $0x8] sm:$0xff]  ;;  %v1569_v31 = vld [vmem:[%s1560_s14] sm:$0xff]  ;;  %s1323_s30 = smov 16   ;;  %v338_v45 = vld [vmem:[%s1560_s14 + $0x10] sm:$0xff]  ;;  %s1324_s25 = smov 24   ;;  %1208 = vmatprep.subr.bf16.mxu1 %v1207_v60  ;;  %vm432_vm5 = vcmask 261120  }
  0x1b   : >> { %v1566_v30 = vld [vmem:[%s1560_s14 + $0x8] sm:$0xff]  ;;  %v450_v32 = vrot.slane %v1563_v29, 1  ;;  %v1575_v35 = vld [vmem:[%s1556_s13] sm:$0xff]  ;;  %v362_v36 = vrot.slane %v1569_v31, 2  ;;  %v352_v37 = vrot.slane %v1569_v31, 1  ;;  %v459_v38 = vrot.slane %v1563_v29, 2  ;;  %1224 = vmatprep.subr.bf16.mxu0 %v1223_v61  ;;  %1210 = vmatpush3.bf16.msra.mxu1 %v1207_v60 }
  0x1c   : >> { %v353_v33 = vrot.slane %v1566_v30, 1  ;;  %v363_v34 = vrot.slane %v1566_v30, 2  ;;  %v458_v41 = vrot.slane %v1575_v35, 2  ;;  %v449_v42 = vrot.slane %v1575_v35, 1  ;;  %v339_v46 = vld [vmem:[%s1560_s14 + $0x18] sm:$0xff]  ;;  %v345_v48 = vld [vmem:[%s1556_s13 + $0x10] sm:$0xff]  ;;  %1226 = vmatpush3.bf16.msra.mxu0 %v1223_v61  ;;  %1212 = vmatprep.subr.bf16.mxu1 %v1211_v63 }
  0x1d   : >> { %454 = vrot.lane.b32.xlu0 %v450_v32, %s1322_s15  ;;  %v379_v47 = vrot.slane %v338_v45, 1  ;;  %v380_v49 = vrot.slane %v339_v46, 1  ;;  %v346_v50 = vld [vmem:[%s1556_s13 + $0x18] sm:$0xff]  ;;  %v475_v51 = vrot.slane %v345_v48, 1  ;;  %s1325_s17 = smov 32   ;;  %v388_v54 = vrot.slane %v338_v45, 2 }
  0x1e   : >> { %357 = vrot.lane.b32.xlu1 %v353_v33, %s1322_s15  ;;  %v364_v39 = vsel %vm361_vm0, %v362_v36, %v363_v34  ;;  %v354_v40 = vsel %vm351_vm1, %v352_v37, %v353_v33  ;;  %v460_v43 = vsel %vm361_vm0, %v458_v41, %v459_v38  ;;  %v451_v44 = vsel %vm351_vm1, %v449_v42, %v450_v32  ;;  %s1326_s19 = smov 40   ;;  %v340_v33 = vld [vmem:[%s1560_s14 + $0x20] sm:$0xff]  ;;  %s1327_s20 = smov 48   ;;  %v348_v41 = vld [vmem:[%s1556_s13 + $0x28] sm:$0xff] }
  0x1f   : >> { %v381_v52 = vsel %vm351_vm1, %v379_v47, %v380_v49  ;;  %v476_v53 = vrot.slane %v346_v50, 1  ;;  %v389_v56 = vrot.slane %v339_v46, 2  ;;  %v484_v57 = vrot.slane %v345_v48, 2  ;;  %1214 = vmatpush3.bf16.msra.mxu1 %v1211_v63  ;;  %s1328_s21 = smov 56   ;;  %s1329_s22 = smov 64  }
  0x20   : >> { %v485_v59 = vrot.slane %v346_v50, 2  ;;  %v1227_v32 = vpack.c.bf16 %v1404_v3, %v1399_v2  ;;  %v1215_v36 = vpack.c.bf16 %v1459_v14, %v1454_v13  ;;  %v1231_v37 = vpack.c.bf16 %v1414_v5, %v1409_v4  ;;  %s700_s23 = scalar_lea.vmem [#allocation2], %s1552_s12  ;;  %s333_s11 = sadd.s32 1, %s1316_s11  }
  0x21   : >> { %355 = vrot.lane.b32.xlu0 %v354_v40, %s1322_s15  ;;  %v477_v55 = vsel %vm351_vm1, %v475_v51, %v476_v53  ;;  %v390_v58 = vsel %vm361_vm0, %v388_v54, %v389_v56  ;;  %v1219_v42 = vpack.c.bf16 %v1479_v16, %v1474_v15  ;;  %v414_v47 = vrot.slane %v340_v33, 2  ;;  %p330_p4 = scmp.ge.s32.totalorder %s333_s11, 14  }
  0x22   : >> { %365 = vrot.lane.b32.xlu1 %v364_v39, %s1323_s30  ;;  %v486_v62 = vsel %vm361_vm0, %v484_v57, %v485_v59  ;;  %1228 = vmatprep.subr.bf16.mxu0 %v1227_v32  ;;  %v347_v39 = vld [vmem:[%s1556_s13 + $0x20] sm:$0xff]  ;;  %vm435_vm6 = vcmask 326656   ;;  %vm438_vm7 = vcmask 392192   ;;  %vm441_vm8 = vcmask 457728   ;;  %s1675_s26 = smov (%p330_p4), 0  }
  0x23   : >> { %1230 = vmatpush3.bf16.msra.mxu0 %v1227_v32  ;;  %1216 = vmatprep.subr.bf16.mxu1 %v1215_v36  ;;  %vm444_vm9 = vcmask 523264   ;;  %vm535_vm10 = vcmask 588800   ;;  %vm702_vm11 = vcmask 62464  }
  0x24   : >> { %1232 = vmatprep.subr.bf16.mxu0 %v1231_v37  ;;  %1218 = vmatpush3.bf16.msra.mxu1 %v1215_v36 }
  0x25   : >> { %452 = vrot.lane.b32.xlu0 %v451_v44, %s1322_s15  ;;  %v501_v44 = vrot.slane %v347_v39, 1  ;;  %1220 = vmatprep.subr.bf16.mxu1 %v1219_v42 }
  0x26   : >> { %461 = vrot.lane.b32.xlu1 %v460_v43, %s1323_s30  ;;  %v1235_v43 = vpack.c.bf16 %v1424_v7, %v1419_v6 }
  0x27   : >> { %1234 = vmatpush3.bf16.msra.mxu0 %v1231_v37 }
  0x28   : >> { %1236 = vmatprep.subr.bf16.mxu0 %v1235_v43  ;;  %1222 = vmatpush3.bf16.msra.mxu1 %v1219_v42 }
  0x29   : >> { %367 = vrot.lane.b32.xlu0 %v363_v34, %s1323_s30  ;;  %v341_v34 = vld [vmem:[%s1560_s14 + $0x28] sm:$0xff]  ;;  %1155 = vmatprep.subr.mxu1 %v1484_v17 }
  0x2a   : >> { %373 = vrot.lane.b32.xlu1 %v338_v45, %s1324_s25  ;;  %v406_v40 = vrot.slane %v341_v34, 1 }
  0x2b   : >> { %1238 = vmatpush3.bf16.msra.mxu0 %v1235_v43 }
  0x2c   : >> { %1176 = vmatprep.subr.mxu0 %v1429_v8  ;;  %1156 = vmatpush3.msra.mxu1 %v1484_v17 }
  0x2d   : >> { %463 = vrot.lane.b32.xlu0 %v459_v38, %s1323_s30  ;;  %v405_v38 = vrot.slane %v340_v33, 1 }
  0x2e   : >> { %469 = vrot.lane.b32.xlu1 %v345_v48, %s1324_s25 }
  0x2f   : >> { %v407_v45 = vsel %vm351_vm1, %v405_v38, %v406_v40  ;;  %1177 = vmatpush3.msra.mxu0 %v1429_v8 }
  0x31   : >> { %375 = vrot.lane.b32.xlu0 %v339_v46, %s1324_s25  ;;  %v502_v46 = vrot.slane %v348_v41, 1 }
  0x32   : >> { %382 = vrot.lane.b32.xlu1 %v381_v52, %s1325_s17  ;;  %v511_v52 = vrot.slane %v348_v41, 2 }
  0x33   : >> { %v503_v48 = vsel %vm351_vm1, %v501_v44, %v502_v46 }
  0x35   : >> { %471 = vrot.lane.b32.xlu0 %v346_v50, %s1324_s25  ;;  %v510_v50 = vrot.slane %v347_v39, 2 }
  0x36   : >> { %478 = vrot.lane.b32.xlu1 %v477_v55, %s1325_s17 }
  0x39   : >> { %384 = vrot.lane.b32.xlu0 %v380_v49, %s1325_s17  ;;  %v415_v49 = vrot.slane %v341_v34, 2 }
  0x3a   : >> { %391 = vrot.lane.b32.xlu1 %v390_v58, %s1326_s19 }
  0x3b   : >> { %v416_v51 = vsel %vm361_vm0, %v414_v47, %v415_v49 }
  0x3d   : >> { %480 = vrot.lane.b32.xlu0 %v476_v53, %s1325_s17  ;;  %v512_v53 = vsel %vm361_vm0, %v510_v50, %v511_v52 }
  0x3e   : >> { %487 = vrot.lane.b32.xlu1 %v486_v62, %s1326_s19 }
  0x41   : >> { %393 = vrot.lane.b32.xlu0 %v389_v56, %s1326_s19 }
  0x42   : >> { %399 = vrot.lane.b32.xlu1 %v340_v33, %s1327_s20 }
  0x45   : >> { %489 = vrot.lane.b32.xlu0 %v485_v59, %s1326_s19 }
  0x46   : >> { %495 = vrot.lane.b32.xlu1 %v347_v39, %s1327_s20 }
  0x49   : >> { %401 = vrot.lane.b32.xlu0 %v341_v34, %s1327_s20 }
  0x4a   : >> { %408 = vrot.lane.b32.xlu1 %v407_v45, %s1328_s21 }
  0x4d   : >> { %497 = vrot.lane.b32.xlu0 %v348_v41, %s1327_s20 }
  0x4e   : >> { %504 = vrot.lane.b32.xlu1 %v503_v48, %s1328_s21 }
  0x51   : >> { %410 = vrot.lane.b32.xlu0 %v406_v40, %s1328_s21 }
  0x52   : >> { %417 = vrot.lane.b32.xlu1 %v416_v51, %s1329_s22 }
  0x55   : >> { %506 = vrot.lane.b32.xlu0 %v502_v46, %s1328_s21 }
  0x56   : >> { %513 = vrot.lane.b32.xlu1 %v512_v53, %s1329_s22 }
  0x59   : >> { %419 = vrot.lane.b32.xlu0 %v415_v49, %s1329_s22 }
  0x5a   : >> { %515 = vrot.lane.b32.xlu1 %v511_v52, %s1329_s22 }
  0x8f   : >> { %v455_v54 = vpop.permute.xlu0 %454 }
  0x90   : >> { %v358_v55 = vpop.permute.xlu1 %357 }
  0x93   : >> { %v356_v57 = vpop.permute.xlu0 %355 }
  0x94   : >> { %v366_v56 = vpop.permute.xlu1 %365  ;;  %v424_v45 = vsel %vm423_vm2, %v1569_v31, %v356_v57 }
  0x95   : >> { %v427_v48 = vsel %vm426_vm3, %v424_v45, %v366_v56 }
  0x97   : >> { %v453_v59 = vpop.permute.xlu0 %452 }
  0x98   : >> { %v462_v58 = vpop.permute.xlu1 %461  ;;  %v519_v49 = vsel %vm423_vm2, %v1575_v35, %v453_v59 }
  0x99   : >> { %v521_v57 = vsel %vm426_vm3, %v519_v49, %v462_v58 }
  0x9b   : >> { %v368_v61 = vpop.permute.xlu0 %367 }
  0x9c   : >> { %v374_v60 = vpop.permute.xlu1 %373 }
  0x9d   : >> { %v430_v50 = vsel %vm429_vm4, %v427_v48, %v374_v60 }
  0x9f   : >> { %v464_v63 = vpop.permute.xlu0 %463 }
  0xa0   : >> { %v470_v62 = vpop.permute.xlu1 %469 }
  0xa1   : >> { %v523_v56 = vsel %vm429_vm4, %v521_v57, %v470_v62 }
  0xa3   : >> { %v376_v33 = vpop.permute.xlu0 %375 }
  0xa4   : >> { %v383_v32 = vpop.permute.xlu1 %382 }
  0xa5   : >> { %v433_v53 = vsel %vm432_vm5, %v430_v50, %v383_v32  ;;  %v520_v32 = vsel %vm423_vm2, %v1563_v29, %v455_v54 }
  0xa7   : >> { %v472_v36 = vpop.permute.xlu0 %471 }
  0xa8   : >> { %v479_v34 = vpop.permute.xlu1 %478 }
  0xa9   : >> { %v525_v45 = vsel %vm432_vm5, %v523_v56, %v479_v34 }
  0xab   : >> { %v385_v38 = vpop.permute.xlu0 %384 }
  0xac   : >> { %v392_v37 = vpop.permute.xlu1 %391 }
  0xad   : >> { %v436_v31 = vsel %vm435_vm6, %v433_v53, %v392_v37  ;;  %v425_v37 = vsel %vm423_vm2, %v1566_v30, %v358_v55 }
  0xae   : >> { %v428_v62 = vsel %vm426_vm3, %v425_v37, %v368_v61 }
  0xaf   : >> { %v481_v40 = vpop.permute.xlu0 %480  ;;  %v431_v34 = vsel %vm429_vm4, %v428_v62, %v376_v33 }
  0xb0   : >> { %v488_v39 = vpop.permute.xlu1 %487  ;;  %v434_v30 = vsel %vm432_vm5, %v431_v34, %v385_v38 }
  0xb1   : >> { %v527_v58 = vsel %vm435_vm6, %v525_v45, %v488_v39 }
  0xb3   : >> { %v394_v42 = vpop.permute.xlu0 %393 }
  0xb4   : >> { %v400_v41 = vpop.permute.xlu1 %399  ;;  %v437_v61 = vsel %vm435_vm6, %v434_v30, %v394_v42 }
  0xb5   : >> { %v439_v0 = vsel %vm438_vm7, %v436_v31, %v400_v41 }
  0xb7   : >> { %v490_v44 = vpop.permute.xlu0 %489 }
  0xb8   : >> { %v496_v43 = vpop.permute.xlu1 %495 }
  0xb9   : >> { %v529_v41 = vsel %vm438_vm7, %v527_v58, %v496_v43 }
  0xbb   : >> { %v402_v47 = vpop.permute.xlu0 %401 }
  0xbc   : >> { %v409_v46 = vpop.permute.xlu1 %408  ;;  %v440_v33 = vsel %vm438_vm7, %v437_v61, %v402_v47 }
  0xbd   : >> { %v442_v35 = vsel %vm441_vm8, %v439_v0, %v409_v46  ;;  %v522_v0 = vsel %vm426_vm3, %v520_v32, %v464_v63 }
  0xbe   : >> { %v524_v46 = vsel %vm429_vm4, %v522_v0, %v472_v36 }
  0xbf   : >> { %v498_v52 = vpop.permute.xlu0 %497  ;;  %v526_v55 = vsel %vm432_vm5, %v524_v46, %v481_v40 }
  0xc0   : >> { %v505_v51 = vpop.permute.xlu1 %504  ;;  %v528_v63 = vsel %vm435_vm6, %v526_v55, %v490_v44 }
  0xc1   : >> { %v531_v49 = vsel %vm441_vm8, %v529_v41, %v505_v51  ;;  %v530_v36 = vsel %vm438_vm7, %v528_v63, %v498_v52 }
  0xc3   : >> { %v411_v60 = vpop.permute.xlu0 %410 }
  0xc4   : >> { %v418_v59 = vpop.permute.xlu1 %417  ;;  %v443_v43 = vsel %vm441_vm8, %v440_v33, %v411_v60 }
  0xc5   : >> { %v445_v48 = vsel %vm444_vm9, %v442_v35, %v418_v59 }
  0xc6   : >> { %1178 = vmatprep.mubr.msk.f32.mxu0 %vm535_vm10, %v445_v48 }
  0xc7   : >> { %v507_v54 = vpop.permute.xlu0 %506 }
  0xc8   : >> { %v514_v29 = vpop.permute.xlu1 %513  ;;  %v532_v50 = vsel %vm441_vm8, %v530_v36, %v507_v54 }
  0xc9   : >> { %v533_v39 = vsel %vm444_vm9, %v531_v49, %v514_v29 }
  0xca   : >> { %1157 = vmatprep.mubr.msk.f32.mxu1 %vm535_vm10, %v533_v39 }
  0xcb   : >> { %v420_v51 = vpop.permute.xlu0 %419 }
  0xcc   : >> { %v516_v38 = vpop.permute.xlu1 %515  ;;  %v446_v53 = vsel %vm444_vm9, %v443_v43, %v420_v51 }
  0xcd   : >> { %v534_v40 = vsel %vm444_vm9, %v532_v50, %v516_v38  ;;  %1179 = vmatmul.mubr.msk.f32.vlgmr.msra.gmra.mrb[0].mxu0 %vm535_vm10, %v446_v53 }
  0xce   : >> { %1158 = vmatmul.mubr.msk.f32.vlgmr.msra.gmra.mrb[0].mxu1 %vm535_vm10, %v534_v40 }
 0x1a0   : >> { %v1180_v44 = vpop.f32.mrb[0].mxu0 }
 0x1a1   : >> { %v1159_v42 = vpop.f32.mrb[0].mxu1  ;;  %v689_v52 = vpop.f32.mrb[1].mxu0  ;;  %332 = sbr.rel (!%p330_p4) target bundleno = 24 (0x18), region = 100 }
 0x1a2   : >> { %v695_v47 = vadd.f32 %v1180_v44, %v1159_v42  ;;  %v608_v31 = vpop.f32.mrb[1].mxu1 }
 0x1a3   : >> { %v690_v57 = vadd.f32 %v689_v52, %v608_v31 }
 0x1a4   : >> { %v699_v56 = vmax.f32 %v695_v47, 0.0 }
 0x1a5   : >> { %v698_v35 = vmax.f32 %v690_v57, 0.0 }
 0x1a6   : >> { %703 = vst.msk [vmem:[%s700_s23 + $0x8] sm:$0x3f] %vm702_vm11, %v699_v56 }
 0x1a7   : >> { %701 = vst.msk [vmem:[%s700_s23] sm:$0xff] %vm423_vm2, %v698_v35 }
 0x1a8 LB: >> { %1202 = vmatprep.subr.mxu1 %v1539_v27  ;;  %s1093_s27 = sshll.u32 %s1320_s26, 4  ;;  %v1239_v2 = vpack.c.bf16 %v1499_v19, %v1494_v18  ;;  %s1330_s16 = smov 16   ;;  %v1243_v10 = vpack.c.bf16 %v1509_v21, %v1504_v20  ;;  %v1247_v15 = vpack.c.bf16 %v1519_v23, %v1514_v22  ;;  %v1251_v60 = vpack.c.bf16 %v1529_v25, %v1524_v24  ;;  %s1320_s26 = sphi %s1675_s26, %s709_s26  }
 0x1a9   : >> { %1203 = vmatpush3.msra.mxu1 %v1539_v27  ;;  %s1685_s28 = scalar_lea.vmem [#allocation2], %s1093_s27  ;;  %s1331_s18 = smov 8   ;;  %vm989_vm12 = vcmask 125952  }
 0x1aa   : >> { %1240 = vmatprep.subr.bf16.mxu0 %v1239_v2  ;;  %s1332_s8 = smov 24   ;;  %s1333_s9 = smov 32  }
 0x1ab   : >> { %1242 = vmatpush3.bf16.msra.mxu0 %v1239_v2  ;;  %s1334_s10 = smov 40   ;;  %s1335_s11 = smov 48  }
 0x1ac   : >> { %1244 = vmatprep.subr.bf16.mxu0 %v1243_v10  ;;  %s1336_s12 = smov 56   ;;  %s1337_s13 = smov 64  }
 0x1ad   : >> { %s987_s14 = scalar_lea.vmem %s1489_s29, %s1093_s27  ;;  %s709_s26 = sadd.s32 1, %s1320_s26  }
 0x1ae   : >> { %v1688_v1 = vld [vmem:[%s1685_s28 + $0x8] sm:$0x3f]  ;;  %v1695_v5 = vld [vmem:[%s1685_s28] sm:$0xff]  ;;  %v715_v6 = vld [vmem:[%s1685_s28 + $0x18] sm:$0x3f]  ;;  %p706_p5 = scmp.ge.s32.totalorder %s709_s26, 12  }
 0x1af   : >> { %v732_v3 = vrot.slane %v1688_v1, 2  ;;  %v722_v4 = vrot.slane %v1688_v1, 1  ;;  %v714_v7 = vld [vmem:[%s1685_s28 + $0x10] sm:$0xff]  ;;  %v731_v8 = vrot.slane %v1695_v5, 2  ;;  %v721_v9 = vrot.slane %v1695_v5, 1  ;;  %1246 = vmatpush3.bf16.msra.mxu0 %v1243_v10  ;;  %v716_v32 = vld [vmem:[%s1685_s28 + $0x20] sm:$0xff] }
 0x1b0   : >> { %v749_v11 = vrot.slane %v715_v6, 1  ;;  %v748_v14 = vrot.slane %v714_v7, 1  ;;  %1248 = vmatprep.subr.bf16.mxu0 %v1247_v15  ;;  %v758_v17 = vrot.slane %v715_v6, 2  ;;  %v757_v59 = vrot.slane %v714_v7, 2  ;;  %v717_v48 = vld [vmem:[%s1685_s28 + $0x28] sm:$0x3f] }
 0x1b1   : >> { %736 = vrot.lane.b32.xlu1 %v732_v3, %s1330_s16  ;;  %726 = vrot.lane.b32.xlu0 %v722_v4, %s1331_s18  ;;  %v733_v12 = vsel %vm361_vm0, %v731_v8, %v732_v3  ;;  %v723_v13 = vsel %vm351_vm1, %v721_v9, %v722_v4  ;;  %v775_v37 = vrot.slane %v717_v48, 1  ;;  %v774_v58 = vrot.slane %v716_v32, 1 }
 0x1b2   : >> { %v750_v16 = vsel %vm351_vm1, %v748_v14, %v749_v11  ;;  %v759_v45 = vsel %vm361_vm0, %v757_v59, %v758_v17  ;;  %v784_v0 = vrot.slane %v717_v48, 2  ;;  %v783_v41 = vrot.slane %v716_v32, 2 }
 0x1b3   : >> { %1250 = vmatpush3.bf16.msra.mxu0 %v1247_v15  ;;  %v776_v62 = vsel %vm351_vm1, %v774_v58, %v775_v37 }
 0x1b4   : >> { %1252 = vmatprep.subr.bf16.mxu0 %v1251_v60  ;;  %v785_v34 = vsel %vm361_vm0, %v783_v41, %v784_v0 }
 0x1b5   : >> { %744 = vrot.lane.b32.xlu1 %v715_v6, %s1332_s8  ;;  %742 = vrot.lane.b32.xlu0 %v714_v7, %s1332_s8 }
 0x1b7   : >> { %1254 = vmatpush3.bf16.msra.mxu0 %v1251_v60 }
 0x1b8   : >> { %1197 = vmatprep.subr.mxu0 %v1534_v26 }
 0x1b9   : >> { %734 = vrot.lane.b32.xlu1 %v733_v12, %s1330_s16  ;;  %724 = vrot.lane.b32.xlu0 %v723_v13, %s1331_s18 }
 0x1bb   : >> { %1198 = vmatpush3.msra.mxu0 %v1534_v26 }
 0x1bd   : >> { %753 = vrot.lane.b32.xlu1 %v749_v11, %s1333_s9  ;;  %751 = vrot.lane.b32.xlu0 %v750_v16, %s1333_s9 }
 0x1c1   : >> { %762 = vrot.lane.b32.xlu1 %v758_v17, %s1334_s10  ;;  %760 = vrot.lane.b32.xlu0 %v759_v45, %s1334_s10 }
 0x1c5   : >> { %770 = vrot.lane.b32.xlu1 %v717_v48, %s1335_s11  ;;  %768 = vrot.lane.b32.xlu0 %v716_v32, %s1335_s11 }
 0x1c9   : >> { %779 = vrot.lane.b32.xlu1 %v775_v37, %s1336_s12  ;;  %777 = vrot.lane.b32.xlu0 %v776_v62, %s1336_s12 }
 0x1cd   : >> { %788 = vrot.lane.b32.xlu1 %v784_v0, %s1337_s13  ;;  %786 = vrot.lane.b32.xlu0 %v785_v34, %s1337_s13 }
 0x223   : >> { %v737_v46 = vpop.permute.xlu1 %736  ;;  %v727_v49 = vpop.permute.xlu0 %726 }
 0x224   : >> { %v794_v50 = vsel %vm423_vm2, %v1688_v1, %v727_v49 }
 0x225   : >> { %v797_v53 = vsel %vm426_vm3, %v794_v50, %v737_v46 }
 0x227   : >> { %v745_v29 = vpop.permute.xlu1 %744  ;;  %v743_v54 = vpop.permute.xlu0 %742 }
 0x228   : >> { %v800_v42 = vsel %vm429_vm4, %v797_v53, %v745_v29 }
 0x22b   : >> { %v735_v30 = vpop.permute.xlu1 %734  ;;  %v725_v55 = vpop.permute.xlu0 %724 }
 0x22c   : >> { %v793_v63 = vsel %vm423_vm2, %v1695_v5, %v725_v55 }
 0x22d   : >> { %v796_v43 = vsel %vm426_vm3, %v793_v63, %v735_v30 }
 0x22e   : >> { %v799_v40 = vsel %vm429_vm4, %v796_v43, %v743_v54 }
 0x22f   : >> { %v754_v39 = vpop.permute.xlu1 %753  ;;  %v752_v61 = vpop.permute.xlu0 %751 }
 0x230   : >> { %v803_v31 = vsel %vm432_vm5, %v800_v42, %v754_v39  ;;  %v802_v52 = vsel %vm432_vm5, %v799_v40, %v752_v61 }
 0x233   : >> { %v763_v33 = vpop.permute.xlu1 %762  ;;  %v761_v36 = vpop.permute.xlu0 %760 }
 0x234   : >> { %v806_v57 = vsel %vm435_vm6, %v803_v31, %v763_v33  ;;  %v805_v56 = vsel %vm435_vm6, %v802_v52, %v761_v36 }
 0x237   : >> { %v771_v38 = vpop.permute.xlu1 %770  ;;  %v769_v51 = vpop.permute.xlu0 %768 }
 0x238   : >> { %v809_v35 = vsel %vm438_vm7, %v806_v57, %v771_v38  ;;  %v808_v1 = vsel %vm438_vm7, %v805_v56, %v769_v51 }
 0x23b   : >> { %v780_v44 = vpop.permute.xlu1 %779  ;;  %v778_v47 = vpop.permute.xlu0 %777 }
 0x23c   : >> { %v812_v2 = vsel %vm441_vm8, %v809_v35, %v780_v44  ;;  %v811_v3 = vsel %vm441_vm8, %v808_v1, %v778_v47 }
 0x23f   : >> { %v789_v4 = vpop.permute.xlu1 %788  ;;  %v787_v5 = vpop.permute.xlu0 %786 }
 0x240   : >> { %v815_v6 = vsel %vm444_vm9, %v812_v2, %v789_v4  ;;  %v814_v7 = vsel %vm444_vm9, %v811_v3, %v787_v5 }
 0x241   : >> { %1199 = vmatprep.mubr.msk.f32.mxu0 %vm535_vm10, %v814_v7 }
 0x242   : >> { %1200 = vmatmul.mubr.msk.f32.vlgmr.msra.gmra.mrb[0].mxu0 %vm535_vm10, %v815_v6 }
 0x315   : >> { %v1201_v8 = vpop.f32.mrb[0].mxu0 }
 0x316   : >> { %v889_v9 = vpop.f32.mrb[1].mxu0  ;;  %v899_v11 = vmax.f32 %v1201_v8, 0.0 }
 0x317   : >> { %v898_v10 = vmax.f32 %v889_v9, 0.0 }
 0x319   : >> { %1204 = vmatprep.mubr.msk.f32.mxu1 %vm423_vm2, %v898_v10 }
 0x31a   : >> { %1205 = vmatmul.mubr.msk.f32.vlgmr.msra.gmra.mrb[0].mxu1 %vm423_vm2, %v899_v11 }
 0x3eb   : > { %708 = sbr.rel (!%p706_p5) target bundleno = 424 (0x1a8), region = 111 }
 0x3ed   : >> { %v1206_v12 = vpop.f32.mrb[0].mxu1 }
 0x3ee   : >> { %v984_v13 = vadd.f32 %v1206_v12, %v1544_v28  ;;  %v978_v14 = vpop.f32.mrb[1].mxu1 }
 0x3ef   : >> { %v979_v15 = vadd.f32 %v1544_v28, %v978_v14 }
 0x3f0   : >> { %990 = vst.msk [vmem:[%s987_s14 + $0x8] sm:$0xf] %vm989_vm12, %v984_v13 }
 0x3f1   : >> { %988 = vst.msk [vmem:[%s987_s14] sm:$0xff] %vm426_vm3, %v979_v15 }
 0x3f2 PF: > { %s17_s24 = sadd.s32 1, %s1312_s24  }
 0x3f3   : > { %p14_p6 = scmp.ge.s32.totalorder %s17_s24, 4  }
 0x3f5   :  { %16 = sbr.rel (!%p14_p6) target bundleno = 1 (0x1), region = 122 }

// kernel: unet_forward.9
= control target key start
LH: loop header
LB: loop body
LE: loop exit
PB: predicated region body
PF: predicated region fallthrough
CT: control target
= control target key end

     0   :  { %s1545_s24 = smov 0   ;;  %s2087_s0 = inlined_call_operand.vmem [shape: f32[2,24,24,4], index: 0, kind: input, shape index: {}]   ;;  %s2088_s1 = inlined_call_operand.vmem [shape: f32[2,24,24,4], index: 1, kind: input, shape index: {}]   ;;  %s2089_s2 = inlined_call_operand.vmem [shape: f32[36,4], index: 2, kind: input, shape index: {}]   ;;  %s2090_s3 = inlined_call_operand.vmem [shape: f32[36,4], index: 3, kind: input, shape index: {}]   ;;  %s2091_s4 = inlined_call_operand.vmem [shape: f32[36,4], index: 4, kind: input, shape index: {}]   ;;  %s2092_s5 = inlined_call_operand.vmem [shape: f32[4,2], index: 5, kind: input, shape index: {}]   ;;  %s2093_s6 = inlined_call_operand.vmem [shape: f32[1,2], index: 6, kind: input, shape index: {}]   ;;  %s2094_s7 = inlined_call_operand.vmem [shape: f32[2,20,20,2], index: 7, kind: output, shape index: {}]  }
   0x1 LB: > { %s1267_s25 = sadd.s32 4294967295, %s1473_s24   ;;  %p1271_p0 = scmp.ge.s32.totalorder %s1473_s24, 1  ;;  %s1473_s24 = sphi %s1545_s24, %s17_s24  }
   0x2   : > { %p247_p1 = scmp.lt.s32.totalorder %s1473_s24, 3 }
   0x4   : > { %p248_p2 = pnand %p1271_p0, %p247_p1 }
   0x5   : > { %p284_p3 = scmp.lt.s32.totalorder (!%p248_p2), %s1267_s25, 1  ;;  %v1556_v0 = vld [vmem:[%s2089_s2] sm:$0xff] (!%p248_p2)  ;;  %v1561_v1 = vld [vmem:[%s2089_s2 + $0x8] sm:$0xff] (!%p248_p2)  ;;  %v1566_v2 = vld [vmem:[%s2089_s2 + $0x10] sm:$0xff] (!%p248_p2)  ;;  %s1653_s28 = smov (!%p248_p2), 0  }
   0x6   : > { %251 = sbr.rel (%p248_p2) target bundleno = 1048 (0x418), region = 48  ;;  %v1571_v3 = vld [vmem:[%s2089_s2 + $0x18] sm:$0xff] (!%p248_p2)  ;;  %v1576_v4 = vld [vmem:[%s2089_s2 + $0x20] sm:$0xf] (!%p248_p2)  ;;  %v1586_v6 = vld [vmem:[%s2090_s3 + $0x8] sm:$0xff] (!%p248_p2) }
   0x7   : > { %v1581_v5 = vld [vmem:[%s2090_s3] sm:$0xff] (!%p248_p2)  ;;  %v1591_v7 = vld [vmem:[%s2090_s3 + $0x10] sm:$0xff] (!%p248_p2)  ;;  %v1596_v8 = vld [vmem:[%s2090_s3 + $0x18] sm:$0xff] (!%p248_p2) }
   0x8   : > { %v1601_v9 = vld [vmem:[%s2090_s3 + $0x20] sm:$0xf] (!%p248_p2)  ;;  %v1611_v11 = vld [vmem:[%s2091_s4 + $0x8] sm:$0xff] (!%p248_p2)  ;;  %v1616_v12 = vld [vmem:[%s2091_s4 + $0x10] sm:$0xff] (!%p248_p2) }
   0x9   : > { %v1606_v10 = vld [vmem:[%s2091_s4] sm:$0xff] (!%p248_p2)  ;;  %v1621_v13 = vld [vmem:[%s2091_s4 + $0x18] sm:$0xff] (!%p248_p2) }
   0xa   : > { %v1626_v14 = vld [vmem:[%s2091_s4 + $0x20] sm:$0xf] (!%p248_p2) }
   0xb   : > { %v1631_v15 = vld [vmem:[%s2092_s5] sm:$0xf] (!%p248_p2) }
   0xc   : > { %v1636_v16 = vld [vmem:[%s2093_s6] ss:$0 sm:$0xff] (!%p248_p2) }
   0xd   : > { %s2096_s25 = smov (!%p284_p3, %s1267_s25), 1 }
   0xe   : > { %s1411_s29 = smul.u32 576, %s2096_s25 }
   0xf   : > { %s1412_s13 = smul.u32 480, %s2096_s25 }
  0x10   : > { %s1641_s20 = scalar_lea.vmem %s2087_s0, %s1411_s29  ;;  %s1646_s23 = scalar_lea.vmem %s2088_s1, %s1411_s29 }
  0x11   : > { %s1651_s27 = scalar_lea.vmem %s2094_s7, %s1412_s13 }
  0x12 LB: >> { %s1659_s30 = smul.u32 24, %s1477_s28  ;;  %s1483_s9 = smov 12   ;;  %vm361_vm0 = vcmask 1045504   ;;  %vm346_vm1 = vcmask 1046528   ;;  %vm633_vm2 = vcmask 1043456   ;;  %vm1491_vm3 = vmmov 0   ;;  %s1477_s28 = sphi %s1653_s28, %s321_s28  }
  0x13   : >> { %s1484_s10 = smov 8   ;;  %s1485_s11 = smov 4   ;;  %vm456_vm4 = vcmask 31744   ;;  %vm460_vm5 = vcmask 64512   ;;  %vm464_vm6 = vcmask 97280   ;;  %vm468_vm7 = vcmask 130048  }
  0x14   : >> { %s1663_s29 = scalar_lea.vmem %s1646_s23, %s1659_s30  ;;  %s1667_s8 = scalar_lea.vmem %s1641_s20, %s1659_s30  ;;  %vm472_vm8 = vcmask 162816   ;;  %vm476_vm9 = vcmask 195584   ;;  %vm480_vm10 = vcmask 228352   ;;  %vm484_vm11 = vcmask 261120  }
  0x15   : >> { %v1670_v17 = vld [vmem:[%s1663_s29 + $0x18] sm:$0xff]  ;;  %v1674_v19 = vld [vmem:[%s1667_s8] sm:$0xff]  ;;  %v1680_v20 = vld [vmem:[%s1667_s8 + $0x8] sm:$0xff]  ;;  %s1486_s12 = smov 16   ;;  %s1487_s13 = smov 20   ;;  %vm623_vm12 = vcmask 293888  }
  0x16   : >> { %v327_v18 = vld [vmem:[%s1667_s8 + $0x18] sm:$0xff]  ;;  %522 = vrot.lane.b32.xlu1 %v1670_v17, %s1483_s9  ;;  %v1683_v21 = vld [vmem:[%s1663_s29] sm:$0xff]  ;;  %v362_v22 = vrot.slane %v1674_v19, 2  ;;  %v363_v23 = vrot.slane %v1680_v20, 2  ;;  %v347_v24 = vrot.slane %v1674_v19, 1  ;;  %v348_v25 = vrot.slane %v1680_v20, 1 }
  0x17   : >> { %379 = vrot.lane.b32.xlu0 %v327_v18, %s1483_s9  ;;  %v1690_v26 = vld [vmem:[%s1663_s29 + $0x8] sm:$0xff]  ;;  %v505_v27 = vrot.slane %v1683_v21, 2  ;;  %v491_v29 = vrot.slane %v1683_v21, 1  ;;  %v1697_v31 = vld [vmem:[%s1663_s29 + $0x20] sm:$0xff]  ;;  %v531_v35 = vrot.slane %v1670_v17, 1  ;;  %v388_v36 = vrot.slane %v327_v18, 1 }
  0x18   : >> { %v506_v28 = vrot.slane %v1690_v26, 2  ;;  %v492_v30 = vrot.slane %v1690_v26, 1  ;;  %v1700_v32 = vld [vmem:[%s1667_s8 + $0x20] sm:$0xff]  ;;  %v364_v33 = vsel %vm361_vm0, %v362_v22, %v363_v23  ;;  %v349_v34 = vsel %vm346_vm1, %v347_v24, %v348_v25  ;;  %v1714_v41 = vld [vmem:[%s1667_s8 + $0x10] sm:$0xff]  ;;  %v1730_v48 = vld [vmem:[%s1663_s29 + $0x38] sm:$0xff]  ;;  %s1489_s14 = smov 24  }
  0x19   : >> { %v532_v39 = vrot.slane %v1697_v31, 1  ;;  %v389_v40 = vrot.slane %v1700_v32, 1  ;;  %v402_v42 = vrot.slane %v327_v18, 2  ;;  %v403_v45 = vrot.slane %v1700_v32, 2  ;;  %v1727_v47 = vld [vmem:[%s1663_s29 + $0x10] sm:$0xff]  ;;  %v1733_v49 = vld [vmem:[%s1663_s29 + $0x40] sm:$0xff] }
  0x1a   : >> { %367 = vrot.lane.b32.xlu1 %v364_v33, %s1484_s10  ;;  %v507_v37 = vsel %vm361_vm0, %v505_v27, %v506_v28  ;;  %v493_v38 = vsel %vm346_vm1, %v491_v29, %v492_v30  ;;  %v350_v46 = vrot.slane %v1714_v41, 1  ;;  %v545_v50 = vrot.slane %v1670_v17, 2  ;;  %v330_v22 = vld [vmem:[%s1667_s8 + $0x30] sm:$0xff]  ;;  %s1492_s15 = smov 28   ;;  %s1493_s16 = smov 32  }
  0x1b   : >> { %352 = vrot.lane.b32.xlu0 %v349_v34, %s1485_s11  ;;  %v533_v43 = vsel %vm346_vm1, %v531_v35, %v532_v39  ;;  %v390_v44 = vsel %vm346_vm1, %v388_v36, %v389_v40  ;;  %v546_v51 = vrot.slane %v1697_v31, 2  ;;  %v494_v52 = vrot.slane %v1727_v47, 1  ;;  %s812_s17 = scalar_lea.vmem [#allocation2], %s1659_s30  ;;  %s321_s28 = sadd.s32 1, %s1477_s28  }
  0x1c   : >> { %v572_v53 = vrot.slane %v1730_v48, 1  ;;  %v574_v54 = vrot.slane %v1733_v49, 1  ;;  %v404_v55 = vsel %vm361_vm0, %v402_v42, %v403_v45  ;;  %v351_v56 = vsel %vm346_vm1, %v348_v25, %v350_v46  ;;  %v329_v42 = vld [vmem:[%s1667_s8 + $0x28] sm:$0xff]  ;;  %p318_p4 = scmp.ge.s32.totalorder %s321_s28, 22  }
  0x1d   : >> { %v586_v57 = vrot.slane %v1730_v48, 2  ;;  %v588_v58 = vrot.slane %v1733_v49, 2  ;;  %v547_v61 = vsel %vm361_vm0, %v545_v50, %v546_v51  ;;  %v495_v62 = vsel %vm346_vm1, %v492_v30, %v494_v52  ;;  %v1785_v30 = vld [vmem:[%s1667_s8 + $0x38] sm:$0xff]  ;;  %s1959_s18 = smov (%p318_p4), 0  }
  0x1e   : >> { %510 = vrot.lane.b32.xlu1 %v507_v37, %s1484_s10  ;;  %v1753_v59 = vsel %vm346_vm1, %v572_v53, %v574_v54  ;;  %v365_v63 = vrot.slane %v1714_v41, 2  ;;  %v1488_v17 = vmov 0.0|0.0   ;;  %v1397_v18 = vpack.c.bf16 %v1561_v1, %v1556_v0 }
  0x1f   : >> { %496 = vrot.lane.b32.xlu0 %v493_v38, %s1485_s11  ;;  %v1760_v60 = vsel %vm361_vm0, %v586_v57, %v588_v58  ;;  %1396 = vmatprep.subr.bf16.mxu0 %v1488_v17  ;;  %v508_v25 = vrot.slane %v1727_v47, 2  ;;  %v1391_v27 = vpack.c.bf16 %v1586_v6, %v1581_v5  ;;  %v1400_v29 = vpack.c.bf16 %v1571_v3, %v1566_v2 }
  0x20   : >> { %1390 = vmatprep.subr.bf16.mxu1 %v1488_v17  ;;  %1398 = vmatpush3.bf16.msra.mxu0 %v1397_v18  ;;  %v366_v24 = vsel %vm361_vm0, %v363_v23, %v365_v63  ;;  %v428_v33 = vrot.slane %v330_v22, 1  ;;  %v340_v23 = vld [vmem:[%s1663_s29 + $0x30] sm:$0xff]  ;;  %v429_v35 = vrot.slane %v1785_v30, 1  ;;  %v1490_v36 = vmov 0.0  }
  0x21   : >> { %1399 = vmatprep.subr.bf16.mxu0 %v1488_v17  ;;  %1392 = vmatpush3.bf16.msra.mxu1 %v1391_v27  ;;  %v509_v34 = vsel %vm361_vm0, %v506_v28, %v508_v25  ;;  %v1394_v37 = vpack.c.bf16 %v1596_v8, %v1591_v7  ;;  %v571_v28 = vrot.slane %v340_v23, 1  ;;  %v443_v50 = vrot.slane %v1785_v30, 2 }
  0x22   : >> { %536 = vrot.lane.b32.xlu1 %v533_v43, %s1486_s12  ;;  %1393 = vmatprep.subr.bf16.mxu1 %v1488_v17  ;;  %v430_v38 = vsel %vm346_vm1, %v428_v33, %v429_v35  ;;  %v442_v43 = vrot.slane %v330_v22, 2  ;;  %vm815_vm13 = vcmask 29696  }
  0x23   : >> { %393 = vrot.lane.b32.xlu0 %v390_v44, %s1486_s12  ;;  %1351 = vmatprep.mubr.msk.f32.mxu0 %vm1491_vm3, %v1490_v36  ;;  %v573_v44 = vsel %vm346_vm1, %v571_v28, %v572_v53 }
  0x24   : >> { %1401 = vmatpush3.bf16.msra.mxu0 %v1400_v29  ;;  %1332 = vmatprep.mubr.msk.f32.mxu1 %vm1491_vm3, %v1490_v36 }
  0x25   : >> { %1349 = vmatprep.subr.mxu0 %v1490_v36  ;;  %1395 = vmatpush3.bf16.msra.mxu1 %v1394_v37 }
  0x26   : >> { %407 = vrot.lane.b32.xlu1 %v404_v55, %s1487_s13  ;;  %1330 = vmatprep.subr.mxu1 %v1490_v36  ;;  %v391_v55 = vrot.slane %v329_v42, 1 }
  0x27   : >> { %354 = vrot.lane.b32.xlu0 %v351_v56, %s1485_s11  ;;  %v339_v56 = vld [vmem:[%s1663_s29 + $0x28] sm:$0xff] }
  0x28   : >> { %1350 = vmatpush3.msk.msra.mxu0 %vm633_vm2, %v1576_v4  ;;  %v392_v17 = vsel %vm346_vm1, %v389_v40, %v391_v55  ;;  %v534_v18 = vrot.slane %v339_v56, 1  ;;  %v548_v27 = vrot.slane %v339_v56, 2 }
  0x29   : >> { %1331 = vmatpush3.msk.msra.mxu1 %vm633_vm2, %v1601_v9 }
  0x2a   : >> { %550 = vrot.lane.b32.xlu1 %v547_v61, %s1487_s13  ;;  %v585_v61 = vrot.slane %v340_v23, 2 }
  0x2b   : >> { %498 = vrot.lane.b32.xlu0 %v495_v62, %s1485_s11  ;;  %v444_v62 = vsel %vm361_vm0, %v442_v43, %v443_v50 }
  0x2c   : >> { %v587_v53 = vsel %vm361_vm0, %v585_v61, %v586_v57 }
  0x2e   : >> { %419 = vrot.lane.b32.xlu1 %v330_v22, %s1489_s14  ;;  %v535_v22 = vsel %vm346_vm1, %v532_v39, %v534_v18  ;;  %v549_v39 = vsel %vm361_vm0, %v546_v51, %v548_v27 }
  0x2f   : >> { %369 = vrot.lane.b32.xlu0 %v366_v24, %s1484_s10  ;;  %v405_v24 = vrot.slane %v329_v42, 2 }
  0x31   : >> { %v406_v40 = vsel %vm361_vm0, %v403_v45, %v405_v24 }
  0x32   : >> { %562 = vrot.lane.b32.xlu1 %v340_v23, %s1489_s14 }
  0x33   : >> { %512 = vrot.lane.b32.xlu0 %v509_v34, %s1484_s10 }
  0x36   : >> { %433 = vrot.lane.b32.xlu1 %v430_v38, %s1492_s15 }
  0x37   : >> { %381 = vrot.lane.b32.xlu0 %v1700_v32, %s1483_s9  ;;  %v332_v32 = vld [vmem:[%s1667_s8 + $0x40] sm:$0xff] }
  0x38   : >> { %v431_v45 = vrot.slane %v332_v32, 1 }
  0x3a   : >> { %576 = vrot.lane.b32.xlu1 %v573_v44, %s1492_s15 }
  0x3b   : >> { %524 = vrot.lane.b32.xlu0 %v1697_v31, %s1483_s9  ;;  %v432_v31 = vsel %vm346_vm1, %v429_v35, %v431_v45 }
  0x3e   : >> { %447 = vrot.lane.b32.xlu1 %v444_v62, %s1493_s16 }
  0x3f   : >> { %395 = vrot.lane.b32.xlu0 %v392_v17, %s1486_s12 }
  0x42   : >> { %590 = vrot.lane.b32.xlu1 %v587_v53, %s1493_s16 }
  0x43   : >> { %538 = vrot.lane.b32.xlu0 %v535_v22, %s1486_s12 }
  0x46   : >> { %409 = vrot.lane.b32.xlu1 %v406_v40, %s1487_s13 }
  0x47   : >> { %356 = vrot.lane.b32.xlu0 %v350_v46, %s1485_s11  ;;  %v445_v46 = vrot.slane %v332_v32, 2 }
  0x49   : >> { %v446_v51 = vsel %vm361_vm0, %v443_v50, %v445_v46 }
  0x4a   : >> { %552 = vrot.lane.b32.xlu1 %v549_v39, %s1487_s13 }
  0x4b   : >> { %500 = vrot.lane.b32.xlu0 %v494_v52, %s1485_s11 }
  0x4e   : >> { %421 = vrot.lane.b32.xlu1 %v1785_v30, %s1489_s14 }
  0x4f   : >> { %371 = vrot.lane.b32.xlu0 %v365_v63, %s1484_s10 }
  0x52   : >> { %564 = vrot.lane.b32.xlu1 %v1730_v48, %s1489_s14 }
  0x53   : >> { %514 = vrot.lane.b32.xlu0 %v508_v25, %s1484_s10 }
  0x56   : >> { %435 = vrot.lane.b32.xlu1 %v432_v31, %s1492_s15 }
  0x57   : >> { %383 = vrot.lane.b32.xlu0 %v329_v42, %s1483_s9 }
  0x5a   : >> { %578 = vrot.lane.b32.xlu1 %v1753_v59, %s1492_s15 }
  0x5b   : >> { %526 = vrot.lane.b32.xlu0 %v339_v56, %s1483_s9 }
  0x5e   : >> { %449 = vrot.lane.b32.xlu1 %v446_v51, %s1493_s16 }
  0x5f   : >> { %397 = vrot.lane.b32.xlu0 %v391_v55, %s1486_s12 }
  0x62   : >> { %592 = vrot.lane.b32.xlu1 %v1760_v60, %s1493_s16 }
  0x63   : >> { %540 = vrot.lane.b32.xlu0 %v534_v18, %s1486_s12 }
  0x66   : >> { %554 = vrot.lane.b32.xlu1 %v548_v27, %s1487_s13 }
  0x67   : >> { %411 = vrot.lane.b32.xlu0 %v405_v24, %s1487_s13 }
  0x6a   : >> { %566 = vrot.lane.b32.xlu1 %v1733_v49, %s1489_s14 }
  0x6b   : >> { %423 = vrot.lane.b32.xlu0 %v332_v32, %s1489_s14 }
  0x6e   : >> { %580 = vrot.lane.b32.xlu1 %v574_v54, %s1492_s15 }
  0x6f   : >> { %437 = vrot.lane.b32.xlu0 %v431_v45, %s1492_s15 }
  0x72   : >> { %594 = vrot.lane.b32.xlu1 %v588_v58, %s1493_s16 }
  0x73   : >> { %451 = vrot.lane.b32.xlu0 %v445_v46, %s1493_s16 }
  0x88   : >> { %v523_v48 = vpop.permute.xlu1 %522 }
  0x89   : >> { %v380_v52 = vpop.permute.xlu0 %379 }
  0x8c   : >> { %v368_v57 = vpop.permute.xlu1 %367 }
  0x8d   : >> { %v353_v59 = vpop.permute.xlu0 %352 }
  0x8e   : >> { %v457_v58 = vsel %vm456_vm4, %v1674_v19, %v353_v59 }
  0x8f   : >> { %v461_v43 = vsel %vm460_vm5, %v457_v58, %v368_v57 }
  0x90   : >> { %v511_v60 = vpop.permute.xlu1 %510  ;;  %v465_v50 = vsel %vm464_vm6, %v461_v43, %v380_v52 }
  0x91   : >> { %v497_v63 = vpop.permute.xlu0 %496 }
  0x92   : >> { %v599_v28 = vsel %vm456_vm4, %v1683_v21, %v497_v63 }
  0x93   : >> { %v602_v44 = vsel %vm460_vm5, %v599_v28, %v511_v60 }
  0x94   : >> { %v537_v25 = vpop.permute.xlu1 %536  ;;  %v605_v19 = vsel %vm464_vm6, %v602_v44, %v523_v48 }
  0x95   : >> { %v394_v29 = vpop.permute.xlu0 %393  ;;  %v608_v22 = vsel %vm468_vm7, %v605_v19, %v537_v25 }
  0x96   : >> { %v469_v61 = vsel %vm468_vm7, %v465_v50, %v394_v29 }
  0x98   : >> { %v408_v30 = vpop.permute.xlu1 %407 }
  0x99   : >> { %v355_v33 = vpop.permute.xlu0 %354  ;;  %v473_v21 = vsel %vm472_vm8, %v469_v61, %v408_v30 }
  0x9a   : >> { %v458_v30 = vsel %vm456_vm4, %v1680_v20, %v355_v33 }
  0x9c   : >> { %v551_v23 = vpop.permute.xlu1 %550 }
  0x9d   : >> { %v499_v54 = vpop.permute.xlu0 %498  ;;  %v611_v40 = vsel %vm472_vm8, %v608_v22, %v551_v23 }
  0xa0   : >> { %v420_v34 = vpop.permute.xlu1 %419 }
  0xa1   : >> { %v370_v35 = vpop.permute.xlu0 %369  ;;  %v477_v62 = vsel %vm476_vm9, %v473_v21, %v420_v34 }
  0xa2   : >> { %v462_v23 = vsel %vm460_vm5, %v458_v30, %v370_v35 }
  0xa4   : >> { %v563_v37 = vpop.permute.xlu1 %562 }
  0xa5   : >> { %v513_v49 = vpop.permute.xlu0 %512  ;;  %v614_v27 = vsel %vm476_vm9, %v611_v40, %v563_v37 }
  0xa8   : >> { %v434_v38 = vpop.permute.xlu1 %433 }
  0xa9   : >> { %v382_v42 = vpop.permute.xlu0 %381  ;;  %v481_v17 = vsel %vm480_vm10, %v477_v62, %v434_v38  ;;  %v600_v38 = vsel %vm456_vm4, %v1690_v26, %v499_v54 }
  0xaa   : >> { %v466_v34 = vsel %vm464_vm6, %v462_v23, %v382_v42  ;;  %v603_v44 = vsel %vm460_vm5, %v600_v38, %v513_v49 }
  0xac   : >> { %v577_v55 = vpop.permute.xlu1 %576 }
  0xad   : >> { %v525_v56 = vpop.permute.xlu0 %524  ;;  %v617_v39 = vsel %vm480_vm10, %v614_v27, %v577_v55 }
  0xae   : >> { %v606_v55 = vsel %vm464_vm6, %v603_v44, %v525_v56 }
  0xb0   : >> { %v448_v18 = vpop.permute.xlu1 %447 }
  0xb1   : >> { %v396_v53 = vpop.permute.xlu0 %395  ;;  %v485_v24 = vsel %vm484_vm11, %v481_v17, %v448_v18 }
  0xb2   : >> { %1352 = vmatmul.mubr.msk.f32.vlgmr.msra.gmra.mrb[0].mxu0 %vm623_vm12, %v485_v24  ;;  %v470_v28 = vsel %vm468_vm7, %v466_v34, %v396_v53 }
  0xb3   : >> { %1354 = vmatprep.mubr.msk.f32.mxu0 %vm1491_vm3, %v1490_v36 }
  0xb4   : >> { %v591_v32 = vpop.permute.xlu1 %590 }
  0xb5   : >> { %v539_v45 = vpop.permute.xlu0 %538  ;;  %v620_v31 = vsel %vm484_vm11, %v617_v39, %v591_v32 }
  0xb6   : >> { %1333 = vmatmul.mubr.msk.f32.vlgmr.msra.gmra.mrb[0].mxu1 %vm623_vm12, %v620_v31  ;;  %v609_v42 = vsel %vm468_vm7, %v606_v55, %v539_v45 }
  0xb7   : >> { %1335 = vmatprep.mubr.msk.f32.mxu1 %vm1491_vm3, %v1490_v36 }
  0xb8   : >> { %v410_v46 = vpop.permute.xlu1 %409 }
  0xb9   : >> { %v357_v51 = vpop.permute.xlu0 %356  ;;  %v474_v43 = vsel %vm472_vm8, %v470_v28, %v410_v46 }
  0xba   : >> { %v459_v22 = vsel %vm456_vm4, %v1714_v41, %v357_v51 }
  0xbc   : >> { %v553_v48 = vpop.permute.xlu1 %552 }
  0xbd   : >> { %v501_v52 = vpop.permute.xlu0 %500  ;;  %v612_v19 = vsel %vm472_vm8, %v609_v42, %v553_v48 }
  0xbe   : >> { %v601_v24 = vsel %vm456_vm4, %v1727_v47, %v501_v52 }
  0xc0   : >> { %v422_v57 = vpop.permute.xlu1 %421 }
  0xc1   : >> { %v372_v59 = vpop.permute.xlu0 %371  ;;  %v478_v50 = vsel %vm476_vm9, %v474_v43, %v422_v57 }
  0xc2   : >> { %v463_v40 = vsel %vm460_vm5, %v459_v22, %v372_v59 }
  0xc4   : >> { %v565_v60 = vpop.permute.xlu1 %564 }
  0xc5   : >> { %v515_v63 = vpop.permute.xlu0 %514  ;;  %v615_v26 = vsel %vm476_vm9, %v612_v19, %v565_v60 }
  0xc6   : >> { %v604_v27 = vsel %vm460_vm5, %v601_v24, %v515_v63 }
  0xc8   : >> { %v436_v25 = vpop.permute.xlu1 %435 }
  0xc9   : >> { %v384_v29 = vpop.permute.xlu0 %383  ;;  %v482_v20 = vsel %vm480_vm10, %v478_v50, %v436_v25 }
  0xca   : >> { %v467_v39 = vsel %vm464_vm6, %v463_v40, %v384_v29 }
  0xcc   : >> { %v579_v37 = vpop.permute.xlu1 %578 }
  0xcd   : >> { %v527_v58 = vpop.permute.xlu0 %526  ;;  %v618_v54 = vsel %vm480_vm10, %v615_v26, %v579_v37 }
  0xce   : >> { %v607_v32 = vsel %vm464_vm6, %v604_v27, %v527_v58 }
  0xd0   : >> { %v450_v33 = vpop.permute.xlu1 %449 }
  0xd1   : >> { %v398_v35 = vpop.permute.xlu0 %397  ;;  %v486_v61 = vsel %vm484_vm11, %v482_v20, %v450_v33 }
  0xd2   : >> { %1355 = vmatmul.mubr.msk.f32.gmra.mrb[2].mxu0 %vm623_vm12, %v486_v61  ;;  %v471_v31 = vsel %vm468_vm7, %v467_v39, %v398_v35 }
  0xd3   : >> { %1357 = vmatprep.mubr.msk.f32.mxu0 %vm1491_vm3, %v1490_v36 }
  0xd4   : >> { %v593_v49 = vpop.permute.xlu1 %592 }
  0xd5   : >> { %v541_v56 = vpop.permute.xlu0 %540  ;;  %v621_v21 = vsel %vm484_vm11, %v618_v54, %v593_v49 }
  0xd6   : >> { %1336 = vmatmul.mubr.msk.f32.gmra.mrb[2].mxu1 %vm623_vm12, %v621_v21  ;;  %v610_v46 = vsel %vm468_vm7, %v607_v32, %v541_v56 }
  0xd7   : >> { %1338 = vmatprep.mubr.msk.f32.mxu1 %vm1491_vm3, %v1490_v36 }
  0xd8   : >> { %v555_v62 = vpop.permute.xlu1 %554 }
  0xd9   : >> { %v412_v17 = vpop.permute.xlu0 %411  ;;  %v613_v48 = vsel %vm472_vm8, %v610_v46, %v555_v62 }
  0xda   : >> { %v475_v41 = vsel %vm472_vm8, %v471_v31, %v412_v17 }
  0xdc   : >> { %v567_v18 = vpop.permute.xlu1 %566 }
  0xdd   : >> { %v424_v53 = vpop.permute.xlu0 %423  ;;  %v616_v47 = vsel %vm476_vm9, %v613_v48, %v567_v18 }
  0xde   : >> { %v479_v51 = vsel %vm476_vm9, %v475_v41, %v424_v53 }
  0xe0   : >> { %v581_v45 = vpop.permute.xlu1 %580 }
  0xe1   : >> { %v438_v36 = vpop.permute.xlu0 %437  ;;  %v619_v52 = vsel %vm480_vm10, %v616_v47, %v581_v45 }
  0xe2   : >> { %v483_v57 = vsel %vm480_vm10, %v479_v51, %v438_v36 }
  0xe4   : >> { %v595_v59 = vpop.permute.xlu1 %594 }
  0xe5   : >> { %v452_v60 = vpop.permute.xlu0 %451  ;;  %v622_v63 = vsel %vm484_vm11, %v619_v52, %v595_v59 }
  0xe6   : >> { %v487_v25 = vsel %vm484_vm11, %v483_v57, %v452_v60  ;;  %1339 = vmatmul.mubr.msk.f32.gmra.mrb[4].mxu1 %vm623_vm12, %v622_v63 }
  0xe7   : >> { %1358 = vmatmul.mubr.msk.f32.gmra.mrb[4].mxu0 %vm623_vm12, %v487_v25 }
 0x185   : >> { %v795_v29 = vpop.f32.mrb[0].mxu0 }
 0x186   : >> { %v1353_v30 = vpop.f32.mrb[1].mxu0 }
 0x189   : >> { %v703_v23 = vpop.f32.mrb[0].mxu1 }
 0x18a   : >> { %v796_v34 = vadd.f32 %v795_v29, %v703_v23  ;;  %v1334_v37 = vpop.f32.mrb[1].mxu1 }
 0x18c   : >> { %v809_v58 = vmax.f32 %v796_v34, 0.0 }
 0x18e   : >> { %813 = vst.msk [vmem:[%s812_s17] sm:$0xff] %vm456_vm4, %v809_v58 }
 0x1a5   : >> { %v800_v28 = vpop.f32.mrb[2].mxu0 }
 0x1a6   : >> { %v1356_v38 = vpop.f32.mrb[3].mxu0 }
 0x1a9   : >> { %v708_v43 = vpop.f32.mrb[2].mxu1 }
 0x1aa   : >> { %v801_v44 = vadd.f32 %v800_v28, %v708_v43  ;;  %v1337_v50 = vpop.f32.mrb[3].mxu1 }
 0x1ac   : >> { %v810_v55 = vmax.f32 %v801_v44, 0.0 }
 0x1ae   : >> { %814 = vst.msk [vmem:[%s812_s17 + $0x8] sm:$0xff] %vm456_vm4, %v810_v55 }
 0x1b9   : >> { %v713_v20 = vpop.f32.mrb[4].mxu1  ;;  %320 = sbr.rel (!%p318_p4) target bundleno = 18 (0x12), region = 100 }
 0x1ba   : >> { %v805_v33 = vpop.f32.mrb[4].mxu0  ;;  %v1340_v42 = vpop.f32.mrb[5].mxu1 }
 0x1bb   : >> { %v806_v35 = vadd.f32 %v805_v33, %v713_v20  ;;  %v1359_v61 = vpop.f32.mrb[5].mxu0 }
 0x1bd   : >> { %v811_v19 = vmax.f32 %v806_v35, 0.0 }
 0x1bf   : >> { %816 = vst.msk [vmem:[%s812_s17 + $0x10] sm:$0x3f] %vm815_vm13, %v811_v19 }
 0x1c0 LB: >> { %s823_s19 = smul.u32 24, %s1481_s18  ;;  %v1403_v26 = vpack.c.bf16 %v1611_v11, %v1606_v10  ;;  %v1494_v54 = vmov 0.0|0.0   ;;  %s1495_s20 = smov 12   ;;  %v1406_v27 = vpack.c.bf16 %v1621_v13, %v1616_v12  ;;  %v1499_v39 = vmov 0.0   ;;  %s1481_s18 = sphi %s1959_s18, %s822_s18  }
 0x1c1   : >> { %1402 = vmatprep.subr.bf16.mxu0 %v1494_v54  ;;  %s1496_s22 = smov 4   ;;  %s1497_s23 = smov 16   ;;  %1379 = vmatprep.subr.mxu1 %v1499_v39  ;;  %vm1501_vm14 = vmmov 0   ;;  %vm1175_vm15 = vcmask 15360   ;;  %vm1178_vm3 = vcmask 11264  }
 0x1c2   : >> { %s1969_s21 = scalar_lea.vmem [#allocation2], %s823_s19  ;;  %1404 = vmatpush3.bf16.msra.mxu0 %v1403_v26  ;;  %s1498_s25 = smov 8   ;;  %1370 = vmatprep.mubr.msk.f32.mxu0 %vm1501_vm14, %v1499_v39 }
 0x1c3   : >> { %1405 = vmatprep.subr.bf16.mxu0 %v1494_v54  ;;  %s1500_s26 = smov 20   ;;  %1380 = vmatpush3.msk.msra.mxu1 %vm633_vm2, %v1631_v15  ;;  %s1502_s28 = smov 24  }
 0x1c4   : >> { %1381 = vmatprep.mubr.msk.f32.mxu1 %vm1501_vm14, %v1499_v39  ;;  %s1503_s30 = smov 28   ;;  %s1504_s29 = smov 32  }
 0x1c5   : >> { %s1174_s8 = scalar_lea.vmem %s1651_s27, %s823_s19  ;;  %s822_s18 = sadd.s32 1, %s1481_s18  }
 0x1c6   : >> { %v828_v0 = vld [vmem:[%s1969_s21 + $0x18] sm:$0xff]  ;;  %v1973_v1 = vld [vmem:[%s1969_s21] sm:$0xff]  ;;  %v1976_v2 = vld [vmem:[%s1969_s21 + $0x8] sm:$0xff]  ;;  %1407 = vmatpush3.bf16.msra.mxu0 %v1406_v27  ;;  %p819_p5 = scmp.ge.s32.totalorder %s822_s18, 20  }
 0x1c7   : >> { %870 = vrot.lane.b32.xlu1 %v828_v0, %s1495_s20  ;;  %v838_v3 = vrot.slane %v1973_v1, 1  ;;  %v839_v4 = vrot.slane %v1976_v2, 1  ;;  %v829_v5 = vld [vmem:[%s1969_s21 + $0x20] sm:$0xff]  ;;  %v879_v6 = vrot.slane %v828_v0, 1  ;;  %v853_v7 = vrot.slane %v1973_v1, 2  ;;  %v831_v24 = vld [vmem:[%s1969_s21 + $0x30] sm:$0xff]  ;;  %1368 = vmatprep.subr.mxu0 %v1499_v39 }
 0x1c8   : >> { %v880_v8 = vrot.slane %v829_v5, 1  ;;  %v854_v9 = vrot.slane %v1976_v2, 2  ;;  %v893_v49 = vrot.slane %v828_v0, 2  ;;  %v894_v56 = vrot.slane %v829_v5, 2  ;;  %v1985_v21 = vld [vmem:[%s1969_s21 + $0x10] sm:$0x3f] }
 0x1c9   : >> { %v840_v62 = vsel %vm346_vm1, %v838_v3, %v839_v4  ;;  %v841_v53 = vrot.slane %v1985_v21, 1  ;;  %v832_v40 = vld [vmem:[%s1969_s21 + $0x38] sm:$0xff]  ;;  %v856_v45 = vrot.slane %v1985_v21, 2  ;;  %v919_v36 = vrot.slane %v831_v24, 1  ;;  %v830_v51 = vld [vmem:[%s1969_s21 + $0x28] sm:$0x3f] }
 0x1ca   : >> { %843 = vrot.lane.b32.xlu0 %v840_v62, %s1496_s22  ;;  %v881_v17 = vsel %vm346_vm1, %v879_v6, %v880_v8  ;;  %v855_v18 = vsel %vm361_vm0, %v853_v7, %v854_v9  ;;  %v895_v22 = vsel %vm361_vm0, %v893_v49, %v894_v56  ;;  %v920_v31 = vrot.slane %v832_v40, 1  ;;  %1369 = vmatpush3.msk.msra.mxu0 %vm633_vm2, %v1626_v14  ;;  %v833_v25 = vld [vmem:[%s1969_s21 + $0x40] sm:$0x3f] }
 0x1cb   : >> { %884 = vrot.lane.b32.xlu1 %v881_v17, %s1497_s23  ;;  %v842_v32 = vsel %vm346_vm1, %v839_v4, %v841_v53  ;;  %v857_v46 = vsel %vm361_vm0, %v854_v9, %v856_v45  ;;  %v933_v41 = vrot.slane %v831_v24, 2  ;;  %v934_v47 = vrot.slane %v832_v40, 2 }
 0x1cc   : >> { %v921_v48 = vsel %vm346_vm1, %v919_v36, %v920_v31  ;;  %v882_v52 = vrot.slane %v830_v51, 1  ;;  %v896_v59 = vrot.slane %v830_v51, 2  ;;  %v922_v29 = vrot.slane %v833_v25, 1 }
 0x1cd   : >> { %v935_v57 = vsel %vm361_vm0, %v933_v41, %v934_v47  ;;  %v936_v23 = vrot.slane %v833_v25, 2 }
 0x1ce   : >> { %858 = vrot.lane.b32.xlu0 %v855_v18, %s1498_s25  ;;  %v883_v60 = vsel %vm346_vm1, %v880_v8, %v882_v52  ;;  %v897_v63 = vsel %vm361_vm0, %v894_v56, %v896_v59  ;;  %v923_v30 = vsel %vm346_vm1, %v920_v31, %v922_v29 }
 0x1cf   : >> { %898 = vrot.lane.b32.xlu1 %v895_v22, %s1500_s26  ;;  %v937_v34 = vsel %vm361_vm0, %v934_v47, %v936_v23 }
 0x1d2   : >> { %845 = vrot.lane.b32.xlu0 %v842_v32, %s1496_s22 }
 0x1d3   : >> { %910 = vrot.lane.b32.xlu1 %v831_v24, %s1502_s28 }
 0x1d6   : >> { %860 = vrot.lane.b32.xlu0 %v857_v46, %s1498_s25 }
 0x1d7   : >> { %924 = vrot.lane.b32.xlu1 %v921_v48, %s1503_s30 }
 0x1da   : >> { %872 = vrot.lane.b32.xlu0 %v829_v5, %s1495_s20 }
 0x1db   : >> { %938 = vrot.lane.b32.xlu1 %v935_v57, %s1504_s29 }
 0x1de   : >> { %886 = vrot.lane.b32.xlu0 %v883_v60, %s1497_s23 }
 0x1df   : >> { %900 = vrot.lane.b32.xlu1 %v897_v63, %s1500_s26 }
 0x1e2   : >> { %847 = vrot.lane.b32.xlu0 %v841_v53, %s1496_s22 }
 0x1e3   : >> { %912 = vrot.lane.b32.xlu1 %v832_v40, %s1502_s28 }
 0x1e6   : >> { %862 = vrot.lane.b32.xlu0 %v856_v45, %s1498_s25 }
 0x1e7   : >> { %926 = vrot.lane.b32.xlu1 %v923_v30, %s1503_s30 }
 0x1ea   : >> { %874 = vrot.lane.b32.xlu0 %v830_v51, %s1495_s20 }
 0x1eb   : >> { %940 = vrot.lane.b32.xlu1 %v937_v34, %s1504_s29 }
 0x1ee   : >> { %888 = vrot.lane.b32.xlu0 %v882_v52, %s1497_s23 }
 0x1ef   : >> { %914 = vrot.lane.b32.xlu1 %v833_v25, %s1502_s28 }
 0x1f2   : >> { %902 = vrot.lane.b32.xlu0 %v896_v59, %s1500_s26 }
 0x1f3   : >> { %942 = vrot.lane.b32.xlu1 %v936_v23, %s1504_s29 }
 0x1f6   : >> { %928 = vrot.lane.b32.xlu0 %v922_v29, %s1503_s30 }
 0x239   : >> { %v871_v37 = vpop.permute.xlu1 %870 }
 0x23c   : >> { %v844_v58 = vpop.permute.xlu0 %843 }
 0x23d   : >> { %v885_v28 = vpop.permute.xlu1 %884  ;;  %v948_v38 = vsel %vm456_vm4, %v1973_v1, %v844_v58 }
 0x240   : >> { %v859_v43 = vpop.permute.xlu0 %858 }
 0x241   : >> { %v952_v44 = vsel %vm460_vm5, %v948_v38, %v859_v43  ;;  %v899_v50 = vpop.permute.xlu1 %898 }
 0x242   : >> { %v956_v55 = vsel %vm464_vm6, %v952_v44, %v871_v37 }
 0x243   : >> { %v960_v35 = vsel %vm468_vm7, %v956_v55, %v885_v28 }
 0x244   : >> { %v846_v20 = vpop.permute.xlu0 %845  ;;  %v964_v61 = vsel %vm472_vm8, %v960_v35, %v899_v50 }
 0x245   : >> { %v911_v33 = vpop.permute.xlu1 %910  ;;  %v949_v7 = vsel %vm456_vm4, %v1976_v2, %v846_v20 }
 0x246   : >> { %v968_v26 = vsel %vm476_vm9, %v964_v61, %v911_v33 }
 0x248   : >> { %v861_v42 = vpop.permute.xlu0 %860 }
 0x249   : >> { %v925_v19 = vpop.permute.xlu1 %924  ;;  %v953_v9 = vsel %vm460_vm5, %v949_v7, %v861_v42 }
 0x24a   : >> { %v972_v0 = vsel %vm480_vm10, %v968_v26, %v925_v19 }
 0x24c   : >> { %v873_v54 = vpop.permute.xlu0 %872 }
 0x24d   : >> { %v939_v1 = vpop.permute.xlu1 %938  ;;  %v957_v49 = vsel %vm464_vm6, %v953_v9, %v873_v54 }
 0x24e   : >> { %v976_v3 = vsel %vm484_vm11, %v972_v0, %v939_v1 }
 0x24f   : >> { %1371 = vmatmul.mubr.msk.f32.vlgmr.msra.gmra.mrb[0].mxu0 %vm623_vm12, %v976_v3 }
 0x250   : >> { %v887_v4 = vpop.permute.xlu0 %886  ;;  %1373 = vmatprep.mubr.msk.f32.mxu0 %vm1501_vm14, %v1499_v39 }
 0x251   : >> { %v901_v5 = vpop.permute.xlu1 %900  ;;  %v961_v56 = vsel %vm468_vm7, %v957_v49, %v887_v4 }
 0x252   : >> { %v965_v18 = vsel %vm472_vm8, %v961_v56, %v901_v5 }
 0x254   : >> { %v848_v6 = vpop.permute.xlu0 %847 }
 0x255   : >> { %v913_v8 = vpop.permute.xlu1 %912  ;;  %v950_v32 = vsel %vm456_vm4, %v1985_v21, %v848_v6 }
 0x256   : >> { %v969_v53 = vsel %vm476_vm9, %v965_v18, %v913_v8 }
 0x258   : >> { %v863_v62 = vpop.permute.xlu0 %862 }
 0x259   : >> { %v927_v17 = vpop.permute.xlu1 %926  ;;  %v954_v36 = vsel %vm460_vm5, %v950_v32, %v863_v62 }
 0x25a   : >> { %v973_v24 = vsel %vm480_vm10, %v969_v53, %v927_v17 }
 0x25c   : >> { %v875_v22 = vpop.permute.xlu0 %874 }
 0x25d   : >> { %v941_v40 = vpop.permute.xlu1 %940  ;;  %v958_v31 = vsel %vm464_vm6, %v954_v36, %v875_v22 }
 0x25e   : >> { %v977_v27 = vsel %vm484_vm11, %v973_v24, %v941_v40 }
 0x25f   : >> { %1374 = vmatmul.mubr.msk.f32.gmra.mrb[2].mxu0 %vm623_vm12, %v977_v27 }
 0x260   : >> { %v889_v2 = vpop.permute.xlu0 %888  ;;  %1376 = vmatprep.mubr.msk.f32.mxu0 %vm1501_vm14, %v1499_v39 }
 0x261   : >> { %v915_v45 = vpop.permute.xlu1 %914  ;;  %v962_v46 = vsel %vm468_vm7, %v958_v31, %v889_v2 }
 0x264   : >> { %v903_v48 = vpop.permute.xlu0 %902 }
 0x265   : >> { %v966_v41 = vsel %vm472_vm8, %v962_v46, %v903_v48  ;;  %v943_v47 = vpop.permute.xlu1 %942 }
 0x266   : >> { %v970_v51 = vsel %vm476_vm9, %v966_v41, %v915_v45 }
 0x268   : >> { %v929_v52 = vpop.permute.xlu0 %928 }
 0x269   : >> { %v974_v57 = vsel %vm480_vm10, %v970_v51, %v929_v52 }
 0x26a   : >> { %v978_v59 = vsel %vm484_vm11, %v974_v57, %v943_v47 }
 0x26b   : >> { %1377 = vmatmul.mubr.msk.f32.gmra.mrb[4].mxu0 %vm623_vm12, %v978_v59 }
 0x322   : >> { %v1059_v21 = vpop.f32.mrb[0].mxu0 }
 0x323   : >> { %v1073_v60 = vmax.f32 %v1059_v21, 0.0  ;;  %v1372_v63 = vpop.f32.mrb[1].mxu0 }
 0x325   : >> { %1382 = vmatmul.mubr.msk.f32.vlgmr.msra.gmra.mrb[0].mxu1 %vm456_vm4, %v1073_v60 }
 0x326   : >> { %1384 = vmatprep.mubr.msk.f32.mxu1 %vm1501_vm14, %v1499_v39 }
 0x332   : >> { %v1064_v25 = vpop.f32.mrb[2].mxu0 }
 0x333   : >> { %v1074_v29 = vmax.f32 %v1064_v25, 0.0  ;;  %v1375_v30 = vpop.f32.mrb[3].mxu0 }
 0x335   : >> { %1385 = vmatmul.mubr.msk.f32.gmra.mrb[2].mxu1 %vm456_vm4, %v1074_v29 }
 0x336   : >> { %1387 = vmatprep.mubr.msk.f32.mxu1 %vm1501_vm14, %v1499_v39 }
 0x33e   : >> { %v1069_v23 = vpop.f32.mrb[4].mxu0 }
 0x33f   : >> { %v1075_v34 = vmax.f32 %v1069_v23, 0.0  ;;  %v1378_v37 = vpop.f32.mrb[5].mxu0 }
 0x341   : >> { %1388 = vmatmul.mubr.msk.f32.gmra.mrb[4].mxu1 %vm456_vm4, %v1075_v34 }
 0x3f8   : >> { %v1160_v58 = vpop.f32.mrb[0].mxu1 }
 0x3f9   : >> { %v1161_v28 = vadd.f32 %v1636_v16, %v1160_v58  ;;  %v1383_v38 = vpop.f32.mrb[1].mxu1 }
 0x3fb   : >> { %1176 = vst.msk [vmem:[%s1174_s8] sm:$0xff] %vm1175_vm15, %v1161_v28 }
 0x408   : >> { %v1165_v43 = vpop.f32.mrb[2].mxu1 }
 0x409   : >> { %v1166_v44 = vadd.f32 %v1636_v16, %v1165_v43  ;;  %v1386_v50 = vpop.f32.mrb[3].mxu1 }
 0x40b   : >> { %1177 = vst.msk [vmem:[%s1174_s8 + $0x8] sm:$0xff] %vm1175_vm15, %v1166_v44 }
 0x411   : > { %821 = sbr.rel (!%p819_p5) target bundleno = 448 (0x1c0), region = 111 }
 0x414   : >> { %v1170_v55 = vpop.f32.mrb[4].mxu1 }
 0x415   : >> { %v1171_v39 = vadd.f32 %v1636_v16, %v1170_v55  ;;  %v1389_v20 = vpop.f32.mrb[5].mxu1 }
 0x417   : >> { %1179 = vst.msk [vmem:[%s1174_s8 + $0x10] sm:$0xf] %vm1178_vm3, %v1171_v39 }
 0x418 PF: > { %s17_s24 = sadd.s32 1, %s1473_s24  }
 0x419   : > { %p14_p6 = scmp.ge.s32.totalorder %s17_s24, 4  }
 0x41b   :  { %16 = sbr.rel (!%p14_p6) target bundleno = 1 (0x1), region = 122 }

</bundles_post_ra>
